<compile_context>
chip_gen: v5e
topology: v5e:2x2
jax: 0.10.0
libtpu: 0.0.40
codegen_flags: <defaults>
</compile_context>

<pallas_src>
import jax
import jax.numpy as jnp
from jax.experimental import pallas as pl
from jax.experimental.pallas import tpu as pltpu

BN_EPS = 1e-5

_MIN_VMEM_LIMIT = 32 * 1024 * 1024   # >= compiler defaults (16/32 MiB)
_MAX_VMEM_LIMIT = 48 * 1024 * 1024   # headroom under v7x's 64 MiB physical VMEM

_TAPS = tuple((dh, dw) for dh in range(3) for dw in range(3))


def _vmem_limit(needed_bytes):
    """Explicit VMEM budget (already includes temporaries) + 50% margin."""
    return int(min(max(int(needed_bytes * 1.5), _MIN_VMEM_LIMIT),
                   _MAX_VMEM_LIMIT))


def _zero_halo_and_fill(xpad, interior):
    """Zero ONLY the 1-wide halo border; the interior is overwritten anyway.

    The border zeroing is kept inside every grid iteration (scratch is
    per-core; a program_id==0 guard would be unsafe under megacore splits).
    """
    Hp2, Wp2, C = xpad.shape
    H, W = Hp2 - 2, Wp2 - 2
    z_row = jnp.zeros((1, Wp2, C), xpad.dtype)
    z_col = jnp.zeros((Hp2, 1, C), xpad.dtype)
    xpad[0:1, :, :] = z_row
    xpad[H + 1:H + 2, :, :] = z_row
    xpad[:, 0:1, :] = z_col
    xpad[:, W + 1:W + 2, :] = z_col
    xpad[1:H + 1, 1:W + 1, :] = interior


def _conv3x3_acc(xpad, w_ref, H, W, Cin, Cout):
    """3x3 conv as 9 accumulating MXU matmuls (no im2col concat temporary).

    Matmul inputs are in the activation dtype (native MXU path for bf16);
    accumulation is f32 via preferred_element_type.
    """
    acc = jnp.zeros((H * W, Cout), jnp.float32)
    for t, (dh, dw) in enumerate(_TAPS):
        tap = xpad[dh:dh + H, dw:dw + W, :].reshape(H * W, Cin)
        acc = acc + jnp.dot(tap, w_ref[t], preferred_element_type=jnp.float32)
    return acc


# ----------------------------------------------------------------------------
# Pass A: per-image conv1 + BN partial statistics.
# ----------------------------------------------------------------------------
def _conv_stats_kernel(x_ref, w_ref, conv_ref, stats_ref, xpad):
    """x_ref: (1,H,W,Cin); w_ref: (9,Cin,Cout); conv_ref: (1,H*W,Cout);
    stats_ref: (1,2,Cout) per-image [sum, sumsq]; xpad: (H+2,W+2,Cin)."""
    _, H, W, Cin = x_ref.shape
    Cout = conv_ref.shape[-1]

    _zero_halo_and_fill(xpad, x_ref[0])
    acc = _conv3x3_acc(xpad, w_ref, H, W, Cin, Cout)

    conv_ref[0] = acc.astype(conv_ref.dtype)      # store in activation dtype
    s = jnp.sum(acc, axis=0, keepdims=True)       # f32 partial stats
    sq = jnp.sum(acc * acc, axis=0, keepdims=True)
    stats_ref[0] = jnp.concatenate([s, sq], axis=0)


# ----------------------------------------------------------------------------
# Pass B (fused): bn1-apply + ReLU + conv2 + BN partial statistics.
# The per-image tile contains the full halo, so fusing bn1/ReLU with conv2
# is legal and removes one full feature-map HBM write + read.
# ----------------------------------------------------------------------------
def _bn_relu_conv_stats_kernel(conv1_ref, scale_ref, shift_ref, w_ref,
                               conv2_ref, stats_ref, apad):
    """conv1_ref: (1,H,W,Cmid); scale/shift: (1,Cmid); w_ref: (9,Cmid,Cout);
    conv2_ref: (1,H*W,Cout); stats_ref: (1,2,Cout); apad: (H+2,W+2,Cmid)."""
    _, H, W, Cmid = conv1_ref.shape
    Cout = conv2_ref.shape[-1]

    scale = scale_ref[...].reshape(1, 1, 1, Cmid)
    shift = shift_ref[...].reshape(1, 1, 1, Cmid)
    a1 = jnp.maximum(conv1_ref[...].astype(jnp.float32) * scale + shift, 0.0)

    _zero_halo_and_fill(apad, a1[0].astype(apad.dtype))
    acc = _conv3x3_acc(apad, w_ref, H, W, Cmid, Cout)

    conv2_ref[0] = acc.astype(conv2_ref.dtype)
    s = jnp.sum(acc, axis=0, keepdims=True)
    sq = jnp.sum(acc * acc, axis=0, keepdims=True)
    stats_ref[0] = jnp.concatenate([s, sq], axis=0)


# ----------------------------------------------------------------------------
# Pass C: bn2-apply + residual + ReLU on a lane-dense merged (H, W*Cout) view.
# scale/shift come pre-tiled to (W*Cout,) so no in-kernel relayout is needed.
# ----------------------------------------------------------------------------
def _bn_res_relu_kernel(conv_ref, scale_ref, shift_ref, res_ref, out_ref):
    y = conv_ref[0].astype(jnp.float32) * scale_ref[...] + shift_ref[...]
    y = y + res_ref[0].astype(jnp.float32)
    out_ref[0] = jnp.maximum(y, 0.0).astype(out_ref.dtype)


def basic_block_forward(x_nchw, params):
    """BasicBlock(inplanes=planes, stride=1, downsample=None) forward."""
    w1, g1, b1, w2, g2, b2 = params
    N, C, H, W = x_nchw.shape
    Cout = w1.shape[0]
    assert w1.shape == (Cout, C, 3, 3) and w2.shape == (Cout, Cout, 3, 3)
    assert C == Cout, "identity residual requires inplanes == planes"

    f32 = jnp.float32
    act_dtype = x_nchw.dtype
    itm = jnp.dtype(act_dtype).itemsize
    cnt = float(N * H * W)

    # Single layout conversion at the block boundary; NHWC inside.
    x_nhwc = jnp.transpose(x_nchw, (0, 2, 3, 1))

    def fold_w(w_oihw):
        # OIHW -> (tap = dh*3+dw, Cin, Cout), in the activation dtype so the
        # matmul hits the native MXU path when activations are bf16.
        co, ci = w_oihw.shape[0], w_oihw.shape[1]
        return jnp.transpose(w_oihw, (2, 3, 1, 0)).reshape(9, ci, co).astype(act_dtype)

    def fold_bn(stats, gamma, beta):
        # Global (over N,H,W) training-mode batch statistics -> scale/shift.
        s = stats[:, 0, :].sum(axis=0)
        sq = stats[:, 1, :].sum(axis=0)
        mean = s / cnt
        var = jnp.maximum(sq / cnt - mean * mean, 0.0)
        scale = gamma.astype(f32) * jax.lax.rsqrt(var + BN_EPS)
        shift = beta.astype(f32) - mean * scale
        return scale, shift

    w1f = fold_w(w1)
    w2f = fold_w(w2)

    # ---------------- pass A: conv1 + per-image stats ----------------
    needA = (2 * H * W * C * itm              # x tiles (double buffered)
             + 2 * 9 * C * Cout * itm         # folded weights
             + 2 * H * W * Cout * itm         # conv1 out tiles
             + 2 * 2 * Cout * 4               # stats tiles
             + (H + 2) * (W + 2) * C * itm    # halo scratch
             + H * W * Cout * 4               # f32 accumulator
             + 2 * H * W * C * itm)           # tap-slice temporaries
    bytesA = (N * H * W * C * itm + 9 * C * Cout * itm
              + N * H * W * Cout * itm + N * 2 * Cout * 4)
    flopsA = 2 * N * H * W * 9 * C * Cout

    conv1, stats1 = pl.pallas_call(
        _conv_stats_kernel,
        out_shape=(jax.ShapeDtypeStruct((N, H * W, Cout), act_dtype),
                   jax.ShapeDtypeStruct((N, 2, Cout), f32)),
        grid_spec=pltpu.PrefetchScalarGridSpec(
            num_scalar_prefetch=0, grid=(N,),
            in_specs=[
                pl.BlockSpec((1, H, W, C), lambda n: (n, 0, 0, 0)),
                pl.BlockSpec((9, C, Cout), lambda n: (0, 0, 0)),
            ],
            out_specs=[
                pl.BlockSpec((1, H * W, Cout), lambda n: (n, 0, 0)),
                pl.BlockSpec((1, 2, Cout), lambda n: (n, 0, 0)),
            ],
            scratch_shapes=[pltpu.VMEM((H + 2, W + 2, C), act_dtype)],
        ),
        compiler_params=pltpu.CompilerParams(
            dimension_semantics=("parallel",),
            vmem_limit_bytes=_vmem_limit(needA)),
        cost_estimate=pl.CostEstimate(flops=int(flopsA), transcendentals=0,
                                      bytes_accessed=int(bytesA)),
    )(x_nhwc, w1f)

    scale1, shift1 = fold_bn(stats1, g1, b1)

    # ------- pass B (fused): bn1-apply + ReLU + conv2 + per-image stats -------
    conv1_4d = conv1.reshape(N, H, W, Cout)       # free: same HBM bytes
    needB = (2 * H * W * Cout * itm               # conv1 tiles
             + 2 * 2 * Cout * 4                   # scale/shift
             + 2 * 9 * Cout * Cout * itm          # folded weights
             + 2 * H * W * Cout * itm             # conv2 out tiles
             + 2 * 2 * Cout * 4                   # stats tiles
             + (H + 2) * (W + 2) * Cout * itm     # halo scratch
             + H * W * Cout * 4                   # f32 accumulator
             + H * W * Cout * 4                   # f32 activation temporary
             + 2 * H * W * Cout * itm)            # tap-slice temporaries
    bytesB = (N * H * W * Cout * itm + 2 * Cout * 4 + 9 * Cout * Cout * itm
              + N * H * W * Cout * itm + N * 2 * Cout * 4)
    flopsB = 2 * N * H * W * 9 * Cout * Cout + 3 * N * H * W * Cout

    conv2, stats2 = pl.pallas_call(
        _bn_relu_conv_stats_kernel,
        out_shape=(jax.ShapeDtypeStruct((N, H * W, Cout), act_dtype),
                   jax.ShapeDtypeStruct((N, 2, Cout), f32)),
        grid_spec=pltpu.PrefetchScalarGridSpec(
            num_scalar_prefetch=0, grid=(N,),
            in_specs=[
                pl.BlockSpec((1, H, W, Cout), lambda n: (n, 0, 0, 0)),
                pl.BlockSpec((1, Cout), lambda n: (0, 0)),
                pl.BlockSpec((1, Cout), lambda n: (0, 0)),
                pl.BlockSpec((9, Cout, Cout), lambda n: (0, 0, 0)),
            ],
            out_specs=[
                pl.BlockSpec((1, H * W, Cout), lambda n: (n, 0, 0)),
                pl.BlockSpec((1, 2, Cout), lambda n: (n, 0, 0)),
            ],
            scratch_shapes=[pltpu.VMEM((H + 2, W + 2, Cout), act_dtype)],
        ),
        compiler_params=pltpu.CompilerParams(
            dimension_semantics=("parallel",),
            vmem_limit_bytes=_vmem_limit(needB)),
        cost_estimate=pl.CostEstimate(flops=int(flopsB), transcendentals=0,
                                      bytes_accessed=int(bytesB)),
    )(conv1_4d, scale1.reshape(1, Cout), shift1.reshape(1, Cout), w2f)

    scale2, shift2 = fold_bn(stats2, g2, b2)

    # ---- pass C: bn2-apply + residual + ReLU, lane-dense (H, W*Cout) view ----
    WC = W * Cout
    conv2_m = conv2.reshape(N, H, WC)             # free: same HBM bytes
    res_m = x_nhwc.reshape(N, H, W * C)           # identity residual view
    scale2_row = jnp.tile(scale2, (W,)).reshape(1, WC)   # row[w*C + c] = scale[c]
    shift2_row = jnp.tile(shift2, (W,)).reshape(1, WC)

    needC = (2 * 3 * H * WC * itm                 # conv2 + residual + out tiles
             + 2 * 2 * WC * 4                     # scale/shift rows
             + 2 * H * WC * 4)                    # f32 temporaries
    bytesC = 3 * N * H * WC * itm + 2 * WC * 4
    flopsC = 4 * N * H * WC

    out_m = pl.pallas_call(
        _bn_res_relu_kernel,
        out_shape=jax.ShapeDtypeStruct((N, H, WC), act_dtype),
        grid_spec=pltpu.PrefetchScalarGridSpec(
            num_scalar_prefetch=0, grid=(N,),
            in_specs=[
                pl.BlockSpec((1, H, WC), lambda n: (n, 0, 0)),
                pl.BlockSpec((1, WC), lambda n: (0, 0)),
                pl.BlockSpec((1, WC), lambda n: (0, 0)),
                pl.BlockSpec((1, H, WC), lambda n: (n, 0, 0)),
            ],
            out_specs=pl.BlockSpec((1, H, WC), lambda n: (n, 0, 0)),
        ),
        compiler_params=pltpu.CompilerParams(
            dimension_semantics=("parallel",),
            vmem_limit_bytes=_vmem_limit(needC)),
        cost_estimate=pl.CostEstimate(flops=int(flopsC), transcendentals=0,
                                      bytes_accessed=int(bytesC)),
    )(conv2_m, scale2_row, shift2_row, res_m)

    out = out_m.reshape(N, H, W, Cout)
    return jnp.transpose(out, (0, 3, 1, 2))       # back to NCHW


def reference_forward(x, params):
    """Pure-JAX reference (NCHW), for a correctness check."""
    w1, g1, b1, w2, g2, b2 = params

    def conv(x, w):
        return jax.lax.conv_general_dilated(
            x, w, window_strides=(1, 1), padding=((1, 1), (1, 1)),
            dimension_numbers=("NCHW", "OIHW", "NCHW"))

    def bn(y, g, b):
        mean = y.mean(axis=(0, 2, 3), keepdims=True)
        var = ((y - mean) ** 2).mean(axis=(0, 2, 3), keepdims=True)
        return ((y - mean) * jax.lax.rsqrt(var + BN_EPS)
                * g.reshape(1, -1, 1, 1) + b.reshape(1, -1, 1, 1))

    out = jnp.maximum(bn(conv(x, w1), g1, b1), 0.0)
    out = bn(conv(out, w2), g2, b2) + x
    return jnp.maximum(out, 0.0)


if __name__ == "__main__":
    # Small shapes: batch=2, inplanes=planes=4 (stride=1, downsample=None so
    # the identity residual is valid), spatial=16x16.
    N, C, H, W = 2, 4, 16, 16
    key = jax.random.PRNGKey(0)
    kx, kw1, kw2, kg1, kb1, kg2, kb2 = jax.random.split(key, 7)

    x = jax.random.normal(kx, (N, C, H, W), jnp.float32)
    w1 = jax.random.normal(kw1, (C, C, 3, 3), jnp.float32) * 0.1   # conv1 weight (OIHW)
    w2 = jax.random.normal(kw2, (C, C, 3, 3), jnp.float32) * 0.1   # conv2 weight (OIHW)
    g1 = 1.0 + 0.1 * jax.random.normal(kg1, (C,), jnp.float32)     # bn1 gamma
    b1 = 0.1 * jax.random.normal(kb1, (C,), jnp.float32)           # bn1 beta
    g2 = 1.0 + 0.1 * jax.random.normal(kg2, (C,), jnp.float32)     # bn2 gamma
    b2 = 0.1 * jax.random.normal(kb2, (C,), jnp.float32)           # bn2 beta
    params = (w1, g1, b1, w2, g2, b2)

    fwd = jax.jit(basic_block_forward)
    out = jax.block_until_ready(fwd(x, params))

    ref = jax.block_until_ready(reference_forward(x, params))
    assert out.shape == (N, C, H, W)
    assert jnp.allclose(out, ref, atol=1e-4, rtol=1e-4), float(
        jnp.max(jnp.abs(out - ref)))

    print("KERNEL_OK")
</pallas_src>

<mosaic_0001>
module attributes {stable_mosaic.version = 11 : i64} {
  func.func @_conv_stats_kernel(%arg0: i32, %arg1: memref<1x16x16x4xf32, #tpu.memory_space<vmem>>, %arg2: memref<9x4x4xf32, #tpu.memory_space<vmem>>, %arg3: memref<1x256x4xf32, #tpu.memory_space<vmem>>, %arg4: memref<1x2x4xf32, #tpu.memory_space<vmem>>, %arg5: memref<18x18x4xf32, #tpu.memory_space<vmem>>) attributes {dimension_semantics = [#tpu.dimension_semantics<parallel>], iteration_bounds = array<i64: 2>, scalar_prefetch = 0 : i64, scratch_operands = 1 : i64, tpu.core_type = #tpu.core_type<tc>, window_params = [{transform_indices = @transform_0, window_bounds = array<i64: 1, 16, 16, 4>}, {pipeline_mode = #tpu.pipeline_mode<synchronous>, transform_indices = @transform_1, window_bounds = array<i64: 9, 4, 4>}, {transform_indices = @transform_2, window_bounds = array<i64: 1, 256, 4>}, {transform_indices = @transform_3, window_bounds = array<i64: 1, 2, 4>}]} {
    %c0 = arith.constant 0 : index
    %c0_0 = arith.constant 0 : index
    %c0_1 = arith.constant 0 : index
    %c0_2 = arith.constant 0 : index
    %0 = vector.load %arg1[%c0, %c0_0, %c0_1, %c0_2] : memref<1x16x16x4xf32, #tpu.memory_space<vmem>>, vector<1x16x16x4xf32>
    %1 = vector.shape_cast %0 : vector<1x16x16x4xf32> to vector<16x16x4xf32>
    %cst = arith.constant 0.000000e+00 : f32
    %2 = vector.broadcast %cst : f32 to vector<1x18x4xf32>
    %cst_3 = arith.constant 0.000000e+00 : f32
    %3 = vector.broadcast %cst_3 : f32 to vector<18x1x4xf32>
    %c0_4 = arith.constant 0 : index
    %c0_5 = arith.constant 0 : index
    %c0_6 = arith.constant 0 : index
    %4 = vector.load %arg5[%c0_4, %c0_5, %c0_6] : memref<18x18x4xf32, #tpu.memory_space<vmem>>, vector<1x18x4xf32>
    tpu.vector_store %arg5[%c0_4, %c0_5, %c0_6], %2 {strides = array<i32>} : memref<18x18x4xf32, #tpu.memory_space<vmem>>, vector<1x18x4xf32>,
    %c17 = arith.constant 17 : index
    %c0_7 = arith.constant 0 : index
    %c0_8 = arith.constant 0 : index
    %5 = vector.load %arg5[%c17, %c0_7, %c0_8] : memref<18x18x4xf32, #tpu.memory_space<vmem>>, vector<1x18x4xf32>
    tpu.vector_store %arg5[%c17, %c0_7, %c0_8], %2 {strides = array<i32>} : memref<18x18x4xf32, #tpu.memory_space<vmem>>, vector<1x18x4xf32>,
    %c0_9 = arith.constant 0 : index
    %c0_10 = arith.constant 0 : index
    %c0_11 = arith.constant 0 : index
    %6 = vector.load %arg5[%c0_9, %c0_10, %c0_11] : memref<18x18x4xf32, #tpu.memory_space<vmem>>, vector<18x1x4xf32>
    tpu.vector_store %arg5[%c0_9, %c0_10, %c0_11], %3 {strides = array<i32>} : memref<18x18x4xf32, #tpu.memory_space<vmem>>, vector<18x1x4xf32>,
    %c0_12 = arith.constant 0 : index
    %c17_13 = arith.constant 17 : index
    %c0_14 = arith.constant 0 : index
    %7 = vector.load %arg5[%c0_12, %c17_13, %c0_14] : memref<18x18x4xf32, #tpu.memory_space<vmem>>, vector<18x1x4xf32>
    tpu.vector_store %arg5[%c0_12, %c17_13, %c0_14], %3 {strides = array<i32>} : memref<18x18x4xf32, #tpu.memory_space<vmem>>, vector<18x1x4xf32>,
    %c1 = arith.constant 1 : index
    %c1_15 = arith.constant 1 : index
    %c0_16 = arith.constant 0 : index
    %8 = vector.load %arg5[%c1, %c1_15, %c0_16] : memref<18x18x4xf32, #tpu.memory_space<vmem>>, vector<16x16x4xf32>
    tpu.vector_store %arg5[%c1, %c1_15, %c0_16], %1 {strides = array<i32>} : memref<18x18x4xf32, #tpu.memory_space<vmem>>, vector<16x16x4xf32>,
    %cst_17 = arith.constant 0.000000e+00 : f32
    %9 = vector.broadcast %cst_17 : f32 to vector<256x4xf32>
    %c0_18 = arith.constant 0 : index
    %c0_19 = arith.constant 0 : index
    %c0_20 = arith.constant 0 : index
    %10 = vector.load %arg5[%c0_18, %c0_19, %c0_20] : memref<18x18x4xf32, #tpu.memory_space<vmem>>, vector<16x16x4xf32>
    %11 = vector.shape_cast %10 : vector<16x16x4xf32> to vector<256x4xf32>
    %c0_21 = arith.constant 0 : index
    %c0_22 = arith.constant 0 : index
    %c0_23 = arith.constant 0 : index
    %12 = vector.load %arg2[%c0_21, %c0_22, %c0_23] : memref<9x4x4xf32, #tpu.memory_space<vmem>>, vector<1x4x4xf32>
    %13 = vector.shape_cast %12 : vector<1x4x4xf32> to vector<4x4xf32>
    %cst_24 = arith.constant dense<0.000000e+00> : vector<256x4xf32>
    %14 = tpu.matmul %11, %13, %cst_24 {dimension_numbers = #tpu.dot_dimension_numbers<[1], [0], [0], [1], [0, 0, 1, 1], [], []>} : vector<256x4xf32>, vector<4x4xf32>, vector<256x4xf32> -> vector<256x4xf32>
    %15 = arith.addf %9, %14 : vector<256x4xf32>
    %c0_25 = arith.constant 0 : index
    %c1_26 = arith.constant 1 : index
    %c0_27 = arith.constant 0 : index
    %16 = vector.load %arg5[%c0_25, %c1_26, %c0_27] : memref<18x18x4xf32, #tpu.memory_space<vmem>>, vector<16x16x4xf32>
    %17 = vector.shape_cast %16 : vector<16x16x4xf32> to vector<256x4xf32>
    %c1_28 = arith.constant 1 : index
    %c0_29 = arith.constant 0 : index
    %c0_30 = arith.constant 0 : index
    %18 = vector.load %arg2[%c1_28, %c0_29, %c0_30] : memref<9x4x4xf32, #tpu.memory_space<vmem>>, vector<1x4x4xf32>
    %19 = vector.shape_cast %18 : vector<1x4x4xf32> to vector<4x4xf32>
    %cst_31 = arith.constant dense<0.000000e+00> : vector<256x4xf32>
    %20 = tpu.matmul %17, %19, %cst_31 {dimension_numbers = #tpu.dot_dimension_numbers<[1], [0], [0], [1], [0, 0, 1, 1], [], []>} : vector<256x4xf32>, vector<4x4xf32>, vector<256x4xf32> -> vector<256x4xf32>
    %21 = arith.addf %15, %20 : vector<256x4xf32>
    %c0_32 = arith.constant 0 : index
    %c2 = arith.constant 2 : index
    %c0_33 = arith.constant 0 : index
    %22 = vector.load %arg5[%c0_32, %c2, %c0_33] : memref<18x18x4xf32, #tpu.memory_space<vmem>>, vector<16x16x4xf32>
    %23 = vector.shape_cast %22 : vector<16x16x4xf32> to vector<256x4xf32>
    %c2_34 = arith.constant 2 : index
    %c0_35 = arith.constant 0 : index
    %c0_36 = arith.constant 0 : index
    %24 = vector.load %arg2[%c2_34, %c0_35, %c0_36] : memref<9x4x4xf32, #tpu.memory_space<vmem>>, vector<1x4x4xf32>
    %25 = vector.shape_cast %24 : vector<1x4x4xf32> to vector<4x4xf32>
    %cst_37 = arith.constant dense<0.000000e+00> : vector<256x4xf32>
    %26 = tpu.matmul %23, %25, %cst_37 {dimension_numbers = #tpu.dot_dimension_numbers<[1], [0], [0], [1], [0, 0, 1, 1], [], []>} : vector<256x4xf32>, vector<4x4xf32>, vector<256x4xf32> -> vector<256x4xf32>
    %27 = arith.addf %21, %26 : vector<256x4xf32>
    %c1_38 = arith.constant 1 : index
    %c0_39 = arith.constant 0 : index
    %c0_40 = arith.constant 0 : index
    %28 = vector.load %arg5[%c1_38, %c0_39, %c0_40] : memref<18x18x4xf32, #tpu.memory_space<vmem>>, vector<16x16x4xf32>
    %29 = vector.shape_cast %28 : vector<16x16x4xf32> to vector<256x4xf32>
    %c3 = arith.constant 3 : index
    %c0_41 = arith.constant 0 : index
    %c0_42 = arith.constant 0 : index
    %30 = vector.load %arg2[%c3, %c0_41, %c0_42] : memref<9x4x4xf32, #tpu.memory_space<vmem>>, vector<1x4x4xf32>
    %31 = vector.shape_cast %30 : vector<1x4x4xf32> to vector<4x4xf32>
    %cst_43 = arith.constant dense<0.000000e+00> : vector<256x4xf32>
    %32 = tpu.matmul %29, %31, %cst_43 {dimension_numbers = #tpu.dot_dimension_numbers<[1], [0], [0], [1], [0, 0, 1, 1], [], []>} : vector<256x4xf32>, vector<4x4xf32>, vector<256x4xf32> -> vector<256x4xf32>
    %33 = arith.addf %27, %32 : vector<256x4xf32>
    %c1_44 = arith.constant 1 : index
    %c1_45 = arith.constant 1 : index
    %c0_46 = arith.constant 0 : index
    %34 = vector.load %arg5[%c1_44, %c1_45, %c0_46] : memref<18x18x4xf32, #tpu.memory_space<vmem>>, vector<16x16x4xf32>
    %35 = vector.shape_cast %34 : vector<16x16x4xf32> to vector<256x4xf32>
    %c4 = arith.constant 4 : index
    %c0_47 = arith.constant 0 : index
    %c0_48 = arith.constant 0 : index
    %36 = vector.load %arg2[%c4, %c0_47, %c0_48] : memref<9x4x4xf32, #tpu.memory_space<vmem>>, vector<1x4x4xf32>
    %37 = vector.shape_cast %36 : vector<1x4x4xf32> to vector<4x4xf32>
    %cst_49 = arith.constant dense<0.000000e+00> : vector<256x4xf32>
    %38 = tpu.matmul %35, %37, %cst_49 {dimension_numbers = #tpu.dot_dimension_numbers<[1], [0], [0], [1], [0, 0, 1, 1], [], []>} : vector<256x4xf32>, vector<4x4xf32>, vector<256x4xf32> -> vector<256x4xf32>
    %39 = arith.addf %33, %38 : vector<256x4xf32>
    %c1_50 = arith.constant 1 : index
    %c2_51 = arith.constant 2 : index
    %c0_52 = arith.constant 0 : index
    %40 = vector.load %arg5[%c1_50, %c2_51, %c0_52] : memref<18x18x4xf32, #tpu.memory_space<vmem>>, vector<16x16x4xf32>
    %41 = vector.shape_cast %40 : vector<16x16x4xf32> to vector<256x4xf32>
    %c5 = arith.constant 5 : index
    %c0_53 = arith.constant 0 : index
    %c0_54 = arith.constant 0 : index
    %42 = vector.load %arg2[%c5, %c0_53, %c0_54] : memref<9x4x4xf32, #tpu.memory_space<vmem>>, vector<1x4x4xf32>
    %43 = vector.shape_cast %42 : vector<1x4x4xf32> to vector<4x4xf32>
    %cst_55 = arith.constant dense<0.000000e+00> : vector<256x4xf32>
    %44 = tpu.matmul %41, %43, %cst_55 {dimension_numbers = #tpu.dot_dimension_numbers<[1], [0], [0], [1], [0, 0, 1, 1], [], []>} : vector<256x4xf32>, vector<4x4xf32>, vector<256x4xf32> -> vector<256x4xf32>
    %45 = arith.addf %39, %44 : vector<256x4xf32>
    %c2_56 = arith.constant 2 : index
    %c0_57 = arith.constant 0 : index
    %c0_58 = arith.constant 0 : index
    %46 = vector.load %arg5[%c2_56, %c0_57, %c0_58] : memref<18x18x4xf32, #tpu.memory_space<vmem>>, vector<16x16x4xf32>
    %47 = vector.shape_cast %46 : vector<16x16x4xf32> to vector<256x4xf32>
    %c6 = arith.constant 6 : index
    %c0_59 = arith.constant 0 : index
    %c0_60 = arith.constant 0 : index
    %48 = vector.load %arg2[%c6, %c0_59, %c0_60] : memref<9x4x4xf32, #tpu.memory_space<vmem>>, vector<1x4x4xf32>
    %49 = vector.shape_cast %48 : vector<1x4x4xf32> to vector<4x4xf32>
    %cst_61 = arith.constant dense<0.000000e+00> : vector<256x4xf32>
    %50 = tpu.matmul %47, %49, %cst_61 {dimension_numbers = #tpu.dot_dimension_numbers<[1], [0], [0], [1], [0, 0, 1, 1], [], []>} : vector<256x4xf32>, vector<4x4xf32>, vector<256x4xf32> -> vector<256x4xf32>
    %51 = arith.addf %45, %50 : vector<256x4xf32>
    %c2_62 = arith.constant 2 : index
    %c1_63 = arith.constant 1 : index
    %c0_64 = arith.constant 0 : index
    %52 = vector.load %arg5[%c2_62, %c1_63, %c0_64] : memref<18x18x4xf32, #tpu.memory_space<vmem>>, vector<16x16x4xf32>
    %53 = vector.shape_cast %52 : vector<16x16x4xf32> to vector<256x4xf32>
    %c7 = arith.constant 7 : index
    %c0_65 = arith.constant 0 : index
    %c0_66 = arith.constant 0 : index
    %54 = vector.load %arg2[%c7, %c0_65, %c0_66] : memref<9x4x4xf32, #tpu.memory_space<vmem>>, vector<1x4x4xf32>
    %55 = vector.shape_cast %54 : vector<1x4x4xf32> to vector<4x4xf32>
    %cst_67 = arith.constant dense<0.000000e+00> : vector<256x4xf32>
    %56 = tpu.matmul %53, %55, %cst_67 {dimension_numbers = #tpu.dot_dimension_numbers<[1], [0], [0], [1], [0, 0, 1, 1], [], []>} : vector<256x4xf32>, vector<4x4xf32>, vector<256x4xf32> -> vector<256x4xf32>
    %57 = arith.addf %51, %56 : vector<256x4xf32>
    %c2_68 = arith.constant 2 : index
    %c2_69 = arith.constant 2 : index
    %c0_70 = arith.constant 0 : index
    %58 = vector.load %arg5[%c2_68, %c2_69, %c0_70] : memref<18x18x4xf32, #tpu.memory_space<vmem>>, vector<16x16x4xf32>
    %59 = vector.shape_cast %58 : vector<16x16x4xf32> to vector<256x4xf32>
    %c8 = arith.constant 8 : index
    %c0_71 = arith.constant 0 : index
    %c0_72 = arith.constant 0 : index
    %60 = vector.load %arg2[%c8, %c0_71, %c0_72] : memref<9x4x4xf32, #tpu.memory_space<vmem>>, vector<1x4x4xf32>
    %61 = vector.shape_cast %60 : vector<1x4x4xf32> to vector<4x4xf32>
    %cst_73 = arith.constant dense<0.000000e+00> : vector<256x4xf32>
    %62 = tpu.matmul %59, %61, %cst_73 {dimension_numbers = #tpu.dot_dimension_numbers<[1], [0], [0], [1], [0, 0, 1, 1], [], []>} : vector<256x4xf32>, vector<4x4xf32>, vector<256x4xf32> -> vector<256x4xf32>
    %63 = arith.addf %57, %62 : vector<256x4xf32>
    %c0_74 = arith.constant 0 : index
    %c0_75 = arith.constant 0 : index
    %c0_76 = arith.constant 0 : index
    %64 = vector.load %arg3[%c0_74, %c0_75, %c0_76] : memref<1x256x4xf32, #tpu.memory_space<vmem>>, vector<1x256x4xf32>
    %65 = vector.shape_cast %64 : vector<1x256x4xf32> to vector<256x4xf32>
    %66 = vector.shape_cast %63 : vector<256x4xf32> to vector<1x256x4xf32>
    tpu.vector_store %arg3[%c0_74, %c0_75, %c0_76], %66 {strides = array<i32>} : memref<1x256x4xf32, #tpu.memory_space<vmem>>, vector<1x256x4xf32>,
    %cst_77 = arith.constant dense<0.000000e+00> : vector<4xf32>
    %67 = vector.multi_reduction <add>, %63, %cst_77 [0] : vector<256x4xf32> to vector<4xf32>
    %68 = vector.shape_cast %67 : vector<4xf32> to vector<1x4xf32>
    %69 = arith.mulf %63, %63 : vector<256x4xf32>
    %cst_78 = arith.constant dense<0.000000e+00> : vector<4xf32>
    %70 = vector.multi_reduction <add>, %69, %cst_78 [0] : vector<256x4xf32> to vector<4xf32>
    %71 = vector.shape_cast %70 : vector<4xf32> to vector<1x4xf32>
    %72 = tpu.concatenate %68, %71 in 0 : vector<1x4xf32>, vector<1x4xf32> -> vector<2x4xf32>
    %c0_79 = arith.constant 0 : index
    %c0_80 = arith.constant 0 : index
    %c0_81 = arith.constant 0 : index
    %73 = vector.load %arg4[%c0_79, %c0_80, %c0_81] : memref<1x2x4xf32, #tpu.memory_space<vmem>>, vector<1x2x4xf32>
    %74 = vector.shape_cast %73 : vector<1x2x4xf32> to vector<2x4xf32>
    %75 = vector.shape_cast %72 : vector<2x4xf32> to vector<1x2x4xf32>
    tpu.vector_store %arg4[%c0_79, %c0_80, %c0_81], %75 {strides = array<i32>} : memref<1x2x4xf32, #tpu.memory_space<vmem>>, vector<1x2x4xf32>,
    return
  }
  func.func @transform_0(%arg0: i32) -> (i32, i32, i32, i32) {
    %c0_i32 = arith.constant 0 : i32
    %c0_i32_0 = arith.constant 0 : i32
    %c0_i32_1 = arith.constant 0 : i32
    %c0_i32_2 = arith.constant 0 : i32
    return %arg0, %c0_i32, %c0_i32_0, %c0_i32_1 : i32, i32, i32, i32
  }
  func.func @transform_1(%arg0: i32) -> (i32, i32, i32) {
    %c0_i32 = arith.constant 0 : i32
    %c0_i32_0 = arith.constant 0 : i32
    %c0_i32_1 = arith.constant 0 : i32
    %c0_i32_2 = arith.constant 0 : i32
    return %c0_i32, %c0_i32_0, %c0_i32_1 : i32, i32, i32
  }
  func.func @transform_2(%arg0: i32) -> (i32, i32, i32) {
    %c0_i32 = arith.constant 0 : i32
    %c0_i32_0 = arith.constant 0 : i32
    %c0_i32_1 = arith.constant 0 : i32
    return %arg0, %c0_i32, %c0_i32_0 : i32, i32, i32
  }
  func.func @transform_3(%arg0: i32) -> (i32, i32, i32) {
    %c0_i32 = arith.constant 0 : i32
    %c0_i32_0 = arith.constant 0 : i32
    %c0_i32_1 = arith.constant 0 : i32
    return %arg0, %c0_i32, %c0_i32_0 : i32, i32, i32
  }
}

module attributes {stable_mosaic.version = 11 : i64} {
  func.func @_bn_relu_conv_stats_kernel(%arg0: i32, %arg1: memref<1x16x16x4xf32, #tpu.memory_space<vmem>>, %arg2: memref<1x4xf32, #tpu.memory_space<vmem>>, %arg3: memref<1x4xf32, #tpu.memory_space<vmem>>, %arg4: memref<9x4x4xf32, #tpu.memory_space<vmem>>, %arg5: memref<1x256x4xf32, #tpu.memory_space<vmem>>, %arg6: memref<1x2x4xf32, #tpu.memory_space<vmem>>, %arg7: memref<18x18x4xf32, #tpu.memory_space<vmem>>) attributes {dimension_semantics = [#tpu.dimension_semantics<parallel>], iteration_bounds = array<i64: 2>, scalar_prefetch = 0 : i64, scratch_operands = 1 : i64, tpu.core_type = #tpu.core_type<tc>, window_params = [{transform_indices = @transform_0, window_bounds = array<i64: 1, 16, 16, 4>}, {pipeline_mode = #tpu.pipeline_mode<synchronous>, transform_indices = @transform_1, window_bounds = array<i64: 1, 4>}, {pipeline_mode = #tpu.pipeline_mode<synchronous>, transform_indices = @transform_2, window_bounds = array<i64: 1, 4>}, {pipeline_mode = #tpu.pipeline_mode<synchronous>, transform_indices = @transform_3, window_bounds = array<i64: 9, 4, 4>}, {transform_indices = @transform_4, window_bounds = array<i64: 1, 256, 4>}, {transform_indices = @transform_5, window_bounds = array<i64: 1, 2, 4>}]} {
    %c0 = arith.constant 0 : index
    %c0_0 = arith.constant 0 : index
    %0 = vector.load %arg2[%c0, %c0_0] : memref<1x4xf32, #tpu.memory_space<vmem>>, vector<1x4xf32>
    %1 = vector.shape_cast %0 : vector<1x4xf32> to vector<1x1x1x4xf32>
    %c0_1 = arith.constant 0 : index
    %c0_2 = arith.constant 0 : index
    %2 = vector.load %arg3[%c0_1, %c0_2] : memref<1x4xf32, #tpu.memory_space<vmem>>, vector<1x4xf32>
    %3 = vector.shape_cast %2 : vector<1x4xf32> to vector<1x1x1x4xf32>
    %c0_3 = arith.constant 0 : index
    %c0_4 = arith.constant 0 : index
    %c0_5 = arith.constant 0 : index
    %c0_6 = arith.constant 0 : index
    %4 = vector.load %arg1[%c0_3, %c0_4, %c0_5, %c0_6] : memref<1x16x16x4xf32, #tpu.memory_space<vmem>>, vector<1x16x16x4xf32>
    %5 = vector.broadcast %1 : vector<1x1x1x4xf32> to vector<1x16x16x4xf32>
    %6 = arith.mulf %4, %5 : vector<1x16x16x4xf32>
    %7 = vector.broadcast %3 : vector<1x1x1x4xf32> to vector<1x16x16x4xf32>
    %8 = arith.addf %6, %7 : vector<1x16x16x4xf32>
    %cst = arith.constant 0.000000e+00 : f32
    %9 = vector.broadcast %cst : f32 to vector<1x16x16x4xf32>
    %10 = arith.maximumf %8, %9 : vector<1x16x16x4xf32>
    %11 = vector.shape_cast %10 : vector<1x16x16x4xf32> to vector<16x16x4xf32>
    %cst_7 = arith.constant 0.000000e+00 : f32
    %12 = vector.broadcast %cst_7 : f32 to vector<1x18x4xf32>
    %cst_8 = arith.constant 0.000000e+00 : f32
    %13 = vector.broadcast %cst_8 : f32 to vector<18x1x4xf32>
    %c0_9 = arith.constant 0 : index
    %c0_10 = arith.constant 0 : index
    %c0_11 = arith.constant 0 : index
    %14 = vector.load %arg7[%c0_9, %c0_10, %c0_11] : memref<18x18x4xf32, #tpu.memory_space<vmem>>, vector<1x18x4xf32>
    tpu.vector_store %arg7[%c0_9, %c0_10, %c0_11], %12 {strides = array<i32>} : memref<18x18x4xf32, #tpu.memory_space<vmem>>, vector<1x18x4xf32>,
    %c17 = arith.constant 17 : index
    %c0_12 = arith.constant 0 : index
    %c0_13 = arith.constant 0 : index
    %15 = vector.load %arg7[%c17, %c0_12, %c0_13] : memref<18x18x4xf32, #tpu.memory_space<vmem>>, vector<1x18x4xf32>
    tpu.vector_store %arg7[%c17, %c0_12, %c0_13], %12 {strides = array<i32>} : memref<18x18x4xf32, #tpu.memory_space<vmem>>, vector<1x18x4xf32>,
    %c0_14 = arith.constant 0 : index
    %c0_15 = arith.constant 0 : index
    %c0_16 = arith.constant 0 : index
    %16 = vector.load %arg7[%c0_14, %c0_15, %c0_16] : memref<18x18x4xf32, #tpu.memory_space<vmem>>, vector<18x1x4xf32>
    tpu.vector_store %arg7[%c0_14, %c0_15, %c0_16], %13 {strides = array<i32>} : memref<18x18x4xf32, #tpu.memory_space<vmem>>, vector<18x1x4xf32>,
    %c0_17 = arith.constant 0 : index
    %c17_18 = arith.constant 17 : index
    %c0_19 = arith.constant 0 : index
    %17 = vector.load %arg7[%c0_17, %c17_18, %c0_19] : memref<18x18x4xf32, #tpu.memory_space<vmem>>, vector<18x1x4xf32>
    tpu.vector_store %arg7[%c0_17, %c17_18, %c0_19], %13 {strides = array<i32>} : memref<18x18x4xf32, #tpu.memory_space<vmem>>, vector<18x1x4xf32>,
    %c1 = arith.constant 1 : index
    %c1_20 = arith.constant 1 : index
    %c0_21 = arith.constant 0 : index
    %18 = vector.load %arg7[%c1, %c1_20, %c0_21] : memref<18x18x4xf32, #tpu.memory_space<vmem>>, vector<16x16x4xf32>
    tpu.vector_store %arg7[%c1, %c1_20, %c0_21], %11 {strides = array<i32>} : memref<18x18x4xf32, #tpu.memory_space<vmem>>, vector<16x16x4xf32>,
    %cst_22 = arith.constant 0.000000e+00 : f32
    %19 = vector.broadcast %cst_22 : f32 to vector<256x4xf32>
    %c0_23 = arith.constant 0 : index
    %c0_24 = arith.constant 0 : index
    %c0_25 = arith.constant 0 : index
    %20 = vector.load %arg7[%c0_23, %c0_24, %c0_25] : memref<18x18x4xf32, #tpu.memory_space<vmem>>, vector<16x16x4xf32>
    %21 = vector.shape_cast %20 : vector<16x16x4xf32> to vector<256x4xf32>
    %c0_26 = arith.constant 0 : index
    %c0_27 = arith.constant 0 : index
    %c0_28 = arith.constant 0 : index
    %22 = vector.load %arg4[%c0_26, %c0_27, %c0_28] : memref<9x4x4xf32, #tpu.memory_space<vmem>>, vector<1x4x4xf32>
    %23 = vector.shape_cast %22 : vector<1x4x4xf32> to vector<4x4xf32>
    %cst_29 = arith.constant dense<0.000000e+00> : vector<256x4xf32>
    %24 = tpu.matmul %21, %23, %cst_29 {dimension_numbers = #tpu.dot_dimension_numbers<[1], [0], [0], [1], [0, 0, 1, 1], [], []>} : vector<256x4xf32>, vector<4x4xf32>, vector<256x4xf32> -> vector<256x4xf32>
    %25 = arith.addf %19, %24 : vector<256x4xf32>
    %c0_30 = arith.constant 0 : index
    %c1_31 = arith.constant 1 : index
    %c0_32 = arith.constant 0 : index
    %26 = vector.load %arg7[%c0_30, %c1_31, %c0_32] : memref<18x18x4xf32, #tpu.memory_space<vmem>>, vector<16x16x4xf32>
    %27 = vector.shape_cast %26 : vector<16x16x4xf32> to vector<256x4xf32>
    %c1_33 = arith.constant 1 : index
    %c0_34 = arith.constant 0 : index
    %c0_35 = arith.constant 0 : index
    %28 = vector.load %arg4[%c1_33, %c0_34, %c0_35] : memref<9x4x4xf32, #tpu.memory_space<vmem>>, vector<1x4x4xf32>
    %29 = vector.shape_cast %28 : vector<1x4x4xf32> to vector<4x4xf32>
    %cst_36 = arith.constant dense<0.000000e+00> : vector<256x4xf32>
    %30 = tpu.matmul %27, %29, %cst_36 {dimension_numbers = #tpu.dot_dimension_numbers<[1], [0], [0], [1], [0, 0, 1, 1], [], []>} : vector<256x4xf32>, vector<4x4xf32>, vector<256x4xf32> -> vector<256x4xf32>
    %31 = arith.addf %25, %30 : vector<256x4xf32>
    %c0_37 = arith.constant 0 : index
    %c2 = arith.constant 2 : index
    %c0_38 = arith.constant 0 : index
    %32 = vector.load %arg7[%c0_37, %c2, %c0_38] : memref<18x18x4xf32, #tpu.memory_space<vmem>>, vector<16x16x4xf32>
    %33 = vector.shape_cast %32 : vector<16x16x4xf32> to vector<256x4xf32>
    %c2_39 = arith.constant 2 : index
    %c0_40 = arith.constant 0 : index
    %c0_41 = arith.constant 0 : index
    %34 = vector.load %arg4[%c2_39, %c0_40, %c0_41] : memref<9x4x4xf32, #tpu.memory_space<vmem>>, vector<1x4x4xf32>
    %35 = vector.shape_cast %34 : vector<1x4x4xf32> to vector<4x4xf32>
    %cst_42 = arith.constant dense<0.000000e+00> : vector<256x4xf32>
    %36 = tpu.matmul %33, %35, %cst_42 {dimension_numbers = #tpu.dot_dimension_numbers<[1], [0], [0], [1], [0, 0, 1, 1], [], []>} : vector<256x4xf32>, vector<4x4xf32>, vector<256x4xf32> -> vector<256x4xf32>
    %37 = arith.addf %31, %36 : vector<256x4xf32>
    %c1_43 = arith.constant 1 : index
    %c0_44 = arith.constant 0 : index
    %c0_45 = arith.constant 0 : index
    %38 = vector.load %arg7[%c1_43, %c0_44, %c0_45] : memref<18x18x4xf32, #tpu.memory_space<vmem>>, vector<16x16x4xf32>
    %39 = vector.shape_cast %38 : vector<16x16x4xf32> to vector<256x4xf32>
    %c3 = arith.constant 3 : index
    %c0_46 = arith.constant 0 : index
    %c0_47 = arith.constant 0 : index
    %40 = vector.load %arg4[%c3, %c0_46, %c0_47] : memref<9x4x4xf32, #tpu.memory_space<vmem>>, vector<1x4x4xf32>
    %41 = vector.shape_cast %40 : vector<1x4x4xf32> to vector<4x4xf32>
    %cst_48 = arith.constant dense<0.000000e+00> : vector<256x4xf32>
    %42 = tpu.matmul %39, %41, %cst_48 {dimension_numbers = #tpu.dot_dimension_numbers<[1], [0], [0], [1], [0, 0, 1, 1], [], []>} : vector<256x4xf32>, vector<4x4xf32>, vector<256x4xf32> -> vector<256x4xf32>
    %43 = arith.addf %37, %42 : vector<256x4xf32>
    %c1_49 = arith.constant 1 : index
    %c1_50 = arith.constant 1 : index
    %c0_51 = arith.constant 0 : index
    %44 = vector.load %arg7[%c1_49, %c1_50, %c0_51] : memref<18x18x4xf32, #tpu.memory_space<vmem>>, vector<16x16x4xf32>
    %45 = vector.shape_cast %44 : vector<16x16x4xf32> to vector<256x4xf32>
    %c4 = arith.constant 4 : index
    %c0_52 = arith.constant 0 : index
    %c0_53 = arith.constant 0 : index
    %46 = vector.load %arg4[%c4, %c0_52, %c0_53] : memref<9x4x4xf32, #tpu.memory_space<vmem>>, vector<1x4x4xf32>
    %47 = vector.shape_cast %46 : vector<1x4x4xf32> to vector<4x4xf32>
    %cst_54 = arith.constant dense<0.000000e+00> : vector<256x4xf32>
    %48 = tpu.matmul %45, %47, %cst_54 {dimension_numbers = #tpu.dot_dimension_numbers<[1], [0], [0], [1], [0, 0, 1, 1], [], []>} : vector<256x4xf32>, vector<4x4xf32>, vector<256x4xf32> -> vector<256x4xf32>
    %49 = arith.addf %43, %48 : vector<256x4xf32>
    %c1_55 = arith.constant 1 : index
    %c2_56 = arith.constant 2 : index
    %c0_57 = arith.constant 0 : index
    %50 = vector.load %arg7[%c1_55, %c2_56, %c0_57] : memref<18x18x4xf32, #tpu.memory_space<vmem>>, vector<16x16x4xf32>
    %51 = vector.shape_cast %50 : vector<16x16x4xf32> to vector<256x4xf32>
    %c5 = arith.constant 5 : index
    %c0_58 = arith.constant 0 : index
    %c0_59 = arith.constant 0 : index
    %52 = vector.load %arg4[%c5, %c0_58, %c0_59] : memref<9x4x4xf32, #tpu.memory_space<vmem>>, vector<1x4x4xf32>
    %53 = vector.shape_cast %52 : vector<1x4x4xf32> to vector<4x4xf32>
    %cst_60 = arith.constant dense<0.000000e+00> : vector<256x4xf32>
    %54 = tpu.matmul %51, %53, %cst_60 {dimension_numbers = #tpu.dot_dimension_numbers<[1], [0], [0], [1], [0, 0, 1, 1], [], []>} : vector<256x4xf32>, vector<4x4xf32>, vector<256x4xf32> -> vector<256x4xf32>
    %55 = arith.addf %49, %54 : vector<256x4xf32>
    %c2_61 = arith.constant 2 : index
    %c0_62 = arith.constant 0 : index
    %c0_63 = arith.constant 0 : index
    %56 = vector.load %arg7[%c2_61, %c0_62, %c0_63] : memref<18x18x4xf32, #tpu.memory_space<vmem>>, vector<16x16x4xf32>
    %57 = vector.shape_cast %56 : vector<16x16x4xf32> to vector<256x4xf32>
    %c6 = arith.constant 6 : index
    %c0_64 = arith.constant 0 : index
    %c0_65 = arith.constant 0 : index
    %58 = vector.load %arg4[%c6, %c0_64, %c0_65] : memref<9x4x4xf32, #tpu.memory_space<vmem>>, vector<1x4x4xf32>
    %59 = vector.shape_cast %58 : vector<1x4x4xf32> to vector<4x4xf32>
    %cst_66 = arith.constant dense<0.000000e+00> : vector<256x4xf32>
    %60 = tpu.matmul %57, %59, %cst_66 {dimension_numbers = #tpu.dot_dimension_numbers<[1], [0], [0], [1], [0, 0, 1, 1], [], []>} : vector<256x4xf32>, vector<4x4xf32>, vector<256x4xf32> -> vector<256x4xf32>
    %61 = arith.addf %55, %60 : vector<256x4xf32>
    %c2_67 = arith.constant 2 : index
    %c1_68 = arith.constant 1 : index
    %c0_69 = arith.constant 0 : index
    %62 = vector.load %arg7[%c2_67, %c1_68, %c0_69] : memref<18x18x4xf32, #tpu.memory_space<vmem>>, vector<16x16x4xf32>
    %63 = vector.shape_cast %62 : vector<16x16x4xf32> to vector<256x4xf32>
    %c7 = arith.constant 7 : index
    %c0_70 = arith.constant 0 : index
    %c0_71 = arith.constant 0 : index
    %64 = vector.load %arg4[%c7, %c0_70, %c0_71] : memref<9x4x4xf32, #tpu.memory_space<vmem>>, vector<1x4x4xf32>
    %65 = vector.shape_cast %64 : vector<1x4x4xf32> to vector<4x4xf32>
    %cst_72 = arith.constant dense<0.000000e+00> : vector<256x4xf32>
    %66 = tpu.matmul %63, %65, %cst_72 {dimension_numbers = #tpu.dot_dimension_numbers<[1], [0], [0], [1], [0, 0, 1, 1], [], []>} : vector<256x4xf32>, vector<4x4xf32>, vector<256x4xf32> -> vector<256x4xf32>
    %67 = arith.addf %61, %66 : vector<256x4xf32>
    %c2_73 = arith.constant 2 : index
    %c2_74 = arith.constant 2 : index
    %c0_75 = arith.constant 0 : index
    %68 = vector.load %arg7[%c2_73, %c2_74, %c0_75] : memref<18x18x4xf32, #tpu.memory_space<vmem>>, vector<16x16x4xf32>
    %69 = vector.shape_cast %68 : vector<16x16x4xf32> to vector<256x4xf32>
    %c8 = arith.constant 8 : index
    %c0_76 = arith.constant 0 : index
    %c0_77 = arith.constant 0 : index
    %70 = vector.load %arg4[%c8, %c0_76, %c0_77] : memref<9x4x4xf32, #tpu.memory_space<vmem>>, vector<1x4x4xf32>
    %71 = vector.shape_cast %70 : vector<1x4x4xf32> to vector<4x4xf32>
    %cst_78 = arith.constant dense<0.000000e+00> : vector<256x4xf32>
    %72 = tpu.matmul %69, %71, %cst_78 {dimension_numbers = #tpu.dot_dimension_numbers<[1], [0], [0], [1], [0, 0, 1, 1], [], []>} : vector<256x4xf32>, vector<4x4xf32>, vector<256x4xf32> -> vector<256x4xf32>
    %73 = arith.addf %67, %72 : vector<256x4xf32>
    %c0_79 = arith.constant 0 : index
    %c0_80 = arith.constant 0 : index
    %c0_81 = arith.constant 0 : index
    %74 = vector.load %arg5[%c0_79, %c0_80, %c0_81] : memref<1x256x4xf32, #tpu.memory_space<vmem>>, vector<1x256x4xf32>
    %75 = vector.shape_cast %74 : vector<1x256x4xf32> to vector<256x4xf32>
    %76 = vector.shape_cast %73 : vector<256x4xf32> to vector<1x256x4xf32>
    tpu.vector_store %arg5[%c0_79, %c0_80, %c0_81], %76 {strides = array<i32>} : memref<1x256x4xf32, #tpu.memory_space<vmem>>, vector<1x256x4xf32>,
    %cst_82 = arith.constant dense<0.000000e+00> : vector<4xf32>
    %77 = vector.multi_reduction <add>, %73, %cst_82 [0] : vector<256x4xf32> to vector<4xf32>
    %78 = vector.shape_cast %77 : vector<4xf32> to vector<1x4xf32>
    %79 = arith.mulf %73, %73 : vector<256x4xf32>
    %cst_83 = arith.constant dense<0.000000e+00> : vector<4xf32>
    %80 = vector.multi_reduction <add>, %79, %cst_83 [0] : vector<256x4xf32> to vector<4xf32>
    %81 = vector.shape_cast %80 : vector<4xf32> to vector<1x4xf32>
    %82 = tpu.concatenate %78, %81 in 0 : vector<1x4xf32>, vector<1x4xf32> -> vector<2x4xf32>
    %c0_84 = arith.constant 0 : index
    %c0_85 = arith.constant 0 : index
    %c0_86 = arith.constant 0 : index
    %83 = vector.load %arg6[%c0_84, %c0_85, %c0_86] : memref<1x2x4xf32, #tpu.memory_space<vmem>>, vector<1x2x4xf32>
    %84 = vector.shape_cast %83 : vector<1x2x4xf32> to vector<2x4xf32>
    %85 = vector.shape_cast %82 : vector<2x4xf32> to vector<1x2x4xf32>
    tpu.vector_store %arg6[%c0_84, %c0_85, %c0_86], %85 {strides = array<i32>} : memref<1x2x4xf32, #tpu.memory_space<vmem>>, vector<1x2x4xf32>,
    return
  }
  func.func @transform_0(%arg0: i32) -> (i32, i32, i32, i32) {
    %c0_i32 = arith.constant 0 : i32
    %c0_i32_0 = arith.constant 0 : i32
    %c0_i32_1 = arith.constant 0 : i32
    %c0_i32_2 = arith.constant 0 : i32
    return %arg0, %c0_i32, %c0_i32_0, %c0_i32_1 : i32, i32, i32, i32
  }
  func.func @transform_1(%arg0: i32) -> (i32, i32) {
    %c0_i32 = arith.constant 0 : i32
    %c0_i32_0 = arith.constant 0 : i32
    %c0_i32_1 = arith.constant 0 : i32
    return %c0_i32, %c0_i32_0 : i32, i32
  }
  func.func @transform_2(%arg0: i32) -> (i32, i32) {
    %c0_i32 = arith.constant 0 : i32
    %c0_i32_0 = arith.constant 0 : i32
    %c0_i32_1 = arith.constant 0 : i32
    return %c0_i32, %c0_i32_0 : i32, i32
  }
  func.func @transform_3(%arg0: i32) -> (i32, i32, i32) {
    %c0_i32 = arith.constant 0 : i32
    %c0_i32_0 = arith.constant 0 : i32
    %c0_i32_1 = arith.constant 0 : i32
    %c0_i32_2 = arith.constant 0 : i32
    return %c0_i32, %c0_i32_0, %c0_i32_1 : i32, i32, i32
  }
  func.func @transform_4(%arg0: i32) -> (i32, i32, i32) {
    %c0_i32 = arith.constant 0 : i32
    %c0_i32_0 = arith.constant 0 : i32
    %c0_i32_1 = arith.constant 0 : i32
    return %arg0, %c0_i32, %c0_i32_0 : i32, i32, i32
  }
  func.func @transform_5(%arg0: i32) -> (i32, i32, i32) {
    %c0_i32 = arith.constant 0 : i32
    %c0_i32_0 = arith.constant 0 : i32
    %c0_i32_1 = arith.constant 0 : i32
    return %arg0, %c0_i32, %c0_i32_0 : i32, i32, i32
  }
}

module attributes {stable_mosaic.version = 11 : i64} {
  func.func @_bn_res_relu_kernel(%arg0: i32, %arg1: memref<1x16x64xf32, #tpu.memory_space<vmem>>, %arg2: memref<1x64xf32, #tpu.memory_space<vmem>>, %arg3: memref<1x64xf32, #tpu.memory_space<vmem>>, %arg4: memref<1x16x64xf32, #tpu.memory_space<vmem>>, %arg5: memref<1x16x64xf32, #tpu.memory_space<vmem>>) attributes {dimension_semantics = [#tpu.dimension_semantics<parallel>], iteration_bounds = array<i64: 2>, scalar_prefetch = 0 : i64, scratch_operands = 0 : i64, tpu.core_type = #tpu.core_type<tc>, window_params = [{transform_indices = @transform_0, window_bounds = array<i64: 1, 16, 64>}, {pipeline_mode = #tpu.pipeline_mode<synchronous>, transform_indices = @transform_1, window_bounds = array<i64: 1, 64>}, {pipeline_mode = #tpu.pipeline_mode<synchronous>, transform_indices = @transform_2, window_bounds = array<i64: 1, 64>}, {transform_indices = @transform_3, window_bounds = array<i64: 1, 16, 64>}, {transform_indices = @transform_4, window_bounds = array<i64: 1, 16, 64>}]} {
    %c0 = arith.constant 0 : index
    %c0_0 = arith.constant 0 : index
    %c0_1 = arith.constant 0 : index
    %0 = vector.load %arg1[%c0, %c0_0, %c0_1] : memref<1x16x64xf32, #tpu.memory_space<vmem>>, vector<1x16x64xf32>
    %1 = vector.shape_cast %0 : vector<1x16x64xf32> to vector<16x64xf32>
    %c0_2 = arith.constant 0 : index
    %c0_3 = arith.constant 0 : index
    %2 = vector.load %arg2[%c0_2, %c0_3] : memref<1x64xf32, #tpu.memory_space<vmem>>, vector<1x64xf32>
    %3 = vector.broadcast %2 : vector<1x64xf32> to vector<16x64xf32>
    %4 = arith.mulf %1, %3 : vector<16x64xf32>
    %c0_4 = arith.constant 0 : index
    %c0_5 = arith.constant 0 : index
    %5 = vector.load %arg3[%c0_4, %c0_5] : memref<1x64xf32, #tpu.memory_space<vmem>>, vector<1x64xf32>
    %6 = vector.broadcast %5 : vector<1x64xf32> to vector<16x64xf32>
    %7 = arith.addf %4, %6 : vector<16x64xf32>
    %c0_6 = arith.constant 0 : index
    %c0_7 = arith.constant 0 : index
    %c0_8 = arith.constant 0 : index
    %8 = vector.load %arg4[%c0_6, %c0_7, %c0_8] : memref<1x16x64xf32, #tpu.memory_space<vmem>>, vector<1x16x64xf32>
    %9 = vector.shape_cast %8 : vector<1x16x64xf32> to vector<16x64xf32>
    %10 = arith.addf %7, %9 : vector<16x64xf32>
    %cst = arith.constant 0.000000e+00 : f32
    %11 = vector.broadcast %cst : f32 to vector<16x64xf32>
    %12 = arith.maximumf %10, %11 : vector<16x64xf32>
    %c0_9 = arith.constant 0 : index
    %c0_10 = arith.constant 0 : index
    %c0_11 = arith.constant 0 : index
    %13 = vector.load %arg5[%c0_9, %c0_10, %c0_11] : memref<1x16x64xf32, #tpu.memory_space<vmem>>, vector<1x16x64xf32>
    %14 = vector.shape_cast %13 : vector<1x16x64xf32> to vector<16x64xf32>
    %15 = vector.shape_cast %12 : vector<16x64xf32> to vector<1x16x64xf32>
    tpu.vector_store %arg5[%c0_9, %c0_10, %c0_11], %15 {strides = array<i32>} : memref<1x16x64xf32, #tpu.memory_space<vmem>>, vector<1x16x64xf32>,
    return
  }
  func.func @transform_0(%arg0: i32) -> (i32, i32, i32) {
    %c0_i32 = arith.constant 0 : i32
    %c0_i32_0 = arith.constant 0 : i32
    %c0_i32_1 = arith.constant 0 : i32
    return %arg0, %c0_i32, %c0_i32_0 : i32, i32, i32
  }
  func.func @transform_1(%arg0: i32) -> (i32, i32) {
    %c0_i32 = arith.constant 0 : i32
    %c0_i32_0 = arith.constant 0 : i32
    %c0_i32_1 = arith.constant 0 : i32
    return %c0_i32, %c0_i32_0 : i32, i32
  }
  func.func @transform_2(%arg0: i32) -> (i32, i32) {
    %c0_i32 = arith.constant 0 : i32
    %c0_i32_0 = arith.constant 0 : i32
    %c0_i32_1 = arith.constant 0 : i32
    return %c0_i32, %c0_i32_0 : i32, i32
  }
  func.func @transform_3(%arg0: i32) -> (i32, i32, i32) {
    %c0_i32 = arith.constant 0 : i32
    %c0_i32_0 = arith.constant 0 : i32
    %c0_i32_1 = arith.constant 0 : i32
    return %arg0, %c0_i32, %c0_i32_0 : i32, i32, i32
  }
  func.func @transform_4(%arg0: i32) -> (i32, i32, i32) {
    %c0_i32 = arith.constant 0 : i32
    %c0_i32_0 = arith.constant 0 : i32
    %c0_i32_1 = arith.constant 0 : i32
    return %arg0, %c0_i32, %c0_i32_0 : i32, i32, i32
  }
}

</mosaic_0001>

<bundles_post_ra>
// kernel: tile.13
= control target key start
LH: loop header
LB: loop body
LE: loop exit
PB: predicated region body
PF: predicated region fallthrough
CT: control target
= control target key end

     0   :  { %s28_s0 = inlined_call_operand.vmem [shape: f32[4], index: 0, kind: input, shape index: {}]   ;;  %s29_s1 = inlined_call_operand.vmem [shape: f32[16,4], index: 1, kind: output, shape index: {}]  }
   0x1   :  { %v4_v0 = vld [vmem:[%s28_s0] ss:$0 sm:$0xff] }
   0x2   :  { %5 = vst [vmem:[%s29_s1] sm:$0xff] %v4_v0 }
   0x3   :  { %8 = vst [vmem:[%s29_s1 + $0x8] sm:$0xff] %v4_v0 }

// kernel: tile.14
= control target key start
LH: loop header
LB: loop body
LE: loop exit
PB: predicated region body
PF: predicated region fallthrough
CT: control target
= control target key end

     0   :  { %s131_s10 = smov 60   ;;  %s132_s11 = smov 52   ;;  %vm3_vm0 = vcmask 31744   ;;  %vm9_vm1 = vcmask 523744   ;;  %vm15_vm2 = vcmask 490944   ;;  %vm21_vm3 = vcmask 458144   ;;  %s207_s0 = inlined_call_operand.vmem [shape: f32[16,4], index: 0, kind: input, shape index: {}]   ;;  %s208_s1 = inlined_call_operand.vmem [shape: f32[1,64], index: 1, kind: output, shape index: {}]  }
   0x1   :  { %v101_v0 = vld [vmem:[%s207_s0 + $0xf] sm:$0x1]   ;;  %v103_v1 = vld [vmem:[%s207_s0 + $0xd] sm:$0x1]   ;;  %v105_v2 = vld [vmem:[%s207_s0 + $0xb] sm:$0x1]  }
   0x2   :  { %7 = vrot.lane.b32.xlu0 %v101_v0, %s131_s10  ;;  %19 = vrot.lane.b32.xlu1 %v103_v1, %s132_s11  ;;  %s133_s14 = smov 44   ;;  %v102_v3 = vld [vmem:[%s207_s0 + $0xe] sm:$0x1]   ;;  %v104_v4 = vld [vmem:[%s207_s0 + $0xc] sm:$0x1]   ;;  %s134_s19 = smov 56  }
   0x3   :  { %31 = vrot.lane.b32.xlu2 %v105_v2, %s133_s14  ;;  %s135_s20 = smov 48   ;;  %v106_v5 = vld [vmem:[%s207_s0 + $0xa] sm:$0x1]   ;;  %s136_s23 = smov 40   ;;  %v107_v6 = vld [vmem:[%s207_s0 + $0x9] sm:$0x1]  }
   0x4   :  { %v108_v7 = vld [vmem:[%s207_s0 + $0x8] sm:$0x1]   ;;  %s137_s28 = smov 36   ;;  %s138_s29 = smov 32   ;;  %v109_v8 = vld [vmem:[%s207_s0 + $0x7] sm:$0x1]  }
   0x5   :  { %s139_s3 = smov 28   ;;  %v110_v9 = vld [vmem:[%s207_s0 + $0x6] sm:$0x1]   ;;  %v111_v10 = vld [vmem:[%s207_s0 + $0x5] sm:$0x1]   ;;  %s140_s8 = smov 24  }
   0x6   :  { %s141_s9 = smov 20   ;;  %v112_v11 = vld [vmem:[%s207_s0 + $0x4] sm:$0x1]   ;;  %s142_s12 = smov 16   ;;  %v113_v12 = vld [vmem:[%s207_s0 + $0x3] sm:$0x1]  }
   0x7   :  { %v114_v13 = vld [vmem:[%s207_s0 + $0x2] sm:$0x1]   ;;  %s143_s17 = smov 12   ;;  %s144_s18 = smov 8   ;;  %v115_v14 = vld [vmem:[%s207_s0 + $0x1] sm:$0x1]  }
   0x8   :  { %s145_s21 = smov 4   ;;  %v2_v15 = vld [vmem:[%s207_s0] sm:$0x1]   ;;  %vm27_vm4 = vcmask 425344   ;;  %vm33_vm5 = vcmask 392544   ;;  %vm39_vm6 = vcmask 359744  }
   0x9   :  { %4 = vst.msk [vmem:[#allocation0] sm:$0x1] %vm3_vm0, %v2_v15   ;;  %vm45_vm7 = vcmask 326944   ;;  %vm51_vm8 = vcmask 294144   ;;  %vm57_vm9 = vcmask 261344   ;;  %vm63_vm10 = vcmask 228544  }
   0xa   :  { %13 = vrot.lane.b32.xlu0 %v102_v3, %s134_s19  ;;  %25 = vrot.lane.b32.xlu1 %v104_v4, %s135_s20  ;;  %vm69_vm11 = vcmask 195744   ;;  %vm75_vm12 = vcmask 162944   ;;  %vm81_vm13 = vcmask 130144   ;;  %vm87_vm14 = vcmask 97344  }
   0xb   :  { %37 = vrot.lane.b32.xlu2 %v106_v5, %s136_s23  ;;  %vm93_vm15 = vcmask 64544  }
  0x12   :  { %43 = vrot.lane.b32.xlu0 %v107_v6, %s137_s28  ;;  %49 = vrot.lane.b32.xlu1 %v108_v7, %s138_s29 }
  0x13   :  { %55 = vrot.lane.b32.xlu2 %v109_v8, %s139_s3 }
  0x1a   :  { %61 = vrot.lane.b32.xlu0 %v110_v9, %s140_s8  ;;  %67 = vrot.lane.b32.xlu1 %v111_v10, %s141_s9 }
  0x1b   :  { %73 = vrot.lane.b32.xlu2 %v112_v11, %s142_s12 }
  0x22   :  { %79 = vrot.lane.b32.xlu0 %v113_v12, %s143_s17  ;;  %85 = vrot.lane.b32.xlu1 %v114_v13, %s144_s18 }
  0x23   :  { %91 = vrot.lane.b32.xlu2 %v115_v14, %s145_s21 }
  0x5d   :  { %v32_v16 = vpop.permute.xlu2 %31  }
  0x65   :  { %v38_v17 = vpop.permute.xlu2 %37  }
  0x6d   :  { %v56_v18 = vpop.permute.xlu2 %55  }
  0x74   :  { %v8_v19 = vpop.permute.xlu0 %7   ;;  %v20_v20 = vpop.permute.xlu1 %19  }
  0x75   :  { %10 = vst.msk [vmem:[#allocation0] sm:$0x1] %vm9_vm1, %v8_v19   ;;  %v74_v21 = vpop.permute.xlu2 %73  }
  0x7c   :  { %v14_v22 = vpop.permute.xlu0 %13   ;;  %v26_v23 = vpop.permute.xlu1 %25  }
  0x7d   :  { %16 = vst.msk [vmem:[#allocation0] sm:$0x1] %vm15_vm2, %v14_v22   ;;  %v92_v24 = vpop.permute.xlu2 %91  }
  0x7e   :  { %22 = vst.msk [vmem:[#allocation0] sm:$0x1] %vm21_vm3, %v20_v20  }
  0x7f   :  { %28 = vst.msk [vmem:[#allocation0] sm:$0x1] %vm27_vm4, %v26_v23  }
  0x80   :  { %34 = vst.msk [vmem:[#allocation0] sm:$0x1] %vm33_vm5, %v32_v16  }
  0x81   :  { %40 = vst.msk [vmem:[#allocation0] sm:$0x1] %vm39_vm6, %v38_v17  }
  0x84   :  { %v44_v25 = vpop.permute.xlu0 %43   ;;  %v50_v26 = vpop.permute.xlu1 %49  }
  0x85   :  { %46 = vst.msk [vmem:[#allocation0] sm:$0x1] %vm45_vm7, %v44_v25  }
  0x86   :  { %52 = vst.msk [vmem:[#allocation0] sm:$0x1] %vm51_vm8, %v50_v26  }
  0x87   :  { %58 = vst.msk [vmem:[#allocation0] sm:$0x1] %vm57_vm9, %v56_v18  }
  0x8c   :  { %v62_v27 = vpop.permute.xlu0 %61   ;;  %v68_v28 = vpop.permute.xlu1 %67  }
  0x8d   :  { %64 = vst.msk [vmem:[#allocation0] sm:$0x1] %vm63_vm10, %v62_v27  }
  0x8e   :  { %70 = vst.msk [vmem:[#allocation0] sm:$0x1] %vm69_vm11, %v68_v28  }
  0x8f   :  { %76 = vst.msk [vmem:[#allocation0] sm:$0x1] %vm75_vm12, %v74_v21  }
  0x94   :  { %v80_v29 = vpop.permute.xlu0 %79   ;;  %v86_v30 = vpop.permute.xlu1 %85  }
  0x95   :  { %82 = vst.msk [vmem:[#allocation0] sm:$0x1] %vm81_vm13, %v80_v29  }
  0x96   :  { %88 = vst.msk [vmem:[#allocation0] sm:$0x1] %vm87_vm14, %v86_v30  }
  0x97   :  { %94 = vst.msk [vmem:[#allocation0] sm:$0x1] %vm93_vm15, %v92_v24  }
  0x9e   :  { %v97_v31 = vld [vmem:[#allocation0] sm:$0x1] }
  0x9f   :  { %100 = vst [vmem:[%s208_s1] sm:$0x1] %v97_v31 }

// kernel: basic_block_forward.5
= control target key start
LH: loop header
LB: loop body
LE: loop exit
PB: predicated region body
PF: predicated region fallthrough
CT: control target
= control target key end

     0   :  { %s367_s15 = smov 0   ;;  %s393_s0 = inlined_call_operand.vmem [shape: f32[2,16,64], index: 0, kind: input, shape index: {}]   ;;  %s394_s1 = inlined_call_operand.vmem [shape: f32[1,64], index: 1, kind: input, shape index: {}]   ;;  %s395_s2 = inlined_call_operand.vmem [shape: f32[1,64], index: 2, kind: input, shape index: {}]   ;;  %s396_s3 = inlined_call_operand.vmem [shape: f32[2,16,64], index: 3, kind: input, shape index: {}]   ;;  %s397_s4 = inlined_call_operand.vmem [shape: f32[2,16,64], index: 4, kind: output, shape index: {}]  }
   0x1 LB: > { %s308_s16 = sadd.s32 4294967295, %s340_s15   ;;  %p312_p0 = scmp.ge.s32.totalorder %s340_s15, 1  ;;  %s340_s15 = sphi %s367_s15, %s14_s15  }
   0x2   : > { %p172_p1 = scmp.lt.s32.totalorder %s340_s15, 3 }
   0x4   : > { %p173_p2 = pnand %p312_p0, %p172_p1 }
   0x5   : > { %p203_p3 = scmp.lt.s32.totalorder (!%p173_p2), %s308_s16, 1 }
   0x6   : > { %176 = sbr.rel (%p173_p2) target bundleno = 25 (0x19), region = 36 }
   0xb   : > { %s399_s16 = smov (!%p203_p3, %s308_s16), 1  ;;  %v332_v0 = vld [vmem:[%s394_s1] ss:$0 sm:$0xff]  ;;  %vm238_vm0 = vcmask 523264  }
   0xc   : > { %s321_s19 = sshll.u32 %s399_s16, 4  ;;  %v333_v1 = vld [vmem:[%s395_s2] ss:$0 sm:$0xff] }
   0xd   : > { %s207_s22 = scalar_lea.vmem %s393_s0, %s321_s19  ;;  %s212_s25 = scalar_lea.vmem %s396_s3, %s321_s19 }
   0xe   : > { %v218_v2 = vld [vmem:[%s207_s22] sm:$0xff]  ;;  %v219_v3 = vld [vmem:[%s207_s22 + $0x8] sm:$0xff]  ;;  %s217_s30 = scalar_lea.vmem %s397_s4, %s321_s19 }
   0xf   : > { %v224_v4 = vmul.f32 %v332_v0, %v218_v2  ;;  %v225_v5 = vmul.f32 %v332_v0, %v219_v3  ;;  %v232_v6 = vld [vmem:[%s212_s25] sm:$0xff]  ;;  %v233_v7 = vld [vmem:[%s212_s25 + $0x8] sm:$0xff] }
  0x11   : > { %v230_v8 = vadd.f32 %v333_v1, %v224_v4  ;;  %v231_v9 = vadd.f32 %v333_v1, %v225_v5 }
  0x13   : > { %v234_v10 = vadd.f32 %v232_v6, %v230_v8  ;;  %v235_v11 = vadd.f32 %v233_v7, %v231_v9 }
  0x15   : > { %v236_v12 = vmax.f32 %v234_v10, 0.0  ;;  %v237_v13 = vmax.f32 %v235_v11, 0.0 }
  0x17   : > { %239 = vst.msk [vmem:[%s217_s30] sm:$0xff] %vm238_vm0, %v236_v12 }
  0x18   : > { %240 = vst.msk [vmem:[%s217_s30 + $0x8] sm:$0xff] %vm238_vm0, %v237_v13 }
  0x19 PF: > { %s14_s15 = sadd.s32 1, %s340_s15  }
  0x1a   : > { %p11_p4 = scmp.ge.s32.totalorder %s14_s15, 4  }
  0x1c   :  { %13 = sbr.rel (!%p11_p4) target bundleno = 1 (0x1), region = 69 }

// kernel: basic_block_forward.4
= control target key start
LH: loop header
LB: loop body
LE: loop exit
PB: predicated region body
PF: predicated region fallthrough
CT: control target
= control target key end

     0   :  { %s3555_s18 = smov 0   ;;  %s4892_s0 = inlined_call_operand.vmem [shape: f32[2,16,16,4], index: 0, kind: input, shape index: {}]   ;;  %s4893_s1 = inlined_call_operand.vmem [shape: f32[1,4], index: 1, kind: input, shape index: {}]   ;;  %s4894_s2 = inlined_call_operand.vmem [shape: f32[1,4], index: 2, kind: input, shape index: {}]   ;;  %s4895_s3 = inlined_call_operand.vmem [shape: f32[9,4,4], index: 3, kind: input, shape index: {}]   ;;  %s4896_s4 = inlined_call_operand.vmem [shape: f32[2,256,4], index: 4, kind: output, shape index: {0}]   ;;  %s4897_s5 = inlined_call_operand.vmem [shape: f32[2,2,4], index: 5, kind: output, shape index: {1}]  }
   0x1 LB: > { %s3181_s19 = sadd.s32 4294967295, %s3522_s18   ;;  %p3185_p0 = scmp.ge.s32.totalorder %s3522_s18, 1  ;;  %s3522_s18 = sphi %s3555_s18, %s16_s18  }
   0x2   : > { %p190_p1 = scmp.lt.s32.totalorder %s3522_s18, 3 }
   0x4   : > { %p191_p2 = pnand %p3185_p0, %p190_p1 }
   0x6   : > { %194 = sbr.rel (%p191_p2) target bundleno = 757 (0x2f5), region = 36 }
   0xb   : > { %v3191_v0 = vld [vmem:[%s4895_s3 + $0x4] sm:$0xf]  ;;  %vm614_vm0 = vcmask 1043456   ;;  %p222_p3 = scmp.lt.s32.totalorder %s3181_s19, 1  ;;  %v3571_v1 = vld [vmem:[%s4893_s1] ss:$0 sm:$0xff] }
   0xc   : > { %3500 = vmatpush.msk.msra.mxu1 %vm614_vm0, %v3191_v0  ;;  %3501 = vmatpush.msk.msra.mxu2 %vm614_vm0, %v3191_v0  ;;  %v3258_v2 = vld [vmem:[%s4895_s3 + $0x8] sm:$0xf]  ;;  %v3292_v3 = vld [vmem:[%s4895_s3 + $0xc] sm:$0xf]  ;;  %vm372_vm1 = vcmask 31744   ;;  %v3524_v6 = vmov 0.0  }
   0xd   : > { %s5027_s19 = smov (!%p222_p3, %s3181_s19), 1  ;;  %3502 = vmatpush.msk.msra.mxu3 %vm614_vm0, %v3191_v0  ;;  %3192 = vmatpush.msk.msra.mxu0 %vm614_vm0, %v3191_v0  ;;  %v483_v4 = vld [vmem:[%s4895_s3] sm:$0xf]  ;;  %v3326_v5 = vld [vmem:[%s4895_s3 + $0x10] sm:$0xf]  ;;  %373 = vst.msk [vmem:[#allocation2] sm:$0xff] %vm372_vm1, %v3524_v6 }
   0xe   : > { %3259 = vmatpush.msk.msrb.mxu2 %vm614_vm0, %v3258_v2  ;;  %s3498_s7 = sshll.u32 %s5027_s19, 8  ;;  %3225 = vmatpush.msk.msrb.mxu1 %vm614_vm0, %v483_v4  ;;  %v3606_v7 = vld [vmem:[%s4894_s2] ss:$0 sm:$0xff]  ;;  %374 = vst.msk [vmem:[#allocation2 + $0x8] sm:$0xff] %vm372_vm1, %v3524_v6  ;;  %vm375_vm2 = vcmask 25600   ;;  %vm381_vm3 = vcmask 24576  }
   0xf   : > { %3293 = vmatpush.msk.msrb.mxu3 %vm614_vm0, %v3292_v3  ;;  %3327 = vmatpush.msk.msrb.mxu0 %vm614_vm0, %v3326_v5  ;;  %s3601_s10 = scalar_lea.vmem %s4892_s0, %s3498_s7  ;;  %378 = vst.msk [vmem:[#allocation2 + $0x198] sm:$0xff] %vm372_vm1, %v3524_v6  ;;  %s4622_s29 = scalar_lea.vmem %s4896_s4, %s3498_s7  ;;  %vm3092_vm4 = vcmask 1040384  }
  0x10   : > { %v244_v8 = vld [vmem:[%s3601_s10 + $0x30] sm:$0xff]  ;;  %v245_v14 = vld [vmem:[%s3601_s10 + $0x38] sm:$0xff]  ;;  %379 = vst.msk [vmem:[#allocation2 + $0x1a0] sm:$0xff] %vm372_vm1, %v3524_v6  ;;  %v246_v20 = vld [vmem:[%s3601_s10 + $0x40] sm:$0xff]  ;;  %s3190_s30 = sshll.u32 %s5027_s19, 1 }
  0x11   : > { %v252_v9 = vld [vmem:[%s3601_s10 + $0x70] sm:$0xff]  ;;  %v279_v11 = vmul.f32 %v3571_v1, %v244_v8  ;;  %v253_v15 = vld [vmem:[%s3601_s10 + $0x78] sm:$0xff]  ;;  %v280_v17 = vmul.f32 %v3571_v1, %v245_v14  ;;  %v254_v21 = vld [vmem:[%s3601_s10 + $0x80] sm:$0xff]  ;;  %376 = vst.msk [vmem:[#allocation2 + $0x10] sm:$0x3] %vm375_vm2, %v3524_v6  ;;  %v281_v25 = vmul.f32 %v3571_v1, %v246_v20  ;;  %s235_s8 = scalar_lea.vmem %s4897_s5, %s3190_s30 }
  0x12   : > { %v260_v10 = vld [vmem:[%s3601_s10 + $0xb0] sm:$0xff]  ;;  %v287_v12 = vmul.f32 %v3571_v1, %v252_v9  ;;  %v261_v16 = vld [vmem:[%s3601_s10 + $0xb8] sm:$0xff]  ;;  %v288_v18 = vmul.f32 %v3571_v1, %v253_v15  ;;  %380 = vst.msk [vmem:[#allocation2 + $0x1a8] sm:$0x3] %vm375_vm2, %v3524_v6  ;;  %v289_v29 = vmul.f32 %v3571_v1, %v254_v21  ;;  %v262_v30 = vld [vmem:[%s3601_s10 + $0xc0] sm:$0xff] }
  0x13   : > { %v295_v13 = vmul.f32 %v3571_v1, %v260_v10  ;;  %v296_v19 = vmul.f32 %v3571_v1, %v261_v16  ;;  %v314_v22 = vadd.f32 %v3606_v7, %v279_v11  ;;  %v315_v26 = vadd.f32 %v3606_v7, %v280_v17  ;;  %v247_v31 = vld [vmem:[%s3601_s10 + $0x48] sm:$0xff]  ;;  %v238_v37 = vld [vmem:[%s3601_s10] sm:$0xff]  ;;  %v248_v39 = vld [vmem:[%s3601_s10 + $0x50] sm:$0xff]  ;;  %382 = vst.msk [vmem:[#allocation2] sm:$0x1] %vm381_vm3, %v3524_v6 }
  0x14   : > { %v322_v23 = vadd.f32 %v3606_v7, %v287_v12  ;;  %v323_v27 = vadd.f32 %v3606_v7, %v288_v18  ;;  %v255_v32 = vld [vmem:[%s3601_s10 + $0x88] sm:$0xff]  ;;  %v316_v36 = vadd.f32 %v3606_v7, %v281_v25  ;;  %v324_v43 = vadd.f32 %v3606_v7, %v289_v29  ;;  %v256_v44 = vld [vmem:[%s3601_s10 + $0x90] sm:$0xff]  ;;  %v249_v62 = vld [vmem:[%s3601_s10 + $0x58] sm:$0xff]  ;;  %383 = vst.msk [vmem:[#allocation2 + $0x18] sm:$0x1] %vm381_vm3, %v3524_v6 }
  0x15   : > { %v330_v24 = vadd.f32 %v3606_v7, %v295_v13  ;;  %v331_v28 = vadd.f32 %v3606_v7, %v296_v19  ;;  %v346_v33 = vmax.f32 %v314_v22, 0.0  ;;  %v263_v38 = vld [vmem:[%s3601_s10 + $0xc8] sm:$0xff]  ;;  %v347_v40 = vmax.f32 %v315_v26, 0.0  ;;  %v264_v61 = vld [vmem:[%s3601_s10 + $0xd0] sm:$0xff]  ;;  %v257_v63 = vld [vmem:[%s3601_s10 + $0x98] sm:$0xff] }
  0x16   : > { %v354_v34 = vmax.f32 %v322_v23, 0.0  ;;  %v355_v41 = vmax.f32 %v323_v27, 0.0  ;;  %v484_v42 = vld [vmem:[#allocation2 + $0x1] sm:$0xff]  ;;  %v297_v46 = vmul.f32 %v3571_v1, %v262_v30  ;;  %v282_v47 = vmul.f32 %v3571_v1, %v247_v31  ;;  %v240_v3 = vld [vmem:[%s3601_s10 + $0x10] sm:$0xff]  ;;  %v265_v10 = vld [vmem:[%s3601_s10 + $0xd8] sm:$0xff] }
  0x17   : > { %v362_v35 = vmax.f32 %v330_v24, 0.0  ;;  %425 = vst.msk [vmem:[#allocation2 + $0x61] sm:$0xff] %vm372_vm1, %v346_v33  ;;  %3193 = vmatmul.msk.f32.vlgmr.msra.gmra.mxu0 %vm372_vm1, %v484_v42  ;;  %v363_v45 = vmax.f32 %v331_v28, 0.0  ;;  %v290_v48 = vmul.f32 %v3571_v1, %v255_v32  ;;  %v239_v49 = vld [vmem:[%s3601_s10 + $0x8] sm:$0xff]  ;;  %v348_v50 = vmax.f32 %v316_v36, 0.0  ;;  %v250_v28 = vld [vmem:[%s3601_s10 + $0x60] sm:$0xff] }
  0x18   : > { %433 = vst.msk [vmem:[#allocation2 + $0xc1] sm:$0xff] %vm372_vm1, %v354_v34  ;;  %v273_v51 = vmul.f32 %v3571_v1, %v238_v37  ;;  %v298_v52 = vmul.f32 %v3571_v1, %v263_v38  ;;  %v283_v53 = vmul.f32 %v3571_v1, %v248_v39  ;;  %v332_v54 = vadd.f32 %v3606_v7, %v297_v46  ;;  %v485_v4 = vld [vmem:[#allocation2 + $0x9] sm:$0xff]  ;;  %v258_v32 = vld [vmem:[%s3601_s10 + $0xa0] sm:$0xff]  ;;  %v241_v36 = vld [vmem:[%s3601_s10 + $0x18] sm:$0xff] }
  0x19   : > { %441 = vst.msk [vmem:[#allocation2 + $0x121] sm:$0xff] %vm372_vm1, %v362_v35  ;;  %v317_v55 = vadd.f32 %v3606_v7, %v282_v47  ;;  %v325_v56 = vadd.f32 %v3606_v7, %v290_v48  ;;  %v291_v57 = vmul.f32 %v3571_v1, %v256_v44  ;;  %v356_v58 = vmax.f32 %v324_v43, 0.0  ;;  %v266_v37 = vld [vmem:[%s3601_s10 + $0xe0] sm:$0xff] }
  0x1a   : > { %426 = vst.msk [vmem:[#allocation2 + $0x69] sm:$0xff] %vm372_vm1, %v347_v40  ;;  %v308_v59 = vadd.f32 %v3606_v7, %v273_v51  ;;  %v274_v60 = vmul.f32 %v3571_v1, %v239_v49  ;;  %v364_v0 = vmax.f32 %v332_v54, 0.0  ;;  %v333_v2 = vadd.f32 %v3606_v7, %v298_v52  ;;  %v251_v54 = vld [vmem:[%s3601_s10 + $0x68] sm:$0xff] }
  0x1b   : > { %434 = vst.msk [vmem:[#allocation2 + $0xc9] sm:$0xff] %vm372_vm1, %v355_v41  ;;  %v349_v5 = vmax.f32 %v317_v55, 0.0  ;;  %v357_v8 = vmax.f32 %v325_v56, 0.0  ;;  %v318_v9 = vadd.f32 %v3606_v7, %v283_v53  ;;  %v326_v11 = vadd.f32 %v3606_v7, %v291_v57  ;;  %v259_v55 = vld [vmem:[%s3601_s10 + $0xa8] sm:$0xff] }
  0x1c   : > { %442 = vst.msk [vmem:[#allocation2 + $0x129] sm:$0xff] %vm372_vm1, %v363_v45  ;;  %v299_v12 = vmul.f32 %v3571_v1, %v264_v61  ;;  %v284_v13 = vmul.f32 %v3571_v1, %v249_v62  ;;  %v292_v14 = vmul.f32 %v3571_v1, %v257_v63  ;;  %v340_v16 = vmax.f32 %v308_v59, 0.0  ;;  %v267_v61 = vld [vmem:[%s3601_s10 + $0xe8] sm:$0xff] }
  0x1d   : > { %427 = vst.msk [vmem:[#allocation2 + $0x79] sm:$0xff] %vm372_vm1, %v348_v50  ;;  %v309_v17 = vadd.f32 %v3606_v7, %v274_v60  ;;  %v275_v18 = vmul.f32 %v3571_v1, %v240_v3  ;;  %v365_v20 = vmax.f32 %v333_v2, 0.0  ;;  %v300_v22 = vmul.f32 %v3571_v1, %v265_v10  ;;  %v242_v60 = vld [vmem:[%s3601_s10 + $0x20] sm:$0xff] }
  0x1e   : > { %v3681_v15 = vld [vmem:[#allocation2 + $0x61] sm:$0xff]  ;;  %435 = vst.msk [vmem:[#allocation2 + $0xd9] sm:$0xff] %vm372_vm1, %v356_v58  ;;  %v334_v21 = vadd.f32 %v3606_v7, %v299_v12  ;;  %v350_v24 = vmax.f32 %v318_v9, 0.0  ;;  %v319_v25 = vadd.f32 %v3606_v7, %v284_v13  ;;  %v358_v26 = vmax.f32 %v326_v11, 0.0 }
  0x1f   : > { %3201 = vmatmul.msk.f32.vlgmr.msra.gmra.mxu1 %vm372_vm1, %v3681_v15  ;;  %v3688_v19 = vld [vmem:[#allocation2 + $0xc1] sm:$0xff]  ;;  %3194 = vmatmul.msk.f32.gmra.mxu0 %vm372_vm1, %v485_v4  ;;  %443 = vst.msk [vmem:[#allocation2 + $0x139] sm:$0xff] %vm372_vm1, %v364_v0  ;;  %v327_v27 = vadd.f32 %v3606_v7, %v292_v14  ;;  %v341_v29 = vmax.f32 %v309_v17, 0.0  ;;  %v310_v30 = vadd.f32 %v3606_v7, %v275_v18 }
  0x20   : > { %3209 = vmatmul.msk.f32.vlgmr.msra.gmra.mxu2 %vm372_vm1, %v3688_v19  ;;  %v508_v23 = vld [vmem:[#allocation2 + $0x121] sm:$0xff]  ;;  %428 = vst.msk [vmem:[#allocation2 + $0x81] sm:$0xff] %vm372_vm1, %v349_v5  ;;  %v285_v31 = vmul.f32 %v3571_v1, %v250_v28  ;;  %v366_v33 = vmax.f32 %v334_v21, 0.0  ;;  %v335_v34 = vadd.f32 %v3606_v7, %v300_v22  ;;  %v293_v35 = vmul.f32 %v3571_v1, %v258_v32  ;;  %v3360_v28 = vld [vmem:[%s4895_s3 + $0x14] sm:$0xf] }
  0x21   : > { %3217 = vmatmul.msk.f32.vlgmr.msra.gmra.mxu3 %vm372_vm1, %v508_v23  ;;  %436 = vst.msk [vmem:[#allocation2 + $0xe1] sm:$0xff] %vm372_vm1, %v357_v8  ;;  %v3711_v38 = vld [vmem:[#allocation2 + $0x69] sm:$0xff]  ;;  %v351_v39 = vmax.f32 %v319_v25, 0.0  ;;  %v276_v41 = vmul.f32 %v3571_v1, %v241_v36  ;;  %v301_v42 = vmul.f32 %v3571_v1, %v266_v37  ;;  %v359_v44 = vmax.f32 %v327_v27, 0.0  ;;  %v3394_v25 = vld [vmem:[%s4895_s3 + $0x18] sm:$0xf]  ;;  %3361 = vmatpush.msk.msra.mxu1 %vm614_vm0, %v3360_v28 }
  0x22   : > { %419 = vst.msk [vmem:[#allocation2 + $0x19] sm:$0xff] %vm372_vm1, %v340_v16  ;;  %v320_v40 = vadd.f32 %v3606_v7, %v285_v31  ;;  %v3717_v43 = vld [vmem:[#allocation2 + $0xc9] sm:$0xff]  ;;  %v328_v45 = vadd.f32 %v3606_v7, %v293_v35  ;;  %v342_v47 = vmax.f32 %v310_v30, 0.0  ;;  %v367_v49 = vmax.f32 %v335_v34, 0.0  ;;  %3395 = vmatpush.msk.msra.mxu2 %vm614_vm0, %v3394_v25  ;;  %v3428_v27 = vld [vmem:[%s4895_s3 + $0x1c] sm:$0xf] }
  0x23   : > { %444 = vst.msk [vmem:[#allocation2 + $0x141] sm:$0xff] %vm372_vm1, %v365_v20  ;;  %v509_v46 = vld [vmem:[#allocation2 + $0x129] sm:$0xff]  ;;  %v311_v48 = vadd.f32 %v3606_v7, %v276_v41  ;;  %v336_v50 = vadd.f32 %v3606_v7, %v301_v42  ;;  %v286_v57 = vmul.f32 %v3571_v1, %v251_v54  ;;  %v294_v58 = vmul.f32 %v3571_v1, %v259_v55  ;;  %v451_v42 = vld [vmem:[#allocation2] sm:$0xff] }
  0x24   : > { %429 = vst.msk [vmem:[#allocation2 + $0x91] sm:$0xff] %vm372_vm1, %v350_v24  ;;  %v352_v51 = vmax.f32 %v320_v40, 0.0  ;;  %v360_v53 = vmax.f32 %v328_v45, 0.0  ;;  %v3744_v62 = vld [vmem:[#allocation2 + $0x79] sm:$0xff]  ;;  %v277_v2 = vmul.f32 %v3571_v1, %v242_v60  ;;  %v302_v3 = vmul.f32 %v3571_v1, %v267_v61  ;;  %3429 = vmatpush.msk.msra.mxu3 %vm614_vm0, %v3428_v27  ;;  %v243_v35 = vld [vmem:[%s3601_s10 + $0x28] sm:$0xff] }
  0x25   : > { %437 = vst.msk [vmem:[#allocation2 + $0xf1] sm:$0xff] %vm372_vm1, %v358_v26  ;;  %v343_v56 = vmax.f32 %v311_v48, 0.0  ;;  %v368_v59 = vmax.f32 %v336_v50, 0.0  ;;  %v321_v63 = vadd.f32 %v3606_v7, %v286_v57  ;;  %v329_v0 = vadd.f32 %v3606_v7, %v294_v58  ;;  %v3751_v4 = vld [vmem:[#allocation2 + $0xd9] sm:$0xff]  ;;  %v4010_v60 = vld [vmem:[#allocation2 + $0x68] sm:$0xff] }
  0x26   : > { %420 = vst.msk [vmem:[#allocation2 + $0x21] sm:$0xff] %vm372_vm1, %v341_v29  ;;  %v3754_v5 = vld [vmem:[#allocation2 + $0x139] sm:$0xff]  ;;  %v312_v10 = vadd.f32 %v3606_v7, %v277_v2  ;;  %v337_v11 = vadd.f32 %v3606_v7, %v302_v3  ;;  %v278_v37 = vmul.f32 %v3571_v1, %v243_v35 }
  0x27   : > { %3202 = vmatmul.msk.f32.gmra.mxu1 %vm372_vm1, %v3711_v38  ;;  %445 = vst.msk [vmem:[#allocation2 + $0x151] sm:$0xff] %vm372_vm1, %v366_v33  ;;  %v353_v8 = vmax.f32 %v321_v63, 0.0  ;;  %v361_v9 = vmax.f32 %v329_v0, 0.0  ;;  %v3774_v16 = vld [vmem:[#allocation2 + $0x81] sm:$0xff] }
  0x28   : > { %3210 = vmatmul.msk.f32.gmra.mxu2 %vm372_vm1, %v3717_v43  ;;  %430 = vst.msk [vmem:[#allocation2 + $0x99] sm:$0xff] %vm372_vm1, %v351_v39  ;;  %v344_v13 = vmax.f32 %v312_v10, 0.0  ;;  %v369_v14 = vmax.f32 %v337_v11, 0.0  ;;  %v3776_v17 = vld [vmem:[#allocation2 + $0xe1] sm:$0xff]  ;;  %v313_v40 = vadd.f32 %v3606_v7, %v278_v37 }
  0x29   : > { %3218 = vmatmul.msk.f32.gmra.mxu3 %vm372_vm1, %v509_v46  ;;  %v3731_v52 = vld [vmem:[#allocation2 + $0x19] sm:$0xff]  ;;  %438 = vst.msk [vmem:[#allocation2 + $0xf9] sm:$0xff] %vm372_vm1, %v359_v44  ;;  %v943_v44 = vld [vmem:[#allocation2 + $0x2] sm:$0xff] }
  0x2a   : > { %3195 = vmatmul.msk.f32.gmra.mxu0 %vm372_vm1, %v3731_v52  ;;  %421 = vst.msk [vmem:[#allocation2 + $0x31] sm:$0xff] %vm372_vm1, %v342_v47  ;;  %v3778_v18 = vld [vmem:[#allocation2 + $0x141] sm:$0xff]  ;;  %v345_v7 = vmax.f32 %v313_v40, 0.0  ;;  %v1221_v45 = vld [vmem:[#allocation2 + $0x18] sm:$0xff] }
  0x2b   : > { %446 = vst.msk [vmem:[#allocation2 + $0x159] sm:$0xff] %vm372_vm1, %v367_v49  ;;  %v3798_v21 = vld [vmem:[#allocation2 + $0x91] sm:$0xff]  ;;  %v3462_v33 = vld [vmem:[%s4895_s3 + $0x20] sm:$0xf]  ;;  %v452_v47 = vld [vmem:[#allocation2 + $0x8] sm:$0xff] }
  0x2c   : > { %431 = vst.msk [vmem:[#allocation2 + $0xa9] sm:$0xff] %vm372_vm1, %v352_v51  ;;  %v3802_v22 = vld [vmem:[#allocation2 + $0xf1] sm:$0xff]  ;;  %3463 = vmatpush.msk.msra.mxu0 %vm614_vm0, %v3462_v33  ;;  %v4024_v0 = vld [vmem:[#allocation2 + $0x62] sm:$0xff] }
  0x2d   : > { %439 = vst.msk [vmem:[#allocation2 + $0x109] sm:$0xff] %vm372_vm1, %v360_v53  ;;  %v3761_v12 = vld [vmem:[#allocation2 + $0x21] sm:$0xff] }
  0x2e   : > { %422 = vst.msk [vmem:[#allocation2 + $0x39] sm:$0xff] %vm372_vm1, %v343_v56  ;;  %v3806_v23 = vld [vmem:[#allocation2 + $0x151] sm:$0xff]  ;;  %v1222_v49 = vld [vmem:[#allocation2 + $0x20] sm:$0xff] }
  0x2f   : > { %3203 = vmatmul.msk.f32.gmra.mxu1 %vm372_vm1, %v3744_v62  ;;  %447 = vst.msk [vmem:[#allocation2 + $0x169] sm:$0xff] %vm372_vm1, %v368_v59  ;;  %v3832_v26 = vld [vmem:[#allocation2 + $0x99] sm:$0xff] }
  0x30   : > { %3211 = vmatmul.msk.f32.gmra.mxu2 %vm372_vm1, %v3751_v4  ;;  %432 = vst.msk [vmem:[#allocation2 + $0xb1] sm:$0xff] %vm372_vm1, %v353_v8  ;;  %v3844_v29 = vld [vmem:[#allocation2 + $0xf9] sm:$0xff] }
  0x31   : > { %3219 = vmatmul.msk.f32.gmra.mxu3 %vm372_vm1, %v3754_v5  ;;  %440 = vst.msk [vmem:[#allocation2 + $0x111] sm:$0xff] %vm372_vm1, %v361_v9  ;;  %v3782_v20 = vld [vmem:[#allocation2 + $0x31] sm:$0xff]  ;;  %v4046_v11 = vld [vmem:[#allocation2 + $0x80] sm:$0xff] }
  0x32   : > { %3196 = vmatmul.msk.f32.gmra.mxu0 %vm372_vm1, %v3761_v12  ;;  %423 = vst.msk [vmem:[#allocation2 + $0x49] sm:$0xff] %vm372_vm1, %v344_v13  ;;  %v3850_v30 = vld [vmem:[#allocation2 + $0x159] sm:$0xff] }
  0x33   : > { %448 = vst.msk [vmem:[#allocation2 + $0x171] sm:$0xff] %vm372_vm1, %v369_v14  ;;  %v3874_v32 = vld [vmem:[#allocation2 + $0xa9] sm:$0xff]  ;;  %v4062_v14 = vld [vmem:[#allocation2 + $0x7a] sm:$0xff]  ;;  %v4102_v40 = vld [vmem:[#allocation2 + $0x92] sm:$0xff] }
  0x34   : > { %384 = vst.msk [vmem:[#allocation2 + $0x30] sm:$0x1] %vm381_vm3, %v3524_v6  ;;  %v3881_v34 = vld [vmem:[#allocation2 + $0x109] sm:$0xff] }
  0x35   : > { %385 = vst.msk [vmem:[#allocation2 + $0x48] sm:$0x1] %vm381_vm3, %v3524_v6  ;;  %v3812_v24 = vld [vmem:[#allocation2 + $0x39] sm:$0xff] }
  0x36   : > { %386 = vst.msk [vmem:[#allocation2 + $0x60] sm:$0x1] %vm381_vm3, %v3524_v6  ;;  %v3887_v36 = vld [vmem:[#allocation2 + $0x169] sm:$0xff]  ;;  %v3963_v53 = vld [vmem:[#allocation2 + $0x38] sm:$0xff] }
  0x37   : > { %3204 = vmatmul.msk.f32.gmra.mxu1 %vm372_vm1, %v3774_v16  ;;  %387 = vst.msk [vmem:[#allocation2 + $0x78] sm:$0x1] %vm381_vm3, %v3524_v6  ;;  %v3908_v39 = vld [vmem:[#allocation2 + $0xb1] sm:$0xff] }
  0x38   : > { %3212 = vmatmul.msk.f32.gmra.mxu2 %vm372_vm1, %v3776_v17  ;;  %388 = vst.msk [vmem:[#allocation2 + $0x90] sm:$0x1] %vm381_vm3, %v3524_v6  ;;  %v3913_v1 = vld [vmem:[#allocation2 + $0x111] sm:$0xff] }
  0x39   : > { %3220 = vmatmul.msk.f32.gmra.mxu3 %vm372_vm1, %v3778_v18  ;;  %389 = vst.msk [vmem:[#allocation2 + $0xa8] sm:$0x1] %vm381_vm3, %v3524_v6  ;;  %v3856_v31 = vld [vmem:[#allocation2 + $0x49] sm:$0xff] }
  0x3a   : > { %3197 = vmatmul.msk.f32.gmra.mxu0 %vm372_vm1, %v3782_v20  ;;  %390 = vst.msk [vmem:[#allocation2 + $0xc0] sm:$0x1] %vm381_vm3, %v3524_v6  ;;  %v3917_v41 = vld [vmem:[#allocation2 + $0x171] sm:$0xff] }
  0x3b   : > { %391 = vst.msk [vmem:[#allocation2 + $0xd8] sm:$0x1] %vm381_vm3, %v3524_v6  ;;  %v3952_v50 = vld [vmem:[#allocation2 + $0x30] sm:$0xff] }
  0x3c   : > { %392 = vst.msk [vmem:[#allocation2 + $0xf0] sm:$0x1] %vm381_vm3, %v3524_v6  ;;  %v3974_v54 = vld [vmem:[#allocation2 + $0x48] sm:$0xff] }
  0x3d   : > { %393 = vst.msk [vmem:[#allocation2 + $0x108] sm:$0x1] %vm381_vm3, %v3524_v6  ;;  %v3998_v58 = vld [vmem:[#allocation2 + $0x60] sm:$0xff] }
  0x3e   : > { %394 = vst.msk [vmem:[#allocation2 + $0x120] sm:$0x1] %vm381_vm3, %v3524_v6  ;;  %v4026_v2 = vld [vmem:[#allocation2 + $0x78] sm:$0xff] }
  0x3f   : > { %3205 = vmatmul.msk.f32.gmra.mxu1 %vm372_vm1, %v3798_v21  ;;  %395 = vst.msk [vmem:[#allocation2 + $0x138] sm:$0x1] %vm381_vm3, %v3524_v6 }
  0x40   : > { %3213 = vmatmul.msk.f32.gmra.mxu2 %vm372_vm1, %v3802_v22  ;;  %396 = vst.msk [vmem:[#allocation2 + $0x150] sm:$0x1] %vm381_vm3, %v3524_v6 }
  0x41   : > { %3221 = vmatmul.msk.f32.gmra.mxu3 %vm372_vm1, %v3806_v23  ;;  %397 = vst.msk [vmem:[#allocation2 + $0x168] sm:$0x1] %vm381_vm3, %v3524_v6 }
  0x42   : > { %3198 = vmatmul.msk.f32.gmra.mxu0 %vm372_vm1, %v3812_v24  ;;  %398 = vst.msk [vmem:[#allocation2 + $0x180] sm:$0x1] %vm381_vm3, %v3524_v6 }
  0x43   : > { %399 = vst.msk [vmem:[#allocation2 + $0x198] sm:$0x1] %vm381_vm3, %v3524_v6 }
  0x44   : > { %400 = vst.msk [vmem:[#allocation2 + $0x11] sm:$0x1] %vm381_vm3, %v3524_v6 }
  0x45   : > { %401 = vst.msk [vmem:[#allocation2 + $0x29] sm:$0x1] %vm381_vm3, %v3524_v6 }
  0x46   : > { %402 = vst.msk [vmem:[#allocation2 + $0x41] sm:$0x1] %vm381_vm3, %v3524_v6 }
  0x47   : > { %3206 = vmatmul.msk.f32.gmra.mxu1 %vm372_vm1, %v3832_v26  ;;  %403 = vst.msk [vmem:[#allocation2 + $0x59] sm:$0x1] %vm381_vm3, %v3524_v6 }
  0x48   : > { %3214 = vmatmul.msk.f32.gmra.mxu2 %vm372_vm1, %v3844_v29  ;;  %404 = vst.msk [vmem:[#allocation2 + $0x71] sm:$0x1] %vm381_vm3, %v3524_v6 }
  0x49   : > { %3222 = vmatmul.msk.f32.gmra.mxu3 %vm372_vm1, %v3850_v30  ;;  %405 = vst.msk [vmem:[#allocation2 + $0x89] sm:$0x1] %vm381_vm3, %v3524_v6 }
  0x4a   : > { %3199 = vmatmul.msk.f32.gmra.mxu0 %vm372_vm1, %v3856_v31  ;;  %406 = vst.msk [vmem:[#allocation2 + $0xa1] sm:$0x1] %vm381_vm3, %v3524_v6 }
  0x4b   : > { %407 = vst.msk [vmem:[#allocation2 + $0xb9] sm:$0x1] %vm381_vm3, %v3524_v6  ;;  %v944_v48 = vld [vmem:[#allocation2 + $0xa] sm:$0xff] }
  0x4c   : > { %408 = vst.msk [vmem:[#allocation2 + $0xd1] sm:$0x1] %vm381_vm3, %v3524_v6  ;;  %v3961_v51 = vld [vmem:[#allocation2 + $0x22] sm:$0xff] }
  0x4d   : > { %409 = vst.msk [vmem:[#allocation2 + $0xe9] sm:$0x1] %vm381_vm3, %v3524_v6  ;;  %v3984_v55 = vld [vmem:[#allocation2 + $0x3a] sm:$0xff] }
  0x4e   : > { %410 = vst.msk [vmem:[#allocation2 + $0x101] sm:$0x1] %vm381_vm3, %v3524_v6 }
  0x4f   : > { %3207 = vmatmul.msk.f32.gmra.mxu1 %vm372_vm1, %v3874_v32  ;;  %411 = vst.msk [vmem:[#allocation2 + $0x119] sm:$0x1] %vm381_vm3, %v3524_v6  ;;  %v4042_v9 = vld [vmem:[#allocation2 + $0x6a] sm:$0xff] }
  0x50   : > { %3215 = vmatmul.msk.f32.gmra.mxu2 %vm372_vm1, %v3881_v34  ;;  %412 = vst.msk [vmem:[#allocation2 + $0x131] sm:$0x1] %vm381_vm3, %v3524_v6  ;;  %v4082_v28 = vld [vmem:[#allocation2 + $0x82] sm:$0xff] }
  0x51   : > { %3223 = vmatmul.msk.f32.gmra.mxu3 %vm372_vm1, %v3887_v36  ;;  %413 = vst.msk [vmem:[#allocation2 + $0x149] sm:$0x1] %vm381_vm3, %v3524_v6 }
  0x52   : > { %414 = vst.msk [vmem:[#allocation2 + $0x161] sm:$0x1] %vm381_vm3, %v3524_v6 }
  0x53   : > { %415 = vst.msk [vmem:[#allocation2 + $0x179] sm:$0x1] %vm381_vm3, %v3524_v6 }
  0x54   : > { %416 = vst.msk [vmem:[#allocation2 + $0x191] sm:$0x1] %vm381_vm3, %v3524_v6 }
  0x55   : > { %417 = vst.msk [vmem:[#allocation2 + $0x1a9] sm:$0x1] %vm381_vm3, %v3524_v6  ;;  %v3950_v6 = vld [vmem:[#allocation2 + $0x1a] sm:$0xff] }
  0x56   : > { %424 = vst.msk [vmem:[#allocation2 + $0x51] sm:$0xff] %vm372_vm1, %v345_v7  ;;  %v4104_v7 = vld [vmem:[#allocation2 + $0xa8] sm:$0xff] }
  0x57   : > { %3208 = vmatmul.msk.f32.gmra.mxu1 %vm372_vm1, %v3908_v39  ;;  %4927 = vst [vmem:[#allocation4_spill] sm:$0xff] %v4046_v11 }
  0x58   : > { %3216 = vmatmul.msk.f32.gmra.mxu2 %vm372_vm1, %v3913_v1  ;;  %4929 = vst [vmem:[#allocation6_spill] sm:$0xff] %v4062_v14 }
  0x59   : > { %3224 = vmatmul.msk.f32.gmra.mxu3 %vm372_vm1, %v3917_v41  ;;  %4932 = vst [vmem:[#allocation9_spill] sm:$0xff] %v4082_v28 }
  0x5a   : > { %4935 = vst [vmem:[#allocation12_spill] sm:$0xff] %v4102_v40 }
  0x5b   : > { %4936 = vst [vmem:[#allocation13_spill] sm:$0xff] %v4104_v7 }
  0x5d   : > { %v3941_v46 = vld [vmem:[#allocation2 + $0x51] sm:$0xff] }
  0x5e   : > { %3200 = vmatmul.msk.f32.gmra.mxu0 %vm372_vm1, %v3941_v46  ;;  %v3986_v56 = vld [vmem:[#allocation2 + $0x50] sm:$0xff] }
  0x5f   : > { %3226 = vmatmul.msk.f32.vlgmr.msrb.gmra.mxu1 %vm372_vm1, %v451_v42  ;;  %v3996_v57 = vld [vmem:[#allocation2 + $0x4a] sm:$0xff]  ;;  %v4008_v59 = vld [vmem:[#allocation2 + $0x52] sm:$0xff] }
  0x60   : > { %3260 = vmatmul.msk.f32.vlgmr.msrb.gmra.mxu2 %vm372_vm1, %v943_v44 }
  0x61   : > { %3294 = vmatmul.msk.f32.vlgmr.msrb.gmra.mxu3 %vm372_vm1, %v1221_v45 }
  0x66   : > { %3328 = vmatmul.msk.f32.vlgmr.msrb.gmra.mxu0 %vm372_vm1, %v3731_v52  ;;  %v3972_v52 = vld [vmem:[#allocation2 + $0x32] sm:$0xff] }
  0x67   : > { %3227 = vmatmul.msk.f32.gmra.mxu1 %vm372_vm1, %v452_v47  ;;  %v4122_v47 = vld [vmem:[#allocation2 + $0x9a] sm:$0xff] }
  0x68   : > { %3261 = vmatmul.msk.f32.gmra.mxu2 %vm372_vm1, %v944_v48  ;;  %4938 = vst [vmem:[#allocation15_spill] sm:$0xff] %v4122_v47  ;;  %v4124_v48 = vld [vmem:[#allocation2 + $0xb0] sm:$0xff] }
  0x69   : > { %3295 = vmatmul.msk.f32.gmra.mxu3 %vm372_vm1, %v1222_v49  ;;  %4939 = vst [vmem:[#allocation16_spill] sm:$0xff] %v4124_v48 }
  0x6e   : > { %3329 = vmatmul.msk.f32.gmra.mxu0 %vm372_vm1, %v3761_v12 }
  0x6f   : > { %3228 = vmatmul.msk.f32.gmra.mxu1 %vm372_vm1, %v1221_v45 }
  0x70   : > { %3262 = vmatmul.msk.f32.gmra.mxu2 %vm372_vm1, %v3950_v6 }
  0x71   : > { %3296 = vmatmul.msk.f32.gmra.mxu3 %vm372_vm1, %v3952_v50 }
  0x76   : > { %3330 = vmatmul.msk.f32.gmra.mxu0 %vm372_vm1, %v3782_v20  ;;  %v4064_v20 = vld [vmem:[#allocation2 + $0x90] sm:$0xff] }
  0x77   : > { %3229 = vmatmul.msk.f32.gmra.mxu1 %vm372_vm1, %v1222_v49  ;;  %4930 = vst [vmem:[#allocation7_spill] sm:$0xff] %v4064_v20 }
  0x78   : > { %3263 = vmatmul.msk.f32.gmra.mxu2 %vm372_vm1, %v3961_v51 }
  0x79   : > { %3297 = vmatmul.msk.f32.gmra.mxu3 %vm372_vm1, %v3963_v53 }
  0x7e   : > { %3331 = vmatmul.msk.f32.gmra.mxu0 %vm372_vm1, %v3812_v24 }
  0x7f   : > { %3230 = vmatmul.msk.f32.gmra.mxu1 %vm372_vm1, %v3952_v50 }
  0x80   : > { %3264 = vmatmul.msk.f32.gmra.mxu2 %vm372_vm1, %v3972_v52 }
  0x81   : > { %3298 = vmatmul.msk.f32.gmra.mxu3 %vm372_vm1, %v3974_v54 }
  0x86   : > { %3332 = vmatmul.msk.f32.gmra.mxu0 %vm372_vm1, %v3856_v31  ;;  %v4084_v31 = vld [vmem:[#allocation2 + $0x98] sm:$0xff] }
  0x87   : > { %3231 = vmatmul.msk.f32.gmra.mxu1 %vm372_vm1, %v3963_v53  ;;  %4933 = vst [vmem:[#allocation10_spill] sm:$0xff] %v4084_v31 }
  0x88   : > { %3265 = vmatmul.msk.f32.gmra.mxu2 %vm372_vm1, %v3984_v55 }
  0x89   : > { %3299 = vmatmul.msk.f32.gmra.mxu3 %vm372_vm1, %v3986_v56 }
  0x8e   : > { %3333 = vmatmul.msk.f32.gmra.mxu0 %vm372_vm1, %v3941_v46 }
  0x8f   : > { %3232 = vmatmul.msk.f32.gmra.mxu1 %vm372_vm1, %v3974_v54 }
  0x90   : > { %3266 = vmatmul.msk.f32.gmra.mxu2 %vm372_vm1, %v3996_v57 }
  0x91   : > { %3300 = vmatmul.msk.f32.gmra.mxu3 %vm372_vm1, %v3998_v58 }
  0x94   : > { %v4018_v61 = vpop.f32.mrf.mxu0 }
  0x96   : > { %3334 = vmatmul.msk.f32.gmra.mxu0 %vm372_vm1, %v3681_v15 }
  0x97   : > { %3233 = vmatmul.msk.f32.gmra.mxu1 %vm372_vm1, %v3986_v56 }
  0x98   : > { %3267 = vmatmul.msk.f32.gmra.mxu2 %vm372_vm1, %v4008_v59 }
  0x99   : > { %3301 = vmatmul.msk.f32.gmra.mxu3 %vm372_vm1, %v4010_v60 }
  0x9c   : > { %v4022_v63 = vpop.f32.mrf.mxu1  ;;  %v4044_v10 = vpop.f32.mrf.mxu0 }
  0x9e   : > { %3335 = vmatmul.msk.f32.gmra.mxu0 %vm372_vm1, %v3711_v38 }
  0x9f   : > { %3234 = vmatmul.msk.f32.gmra.mxu1 %vm372_vm1, %v3998_v58 }
  0xa0   : > { %3268 = vmatmul.msk.f32.gmra.mxu2 %vm372_vm1, %v4024_v0 }
  0xa1   : > { %3302 = vmatmul.msk.f32.gmra.mxu3 %vm372_vm1, %v4026_v2 }
  0xa3   : > { %v4034_v3 = vpop.f32.mrf.mxu2 }
  0xa4   : > { %v4038_v15 = vpop.f32.mrf.mxu1  ;;  %v4040_v8 = vpop.f32.mrf.mxu3 }
  0xa5   : > { %4926 = vst [vmem:[#allocation3_spill] sm:$0xff] %v4040_v8  ;;  %v4180_v8 = vld [vmem:[#allocation2 + $0xd8] sm:$0xff] }
  0xa6   : > { %3336 = vmatmul.msk.f32.gmra.mxu0 %vm372_vm1, %v3744_v62 }
  0xa7   : > { %3235 = vmatmul.msk.f32.gmra.mxu1 %vm372_vm1, %v4010_v60  ;;  %v4068_v24 = vpop.f32.mrf.mxu0 }
  0xa8   : > { %3269 = vmatmul.msk.f32.gmra.mxu2 %vm372_vm1, %v4042_v9 }
  0xa9   : > { %3303 = vmatmul.msk.f32.gmra.mxu3 %vm372_vm1, %v4046_v11 }
  0xab   : > { %v4054_v38 = vpop.f32.mrf.mxu2 }
  0xac   : > { %v4058_v12 = vpop.f32.mrf.mxu1  ;;  %v4060_v13 = vpop.f32.mrf.mxu3 }
  0xad   : > { %4928 = vst [vmem:[#allocation5_spill] sm:$0xff] %v4060_v13  ;;  %v4160_v13 = vld [vmem:[#allocation2 + $0xb2] sm:$0xff] }
  0xae   : > { %3337 = vmatmul.msk.f32.gmra.mxu0 %vm372_vm1, %v3774_v16  ;;  %4944 = vst [vmem:[#allocation21_spill] sm:$0xff] %v4160_v13 }
  0xaf   : > { %3236 = vmatmul.msk.f32.gmra.mxu1 %vm372_vm1, %v4026_v2  ;;  %v4092_v33 = vpop.f32.mrf.mxu0 }
  0xb0   : > { %3270 = vmatmul.msk.f32.gmra.mxu2 %vm372_vm1, %v4062_v14 }
  0xb1   : > { %3304 = vmatmul.msk.f32.gmra.mxu3 %vm372_vm1, %v4064_v20 }
  0xb3   : > { %v4074_v62 = vpop.f32.mrf.mxu2 }
  0xb4   : > { %v4078_v25 = vpop.f32.mrf.mxu1  ;;  %v4080_v27 = vpop.f32.mrf.mxu3 }
  0xb5   : > { %4931 = vst [vmem:[#allocation8_spill] sm:$0xff] %v4080_v27  ;;  %v4142_v27 = vld [vmem:[#allocation2 + $0xaa] sm:$0xff] }
  0xb6   : > { %3338 = vmatmul.msk.f32.gmra.mxu0 %vm372_vm1, %v3798_v21  ;;  %4941 = vst [vmem:[#allocation18_spill] sm:$0xff] %v4142_v27 }
  0xb7   : > { %3237 = vmatmul.msk.f32.gmra.mxu1 %vm372_vm1, %v4046_v11  ;;  %v4114_v21 = vpop.f32.mrf.mxu0  ;;  %v4197_v11 = vld [vmem:[#allocation2 + $0xe0] sm:$0xff] }
  0xb8   : > { %3271 = vmatmul.msk.f32.gmra.mxu2 %vm372_vm1, %v4082_v28  ;;  %v4178_v28 = vld [vmem:[#allocation2 + $0xc2] sm:$0xff] }
  0xb9   : > { %3305 = vmatmul.msk.f32.gmra.mxu3 %vm372_vm1, %v4084_v31  ;;  %4947 = vst [vmem:[#allocation24_spill] sm:$0xff] %v4178_v28 }
  0xbb   : > { %v4094_v16 = vpop.f32.mrf.mxu2 }
  0xbc   : > { %v4098_v35 = vpop.f32.mrf.mxu1  ;;  %v4100_v37 = vpop.f32.mrf.mxu3 }
  0xbd   : > { %4934 = vst [vmem:[#allocation11_spill] sm:$0xff] %v4100_v37 }
  0xbe   : > { %3339 = vmatmul.msk.f32.gmra.mxu0 %vm372_vm1, %v3832_v26 }
  0xbf   : > { %3238 = vmatmul.msk.f32.gmra.mxu1 %vm372_vm1, %v4064_v20  ;;  %v4140_v37 = vpop.f32.mrf.mxu0 }
  0xc0   : > { %3272 = vmatmul.msk.f32.gmra.mxu2 %vm372_vm1, %v4102_v40  ;;  %v4144_v40 = vld [vmem:[#allocation2 + $0xc0] sm:$0xff] }
  0xc1   : > { %3306 = vmatmul.msk.f32.gmra.mxu3 %vm372_vm1, %v4104_v7  ;;  %4942 = vst [vmem:[#allocation19_spill] sm:$0xff] %v4144_v40 }
  0xc3   : > { %v4112_v42 = vpop.f32.mrf.mxu2 }
  0xc4   : > { %v4118_v44 = vpop.f32.mrf.mxu1  ;;  %v4120_v45 = vpop.f32.mrf.mxu3 }
  0xc5   : > { %4937 = vst [vmem:[#allocation14_spill] sm:$0xff] %v4120_v45 }
  0xc6   : > { %3340 = vmatmul.msk.f32.gmra.mxu0 %vm372_vm1, %v3874_v32 }
  0xc7   : > { %3239 = vmatmul.msk.f32.gmra.mxu1 %vm372_vm1, %v4084_v31  ;;  %v4162_v31 = vld [vmem:[#allocation2 + $0xc8] sm:$0xff] }
  0xc8   : > { %3273 = vmatmul.msk.f32.gmra.mxu2 %vm372_vm1, %v4122_v47 }
  0xc9   : > { %3307 = vmatmul.msk.f32.gmra.mxu3 %vm372_vm1, %v4124_v48 }
  0xcb   : > { %v4132_v49 = vpop.f32.mrf.mxu2 }
  0xcc   : > { %v4136_v26 = vpop.f32.mrf.mxu1  ;;  %v4138_v45 = vpop.f32.mrf.mxu3 }
  0xcd   : > { %4940 = vst [vmem:[#allocation17_spill] sm:$0xff] %v4138_v45 }
  0xce   : > { %3341 = vmatmul.msk.f32.gmra.mxu0 %vm372_vm1, %v3908_v39 }
  0xcf   : > { %3240 = vmatmul.msk.f32.gmra.mxu1 %vm372_vm1, %v4104_v7  ;;  %v4164_v7 = vpop.f32.mrf.mxu0 }
  0xd0   : > { %3274 = vmatmul.msk.f32.gmra.mxu2 %vm372_vm1, %v4142_v27 }
  0xd1   : > { %3308 = vmatmul.msk.f32.gmra.mxu3 %vm372_vm1, %v4144_v40 }
  0xd3   : > { %v4152_v32 = vpop.f32.mrf.mxu2 }
  0xd4   : > { %v4156_v45 = vpop.f32.mrf.mxu1  ;;  %v4158_v47 = vpop.f32.mrf.mxu3 }
  0xd5   : > { %4943 = vst [vmem:[#allocation20_spill] sm:$0xff] %v4158_v47 }
  0xd6   : > { %3342 = vmatmul.msk.f32.gmra.mxu0 %vm372_vm1, %v3688_v19 }
  0xd7   : > { %3241 = vmatmul.msk.f32.gmra.mxu1 %vm372_vm1, %v4124_v48 }
  0xd8   : > { %3275 = vmatmul.msk.f32.gmra.mxu2 %vm372_vm1, %v4160_v13 }
  0xd9   : > { %3309 = vmatmul.msk.f32.gmra.mxu3 %vm372_vm1, %v4162_v31 }
  0xdb   : > { %v4172_v39 = vpop.f32.mrf.mxu2  ;;  %v4186_v13 = vpop.f32.mrf.mxu0 }
  0xdc   : > { %4945 = vst [vmem:[#allocation22_spill] sm:$0xff] %v4172_v39  ;;  %v4176_v47 = vpop.f32.mrf.mxu3  ;;  %v847_v27 = vpop.f32.mrf.mxu1  ;;  %v4193_v39 = vld [vmem:[#allocation2 + $0xca] sm:$0xff] }
  0xdd   : > { %4946 = vst [vmem:[#allocation23_spill] sm:$0xff] %v4176_v47  ;;  %v848_v19 = vadd.f32 %v847_v27, %v4018_v61 }
  0xde   : > { %3343 = vmatmul.msk.f32.gmra.mxu0 %vm372_vm1, %v3717_v43 }
  0xdf   : > { %3242 = vmatmul.msk.f32.gmra.mxu1 %vm372_vm1, %v4144_v40 }
  0xe0   : > { %3276 = vmatmul.msk.f32.gmra.mxu2 %vm372_vm1, %v4178_v28  ;;  %v4214_v28 = vld [vmem:[#allocation2 + $0xf0] sm:$0xff] }
  0xe1   : > { %3310 = vmatmul.msk.f32.gmra.mxu3 %vm372_vm1, %v4180_v8 }
  0xe3   : > { %v1093_v48 = vpop.f32.mrf.mxu2  ;;  %v4203_v61 = vpop.f32.mrf.mxu0 }
  0xe4   : > { %v1189_v47 = vadd.f32 %v1093_v48, %v848_v19  ;;  %v850_v20 = vpop.f32.mrf.mxu1  ;;  %v1371_v14 = vpop.f32.mrf.mxu3  ;;  %4949 = vst [vmem:[#allocation26_spill] sm:$0xff] %v4203_v61  ;;  %v4210_v19 = vld [vmem:[#allocation2 + $0xda] sm:$0xff] }
  0xe5   : > { %v851_v43 = vadd.f32 %v850_v20, %v4044_v10  ;;  %v4231_v61 = vld [vmem:[#allocation2 + $0xf8] sm:$0xff] }
  0xe6   : > { %v4195_v40 = vadd.f32 %v1371_v14, %v1189_v47  ;;  %3344 = vmatmul.msk.f32.gmra.mxu0 %vm372_vm1, %v3751_v4 }
  0xe7   : > { %3243 = vmatmul.msk.f32.gmra.mxu1 %vm372_vm1, %v4162_v31 }
  0xe8   : > { %4948 = vst [vmem:[#allocation25_spill] sm:$0xff] %v4195_v40  ;;  %3277 = vmatmul.msk.f32.gmra.mxu2 %vm372_vm1, %v4193_v39 }
  0xe9   : > { %3311 = vmatmul.msk.f32.gmra.mxu3 %vm372_vm1, %v4197_v11 }
  0xeb   : > { %v1096_v27 = vpop.f32.mrf.mxu2  ;;  %v4220_v10 = vpop.f32.mrf.mxu0 }
  0xec   : > { %v1190_v14 = vadd.f32 %v1096_v27, %v851_v43  ;;  %v853_v47 = vpop.f32.mrf.mxu1  ;;  %v1374_v48 = vpop.f32.mrf.mxu3  ;;  %4951 = vst [vmem:[#allocation28_spill] sm:$0xff] %v4220_v10  ;;  %v4248_v10 = vld [vmem:[#allocation2 + $0x108] sm:$0xff] }
  0xed   : > { %v854_v4 = vadd.f32 %v853_v47, %v4068_v24 }
  0xee   : > { %v4212_v40 = vadd.f32 %v1374_v48, %v1190_v14  ;;  %3345 = vmatmul.msk.f32.gmra.mxu0 %vm372_vm1, %v3776_v17  ;;  %v4227_v48 = vld [vmem:[#allocation2 + $0xe2] sm:$0xff] }
  0xef   : > { %3244 = vmatmul.msk.f32.gmra.mxu1 %vm372_vm1, %v4180_v8 }
  0xf0   : > { %4950 = vst [vmem:[#allocation27_spill] sm:$0xff] %v4212_v40  ;;  %3278 = vmatmul.msk.f32.gmra.mxu2 %vm372_vm1, %v4210_v19 }
  0xf1   : > { %3312 = vmatmul.msk.f32.gmra.mxu3 %vm372_vm1, %v4214_v28 }
  0xf3   : > { %v1099_v20 = vpop.f32.mrf.mxu2  ;;  %v4237_v24 = vpop.f32.mrf.mxu0 }
  0xf4   : > { %v1191_v43 = vadd.f32 %v1099_v20, %v854_v4  ;;  %v856_v27 = vpop.f32.mrf.mxu1  ;;  %v1377_v14 = vpop.f32.mrf.mxu3  ;;  %4953 = vst [vmem:[#allocation30_spill] sm:$0xff] %v4237_v24  ;;  %v4265_v24 = vld [vmem:[#allocation2 + $0x110] sm:$0xff] }
  0xf5   : > { %v857_v17 = vadd.f32 %v856_v27, %v4092_v33  ;;  %4957 = vst [vmem:[#allocation34_spill] sm:$0xff] %v4265_v24 }
  0xf6   : > { %v4229_v40 = vadd.f32 %v1377_v14, %v1191_v43  ;;  %3346 = vmatmul.msk.f32.gmra.mxu0 %vm372_vm1, %v3802_v22  ;;  %v4244_v14 = vld [vmem:[#allocation2 + $0xf2] sm:$0xff] }
  0xf7   : > { %3245 = vmatmul.msk.f32.gmra.mxu1 %vm372_vm1, %v4197_v11 }
  0xf8   : > { %4952 = vst [vmem:[#allocation29_spill] sm:$0xff] %v4229_v40  ;;  %3279 = vmatmul.msk.f32.gmra.mxu2 %vm372_vm1, %v4227_v48 }
  0xf9   : > { %3313 = vmatmul.msk.f32.gmra.mxu3 %vm372_vm1, %v4231_v61 }
  0xfb   : > { %v1102_v47 = vpop.f32.mrf.mxu2  ;;  %v4254_v33 = vpop.f32.mrf.mxu0 }
  0xfc   : > { %v1192_v4 = vadd.f32 %v1102_v47, %v857_v17  ;;  %v859_v20 = vpop.f32.mrf.mxu1  ;;  %v1380_v43 = vpop.f32.mrf.mxu3  ;;  %4955 = vst [vmem:[#allocation32_spill] sm:$0xff] %v4254_v33  ;;  %v4282_v33 = vld [vmem:[#allocation2 + $0x120] sm:$0xff] }
  0xfd   : > { %v860_v22 = vadd.f32 %v859_v20, %v4114_v21  ;;  %4961 = vst [vmem:[#allocation38_spill] sm:$0xff] %v4282_v33 }
  0xfe   : > { %v4246_v40 = vadd.f32 %v1380_v43, %v1192_v4  ;;  %3347 = vmatmul.msk.f32.gmra.mxu0 %vm372_vm1, %v3844_v29  ;;  %v4261_v43 = vld [vmem:[#allocation2 + $0xfa] sm:$0xff] }
  0xff   : > { %3246 = vmatmul.msk.f32.gmra.mxu1 %vm372_vm1, %v4214_v28 }
 0x100   : > { %4954 = vst [vmem:[#allocation31_spill] sm:$0xff] %v4246_v40  ;;  %3280 = vmatmul.msk.f32.gmra.mxu2 %vm372_vm1, %v4244_v14 }
 0x101   : > { %3314 = vmatmul.msk.f32.gmra.mxu3 %vm372_vm1, %v4248_v10 }
 0x103   : > { %v1105_v27 = vpop.f32.mrf.mxu2  ;;  %v4271_v21 = vpop.f32.mrf.mxu0 }
 0x104   : > { %v1193_v17 = vadd.f32 %v1105_v27, %v860_v22  ;;  %v862_v47 = vpop.f32.mrf.mxu1  ;;  %v1383_v4 = vpop.f32.mrf.mxu3  ;;  %4958 = vst [vmem:[#allocation35_spill] sm:$0xff] %v4271_v21  ;;  %v1244_v21 = vld [vmem:[#allocation2 + $0x128] sm:$0xff] }
 0x105   : > { %v863_v29 = vadd.f32 %v862_v47, %v4140_v37 }
 0x106   : > { %v4263_v40 = vadd.f32 %v1383_v4, %v1193_v17  ;;  %3348 = vmatmul.msk.f32.gmra.mxu0 %vm372_vm1, %v3881_v34  ;;  %v4278_v4 = vld [vmem:[#allocation2 + $0x10a] sm:$0xff] }
 0x107   : > { %3247 = vmatmul.msk.f32.gmra.mxu1 %vm372_vm1, %v4231_v61  ;;  %4959 = vst [vmem:[#allocation36_spill] sm:$0xff] %v4278_v4 }
 0x108   : > { %4956 = vst [vmem:[#allocation33_spill] sm:$0xff] %v4263_v40  ;;  %3281 = vmatmul.msk.f32.gmra.mxu2 %vm372_vm1, %v4261_v43 }
 0x109   : > { %3315 = vmatmul.msk.f32.gmra.mxu3 %vm372_vm1, %v4265_v24 }
 0x10b   : > { %v1108_v20 = vpop.f32.mrf.mxu2  ;;  %v4288_v37 = vpop.f32.mrf.mxu0 }
 0x10c   : > { %v1194_v22 = vadd.f32 %v1108_v20, %v863_v29  ;;  %v865_v27 = vpop.f32.mrf.mxu1  ;;  %v1386_v17 = vpop.f32.mrf.mxu3  ;;  %4962 = vst [vmem:[#allocation39_spill] sm:$0xff] %v4288_v37 }
 0x10d   : > { %v866_v34 = vadd.f32 %v865_v27, %v4164_v7  ;;  %v4306_v7 = vld [vmem:[#allocation2 + $0x121] sm:$0xff] }
 0x10e   : > { %v4280_v40 = vadd.f32 %v1386_v17, %v1194_v22  ;;  %3349 = vmatmul.msk.f32.gmra.mxu0 %vm372_vm1, %v3913_v1  ;;  %v4295_v17 = vld [vmem:[#allocation2 + $0x112] sm:$0xff]  ;;  %4966 = vst [vmem:[#allocation43_spill] sm:$0xff] %v4306_v7 }
 0x10f   : > { %3248 = vmatmul.msk.f32.gmra.mxu1 %vm372_vm1, %v4248_v10  ;;  %4963 = vst [vmem:[#allocation40_spill] sm:$0xff] %v4295_v17 }
 0x110   : > { %4960 = vst [vmem:[#allocation37_spill] sm:$0xff] %v4280_v40  ;;  %3282 = vmatmul.msk.f32.gmra.mxu2 %vm372_vm1, %v4278_v4 }
 0x111   : > { %3316 = vmatmul.msk.f32.gmra.mxu3 %vm372_vm1, %v4282_v33 }
 0x113   : > { %v1111_v47 = vpop.f32.mrf.mxu2  ;;  %v4303_v37 = vpop.f32.mrf.mxu0 }
 0x114   : > { %v1195_v29 = vadd.f32 %v1111_v47, %v866_v34  ;;  %v868_v20 = vpop.f32.mrf.mxu1  ;;  %v1389_v22 = vpop.f32.mrf.mxu3  ;;  %4965 = vst [vmem:[#allocation42_spill] sm:$0xff] %v4303_v37  ;;  %v968_v37 = vld [vmem:[#allocation2 + $0x12a] sm:$0xff] }
 0x115   : > { %v869_v1 = vadd.f32 %v868_v20, %v4186_v13  ;;  %v4322_v20 = vld [vmem:[#allocation2 + $0x129] sm:$0xff] }
 0x116   : > { %v4297_v40 = vadd.f32 %v1389_v22, %v1195_v29  ;;  %3350 = vmatmul.msk.f32.gmra.mxu0 %vm372_vm1, %v4306_v7  ;;  %v4311_v22 = vld [vmem:[#allocation2 + $0x122] sm:$0xff]  ;;  %4970 = vst [vmem:[#allocation47_spill] sm:$0xff] %v4322_v20  ;;  %v268_v7 = vld [vmem:[%s3601_s10 + $0xf0] sm:$0xff] }
 0x117   : > { %3249 = vmatmul.msk.f32.gmra.mxu1 %vm372_vm1, %v4265_v24  ;;  %4967 = vst [vmem:[#allocation44_spill] sm:$0xff] %v4311_v22 }
 0x118   : > { %4964 = vst [vmem:[#allocation41_spill] sm:$0xff] %v4297_v40  ;;  %3283 = vmatmul.msk.f32.gmra.mxu2 %vm372_vm1, %v4295_v17  ;;  %v1245_v17 = vld [vmem:[#allocation2 + $0x138] sm:$0xff] }
 0x119   : > { %3317 = vmatmul.msk.f32.gmra.mxu3 %vm372_vm1, %v1244_v21 }
 0x11b   : > { %v1114_v27 = vpop.f32.mrf.mxu2  ;;  %v4319_v13 = vpop.f32.mrf.mxu0 }
 0x11c   : > { %v1196_v34 = vadd.f32 %v1114_v27, %v869_v1  ;;  %v871_v47 = vpop.f32.mrf.mxu1  ;;  %v1392_v29 = vpop.f32.mrf.mxu3  ;;  %4969 = vst [vmem:[#allocation46_spill] sm:$0xff] %v4319_v13  ;;  %v3514_v13 = vld [vmem:[%s4893_s1] ss:$0 sm:$0xff] }
 0x11d   : > { %v872_v1 = vadd.f32 %v871_v47, %v4022_v63  ;;  %v303_v4 = vmul.f32 %v3514_v13, %v268_v7  ;;  %v3515_v63 = vld [vmem:[%s4894_s2] ss:$0 sm:$0xff] }
 0x11e   : > { %v4313_v40 = vadd.f32 %v1392_v29, %v1196_v34  ;;  %3351 = vmatmul.msk.f32.gmra.mxu0 %vm372_vm1, %v4322_v20  ;;  %v269_v20 = vld [vmem:[%s3601_s10 + $0xf8] sm:$0xff] }
 0x11f   : > { %3250 = vmatmul.msk.f32.gmra.mxu1 %vm372_vm1, %v4282_v33  ;;  %v338_v47 = vadd.f32 %v3515_v63, %v303_v4  ;;  %v1247_v4 = vld [vmem:[#allocation2 + $0x150] sm:$0xff] }
 0x120   : > { %4968 = vst [vmem:[#allocation45_spill] sm:$0xff] %v4313_v40  ;;  %3284 = vmatmul.msk.f32.gmra.mxu2 %vm372_vm1, %v4311_v22  ;;  %v1246_v22 = vld [vmem:[#allocation2 + $0x140] sm:$0xff] }
 0x121   : > { %3318 = vmatmul.msk.f32.gmra.mxu3 %vm372_vm1, %v1245_v17 }
 0x123   : > { %v1117_v27 = vpop.f32.mrf.mxu2 }
 0x124   : > { %v1197_v34 = vadd.f32 %v1117_v27, %v872_v1  ;;  %v874_v29 = vpop.f32.mrf.mxu1  ;;  %v1395_v40 = vpop.f32.mrf.mxu3  ;;  %v370_v27 = vmax.f32 %v338_v47, 0.0 }
 0x125   : > { %v4338_v1 = vpop.f32.mrf.mxu0 }
 0x126   : > { %v4328_v33 = vadd.f32 %v1395_v40, %v1197_v34  ;;  %4972 = vst [vmem:[#allocation49_spill] sm:$0xff] %v4338_v1  ;;  %v875_v40 = vadd.f32 %v874_v29, %v4038_v15  ;;  %3352 = vmatmul.msk.f32.gmra.mxu0 %vm372_vm1, %v3754_v5  ;;  %v304_v1 = vmul.f32 %v3514_v13, %v269_v20  ;;  %v1248_v20 = vld [vmem:[#allocation2 + $0x158] sm:$0xff] }
 0x127   : > { %3251 = vmatmul.msk.f32.gmra.mxu1 %vm372_vm1, %v1244_v21  ;;  %449 = vst.msk [vmem:[#allocation2 + $0x181] sm:$0xff] %vm372_vm1, %v370_v27 }
 0x128   : > { %4971 = vst [vmem:[#allocation48_spill] sm:$0xff] %v4328_v33  ;;  %3285 = vmatmul.msk.f32.gmra.mxu2 %vm372_vm1, %v968_v37  ;;  %v969_v37 = vld [vmem:[#allocation2 + $0x13a] sm:$0xff]  ;;  %v339_v15 = vadd.f32 %v3515_v63, %v304_v1 }
 0x129   : > { %3319 = vmatmul.msk.f32.gmra.mxu3 %vm372_vm1, %v1246_v22 }
 0x12a   : > { %v371_v47 = vmax.f32 %v339_v15, 0.0 }
 0x12b   : > { %v1120_v34 = vpop.f32.mrf.mxu2 }
 0x12c   : > { %v1198_v7 = vadd.f32 %v1120_v34, %v875_v40  ;;  %v877_v21 = vpop.f32.mrf.mxu1  ;;  %v1398_v33 = vpop.f32.mrf.mxu3  ;;  %450 = vst.msk [vmem:[#allocation2 + $0x189] sm:$0xff] %vm372_vm1, %v371_v47 }
 0x12d   : > { %v4350_v29 = vpop.f32.mrf.mxu0  ;;  %v878_v5 = vadd.f32 %v877_v21, %v4058_v12 }
 0x12e   : > { %v4346_v24 = vadd.f32 %v1398_v33, %v1198_v7  ;;  %3353 = vmatmul.msk.f32.gmra.mxu0 %vm372_vm1, %v3778_v18 }
 0x12f   : > { %3252 = vmatmul.msk.f32.gmra.mxu1 %vm372_vm1, %v1245_v17  ;;  %v970_v17 = vld [vmem:[#allocation2 + $0x142] sm:$0xff] }
 0x130   : > { %3286 = vmatmul.msk.f32.gmra.mxu2 %vm372_vm1, %v969_v37  ;;  %v971_v37 = vld [vmem:[#allocation2 + $0x152] sm:$0xff] }
 0x131   : > { %3320 = vmatmul.msk.f32.gmra.mxu3 %vm372_vm1, %v1247_v4 }
 0x133   : > { %v1123_v40 = vpop.f32.mrf.mxu2 }
 0x134   : > { %v1199_v33 = vadd.f32 %v1123_v40, %v878_v5  ;;  %v880_v27 = vpop.f32.mrf.mxu1  ;;  %v1401_v34 = vpop.f32.mrf.mxu3  ;;  %v1249_v5 = vld [vmem:[#allocation2 + $0x168] sm:$0xff] }
 0x135   : > { %v4361_v63 = vpop.f32.mrf.mxu0  ;;  %v881_v12 = vadd.f32 %v880_v27, %v4078_v25  ;;  %v972_v27 = vld [vmem:[#allocation2 + $0x15a] sm:$0xff] }
 0x136   : > { %v4357_v13 = vadd.f32 %v1401_v34, %v1199_v33  ;;  %3354 = vmatmul.msk.f32.gmra.mxu0 %vm372_vm1, %v3806_v23 }
 0x137   : > { %3253 = vmatmul.msk.f32.gmra.mxu1 %vm372_vm1, %v1246_v22 }
 0x138   : > { %3287 = vmatmul.msk.f32.gmra.mxu2 %vm372_vm1, %v970_v17  ;;  %v1250_v17 = vld [vmem:[#allocation2 + $0x170] sm:$0xff] }
 0x139   : > { %3321 = vmatmul.msk.f32.gmra.mxu3 %vm372_vm1, %v1248_v20 }
 0x13b   : > { %v1126_v18 = vpop.f32.mrf.mxu2 }
 0x13c   : > { %v1200_v1 = vadd.f32 %v1126_v18, %v881_v12  ;;  %v883_v7 = vpop.f32.mrf.mxu1  ;;  %v1404_v21 = vpop.f32.mrf.mxu3 }
 0x13d   : > { %v4371_v22 = vpop.f32.mrf.mxu0  ;;  %v884_v25 = vadd.f32 %v883_v7, %v4098_v35  ;;  %v973_v7 = vld [vmem:[#allocation2 + $0x16a] sm:$0xff] }
 0x13e   : > { %v4367_v15 = vadd.f32 %v1404_v21, %v1200_v1  ;;  %3355 = vmatmul.msk.f32.gmra.mxu0 %vm372_vm1, %v3850_v30 }
 0x13f   : > { %3254 = vmatmul.msk.f32.gmra.mxu1 %vm372_vm1, %v1247_v4 }
 0x140   : > { %3288 = vmatmul.msk.f32.gmra.mxu2 %vm372_vm1, %v971_v37  ;;  %v1251_v37 = vld [vmem:[#allocation2 + $0x180] sm:$0xff] }
 0x141   : > { %3322 = vmatmul.msk.f32.gmra.mxu3 %vm372_vm1, %v1249_v5 }
 0x143   : > { %v1129_v47 = vpop.f32.mrf.mxu2 }
 0x144   : > { %v1201_v23 = vadd.f32 %v1129_v47, %v884_v25  ;;  %v886_v40 = vpop.f32.mrf.mxu1  ;;  %v1407_v33 = vpop.f32.mrf.mxu3 }
 0x145   : > { %v4381_v4 = vpop.f32.mrf.mxu0  ;;  %v887_v35 = vadd.f32 %v886_v40, %v4118_v44  ;;  %v974_v40 = vld [vmem:[#allocation2 + $0x172] sm:$0xff] }
 0x146   : > { %v4377_v34 = vadd.f32 %v1407_v33, %v1201_v23  ;;  %3356 = vmatmul.msk.f32.gmra.mxu0 %vm372_vm1, %v3887_v36 }
 0x147   : > { %3255 = vmatmul.msk.f32.gmra.mxu1 %vm372_vm1, %v1248_v20 }
 0x148   : > { %3289 = vmatmul.msk.f32.gmra.mxu2 %vm372_vm1, %v972_v27  ;;  %v1252_v27 = vld [vmem:[#allocation2 + $0x188] sm:$0xff] }
 0x149   : > { %3323 = vmatmul.msk.f32.gmra.mxu3 %vm372_vm1, %v1250_v17 }
 0x14b   : > { %v1132_v12 = vpop.f32.mrf.mxu2 }
 0x14c   : > { %v1202_v30 = vadd.f32 %v1132_v12, %v887_v35  ;;  %v889_v18 = vpop.f32.mrf.mxu1  ;;  %v1410_v1 = vpop.f32.mrf.mxu3 }
 0x14d   : > { %v4391_v20 = vpop.f32.mrf.mxu0  ;;  %v890_v44 = vadd.f32 %v889_v18, %v4136_v26  ;;  %v1529_v26 = vld [vmem:[#allocation2 + $0x181] sm:$0xff] }
 0x14e   : > { %v4387_v21 = vadd.f32 %v1410_v1, %v1202_v30  ;;  %3357 = vmatmul.msk.f32.gmra.mxu0 %vm372_vm1, %v3917_v41 }
 0x14f   : > { %3256 = vmatmul.msk.f32.gmra.mxu1 %vm372_vm1, %v1249_v5 }
 0x150   : > { %3290 = vmatmul.msk.f32.gmra.mxu2 %vm372_vm1, %v973_v7  ;;  %v2334_v7 = vld [vmem:[#allocation2 + $0x31] sm:$0xff] }
 0x151   : > { %3324 = vmatmul.msk.f32.gmra.mxu3 %vm372_vm1, %v1251_v37  ;;  %v1530_v37 = vld [vmem:[#allocation2 + $0x189] sm:$0xff] }
 0x153   : > { %v1135_v25 = vpop.f32.mrf.mxu2 }
 0x154   : > { %v1203_v36 = vadd.f32 %v1135_v25, %v890_v44  ;;  %v892_v47 = vpop.f32.mrf.mxu1  ;;  %v1413_v23 = vpop.f32.mrf.mxu3 }
 0x155   : > { %v4401_v5 = vpop.f32.mrf.mxu0  ;;  %v893_v35 = vadd.f32 %v892_v47, %v4156_v45 }
 0x156   : > { %v4397_v33 = vadd.f32 %v1413_v23, %v1203_v36  ;;  %3358 = vmatmul.msk.f32.gmra.mxu0 %vm372_vm1, %v1529_v26 }
 0x157   : > { %3257 = vmatmul.msk.f32.gmra.mxu1 %vm372_vm1, %v1250_v17 }
 0x158   : > { %3291 = vmatmul.msk.f32.gmra.mxu2 %vm372_vm1, %v974_v40  ;;  %v2335_v40 = vld [vmem:[#allocation2 + $0x39] sm:$0xff] }
 0x159   : > { %3325 = vmatmul.msk.f32.gmra.mxu3 %vm372_vm1, %v1252_v27 }
 0x15b   : > { %v1138_v12 = vpop.f32.mrf.mxu2 }
 0x15c   : > { %v1204_v41 = vadd.f32 %v1138_v12, %v893_v35  ;;  %v895_v30 = vpop.f32.mrf.mxu1  ;;  %v1416_v18 = vpop.f32.mrf.mxu3 }
 0x15d   : > { %v4412_v17 = vpop.f32.mrf.mxu0  ;;  %v896_v45 = vadd.f32 %v895_v30, %v4034_v3 }
 0x15e   : > { %v4406_v1 = vadd.f32 %v1416_v18, %v1204_v41  ;;  %3359 = vmatmul.msk.f32.gmra.mxu0 %vm372_vm1, %v1530_v37  ;;  %v2336_v41 = vld [vmem:[#allocation2 + $0x49] sm:$0xff] }
 0x15f   : > { %3362 = vmatmul.msk.f32.vlgmr.msra.gmra.mxu1 %vm372_vm1, %v3950_v6 }
 0x160   : > { %3396 = vmatmul.msk.f32.vlgmr.msra.gmra.mxu2 %vm372_vm1, %v3952_v50 }
 0x161   : > { %3430 = vmatmul.msk.f32.vlgmr.msra.gmra.mxu3 %vm372_vm1, %v2334_v7 }
 0x163   : > { %v1141_v44 = vpop.f32.mrf.mxu2 }
 0x164   : > { %v1205_v25 = vadd.f32 %v1141_v44, %v896_v45  ;;  %v898_v36 = vpop.f32.mrf.mxu1  ;;  %v1419_v47 = vpop.f32.mrf.mxu3 }
 0x165   : > { %v4423_v6 = vpop.f32.mrf.mxu0  ;;  %v899_v50 = vadd.f32 %v898_v36, %v4054_v38 }
 0x166   : > { %v4417_v23 = vadd.f32 %v1419_v47, %v1205_v25  ;;  %3464 = vmatmul.msk.f32.vlgmr.msra.gmra.mxu0 %vm372_vm1, %v3972_v52 }
 0x167   : > { %3363 = vmatmul.msk.f32.gmra.mxu1 %vm372_vm1, %v3961_v51 }
 0x168   : > { %3397 = vmatmul.msk.f32.gmra.mxu2 %vm372_vm1, %v3963_v53 }
 0x169   : > { %3431 = vmatmul.msk.f32.gmra.mxu3 %vm372_vm1, %v2335_v40 }
 0x16b   : > { %v1144_v3 = vpop.f32.mrf.mxu2 }
 0x16c   : > { %v1206_v27 = vadd.f32 %v1144_v3, %v899_v50  ;;  %v901_v26 = vpop.f32.mrf.mxu1  ;;  %v1422_v35 = vpop.f32.mrf.mxu3 }
 0x16d   : > { %v4435_v51 = vpop.f32.mrf.mxu0  ;;  %v902_v53 = vadd.f32 %v901_v26, %v4074_v62 }
 0x16e   : > { %v4429_v12 = vadd.f32 %v1422_v35, %v1206_v27  ;;  %3465 = vmatmul.msk.f32.gmra.mxu0 %vm372_vm1, %v3984_v55  ;;  %v2339_v27 = vld [vmem:[#allocation2 + $0x69] sm:$0xff] }
 0x16f   : > { %3364 = vmatmul.msk.f32.gmra.mxu1 %vm372_vm1, %v3972_v52 }
 0x170   : > { %3398 = vmatmul.msk.f32.gmra.mxu2 %vm372_vm1, %v3974_v54 }
 0x171   : > { %3432 = vmatmul.msk.f32.gmra.mxu3 %vm372_vm1, %v2336_v41 }
 0x173   : > { %v1147_v38 = vpop.f32.mrf.mxu2 }
 0x174   : > { %v1207_v30 = vadd.f32 %v1147_v38, %v902_v53  ;;  %v904_v18 = vpop.f32.mrf.mxu1  ;;  %v1425_v7 = vpop.f32.mrf.mxu3  ;;  %v2340_v38 = vld [vmem:[#allocation2 + $0x79] sm:$0xff] }
 0x175   : > { %v4447_v52 = vpop.f32.mrf.mxu0  ;;  %v905_v54 = vadd.f32 %v904_v18, %v4094_v16 }
 0x176   : > { %v4441_v37 = vadd.f32 %v1425_v7, %v1207_v30  ;;  %3466 = vmatmul.msk.f32.gmra.mxu0 %vm372_vm1, %v3996_v57 }
 0x177   : > { %3365 = vmatmul.msk.f32.gmra.mxu1 %vm372_vm1, %v3984_v55  ;;  %v2338_v55 = vld [vmem:[#allocation2 + $0x61] sm:$0xff] }
 0x178   : > { %3399 = vmatmul.msk.f32.gmra.mxu2 %vm372_vm1, %v3986_v56 }
 0x179   : > { %3433 = vmatmul.msk.f32.gmra.mxu3 %vm372_vm1, %v3941_v46 }
 0x17b   : > { %v1150_v62 = vpop.f32.mrf.mxu2 }
 0x17c   : > { %v1208_v45 = vadd.f32 %v1150_v62, %v905_v54  ;;  %v907_v44 = vpop.f32.mrf.mxu1  ;;  %v1428_v25 = vpop.f32.mrf.mxu3  ;;  %v2341_v62 = vld [vmem:[#allocation2 + $0x81] sm:$0xff] }
 0x17d   : > { %v4460_v56 = vpop.f32.mrf.mxu0  ;;  %v908_v46 = vadd.f32 %v907_v44, %v4112_v42 }
 0x17e   : > { %v4454_v36 = vadd.f32 %v1428_v25, %v1208_v45  ;;  %3467 = vmatmul.msk.f32.gmra.mxu0 %vm372_vm1, %v4008_v59  ;;  %v4975_v25 = vld [vmem:[#allocation6_spill] sm:$0xff] }
 0x17f   : > { %3366 = vmatmul.msk.f32.gmra.mxu1 %vm372_vm1, %v3996_v57 }
 0x180   : > { %3400 = vmatmul.msk.f32.gmra.mxu2 %vm372_vm1, %v3998_v58 }
 0x181   : > { %3434 = vmatmul.msk.f32.gmra.mxu3 %vm372_vm1, %v2338_v55 }
 0x183   : > { %v1153_v16 = vpop.f32.mrf.mxu2 }
 0x184   : > { %v1209_v47 = vadd.f32 %v1153_v16, %v908_v46  ;;  %v910_v40 = vpop.f32.mrf.mxu1  ;;  %v1431_v50 = vpop.f32.mrf.mxu3 }
 0x185   : > { %v4472_v57 = vpop.f32.mrf.mxu0  ;;  %v911_v58 = vadd.f32 %v910_v40, %v4132_v49  ;;  %v2342_v40 = vld [vmem:[#allocation2 + $0x91] sm:$0xff] }
 0x186   : > { %v4466_v3 = vadd.f32 %v1431_v50, %v1209_v47  ;;  %3468 = vmatmul.msk.f32.gmra.mxu0 %vm372_vm1, %v4024_v0 }
 0x187   : > { %3367 = vmatmul.msk.f32.gmra.mxu1 %vm372_vm1, %v4008_v59 }
 0x188   : > { %3401 = vmatmul.msk.f32.gmra.mxu2 %vm372_vm1, %v4010_v60 }
 0x189   : > { %3435 = vmatmul.msk.f32.gmra.mxu3 %vm372_vm1, %v2339_v27  ;;  %v4977_v27 = vld [vmem:[#allocation3_spill] sm:$0xff] }
 0x18b   : > { %v1156_v42 = vpop.f32.mrf.mxu2 }
 0x18c   : > { %v1210_v26 = vadd.f32 %v1156_v42, %v911_v58  ;;  %v913_v35 = vpop.f32.mrf.mxu1  ;;  %v1434_v41 = vpop.f32.mrf.mxu3 }
 0x18d   : > { %v4484_v59 = vpop.f32.mrf.mxu0  ;;  %v914_v60 = vadd.f32 %v913_v35, %v4152_v32  ;;  %v4974_v32 = vld [vmem:[#allocation22_spill] sm:$0xff] }
 0x18e   : > { %v4478_v53 = vadd.f32 %v1434_v41, %v1210_v26  ;;  %3469 = vmatmul.msk.f32.gmra.mxu0 %vm372_vm1, %v4042_v9  ;;  %v4978_v26 = vld [vmem:[#allocation9_spill] sm:$0xff] }
 0x18f   : > { %3368 = vmatmul.msk.f32.gmra.mxu1 %vm372_vm1, %v4024_v0  ;;  %v4973_v0 = vld [vmem:[#allocation4_spill] sm:$0xff] }
 0x190   : > { %3402 = vmatmul.msk.f32.gmra.mxu2 %vm372_vm1, %v4026_v2 }
 0x191   : > { %3436 = vmatmul.msk.f32.gmra.mxu3 %vm372_vm1, %v2340_v38 }
 0x193   : > { %v1159_v49 = vpop.f32.mrf.mxu2 }
 0x194   : > { %v1211_v30 = vadd.f32 %v1159_v49, %v914_v60  ;;  %v916_v18 = vpop.f32.mrf.mxu1  ;;  %v1437_v7 = vpop.f32.mrf.mxu3  ;;  %v2343_v49 = vld [vmem:[#allocation2 + $0x99] sm:$0xff] }
 0x195   : > { %v4496_v2 = vpop.f32.mrf.mxu0  ;;  %v917_v45 = vadd.f32 %v916_v18, %v4974_v32  ;;  %v4981_v32 = vld [vmem:[#allocation12_spill] sm:$0xff] }
 0x196   : > { %v4490_v54 = vadd.f32 %v1437_v7, %v1211_v30  ;;  %3470 = vmatmul.msk.f32.gmra.mxu0 %vm372_vm1, %v4975_v25  ;;  %v4979_v30 = vld [vmem:[#allocation10_spill] sm:$0xff]  ;;  %v4980_v7 = vld [vmem:[#allocation5_spill] sm:$0xff] }
 0x197   : > { %3369 = vmatmul.msk.f32.gmra.mxu1 %vm372_vm1, %v4042_v9  ;;  %v4976_v9 = vld [vmem:[#allocation7_spill] sm:$0xff] }
 0x198   : > { %3403 = vmatmul.msk.f32.gmra.mxu2 %vm372_vm1, %v4973_v0 }
 0x199   : > { %3437 = vmatmul.msk.f32.gmra.mxu3 %vm372_vm1, %v2341_v62 }
 0x19b   : > { %v1162_v44 = vpop.f32.mrf.mxu2 }
 0x19c   : > { %v1212_v55 = vadd.f32 %v1162_v44, %v917_v45  ;;  %v919_v46 = vpop.f32.mrf.mxu1  ;;  %v1440_v16 = vpop.f32.mrf.mxu3 }
 0x19d   : > { %v4508_v50 = vpop.f32.mrf.mxu0  ;;  %v920_v58 = vadd.f32 %v919_v46, %v4977_v27  ;;  %v2344_v46 = vld [vmem:[#allocation2 + $0xa9] sm:$0xff] }
 0x19e   : > { %v4502_v47 = vadd.f32 %v1440_v16, %v1212_v55  ;;  %3471 = vmatmul.msk.f32.gmra.mxu0 %vm372_vm1, %v4978_v26  ;;  %v4982_v16 = vld [vmem:[#allocation13_spill] sm:$0xff] }
 0x19f   : > { %3370 = vmatmul.msk.f32.gmra.mxu1 %vm372_vm1, %v4975_v25 }
 0x1a0   : > { %3404 = vmatmul.msk.f32.gmra.mxu2 %vm372_vm1, %v4976_v9  ;;  %v4983_v9 = vld [vmem:[#allocation8_spill] sm:$0xff] }
 0x1a1   : > { %3438 = vmatmul.msk.f32.gmra.mxu3 %vm372_vm1, %v2342_v40 }
 0x1a3   : > { %v1165_v42 = vpop.f32.mrf.mxu2 }
 0x1a4   : > { %v1213_v35 = vadd.f32 %v1165_v42, %v920_v58  ;;  %v922_v41 = vpop.f32.mrf.mxu1  ;;  %v1443_v38 = vpop.f32.mrf.mxu3  ;;  %v4984_v42 = vld [vmem:[#allocation15_spill] sm:$0xff] }
 0x1a5   : > { %v4520_v18 = vpop.f32.mrf.mxu0  ;;  %v923_v62 = vadd.f32 %v922_v41, %v4980_v7 }
 0x1a6   : > { %v4514_v60 = vadd.f32 %v1443_v38, %v1213_v35  ;;  %3472 = vmatmul.msk.f32.gmra.mxu0 %vm372_vm1, %v4981_v32 }
 0x1a7   : > { %3371 = vmatmul.msk.f32.gmra.mxu1 %vm372_vm1, %v4978_v26 }
 0x1a8   : > { %3405 = vmatmul.msk.f32.gmra.mxu2 %vm372_vm1, %v4979_v30  ;;  %v4985_v30 = vld [vmem:[#allocation16_spill] sm:$0xff] }
 0x1a9   : > { %3439 = vmatmul.msk.f32.gmra.mxu3 %vm372_vm1, %v2343_v49  ;;  %v2345_v49 = vld [vmem:[#allocation2 + $0xb1] sm:$0xff] }
 0x1ab   : > { %v1168_v0 = vpop.f32.mrf.mxu2 }
 0x1ac   : > { %v1214_v45 = vadd.f32 %v1168_v0, %v923_v62  ;;  %v925_v44 = vpop.f32.mrf.mxu1  ;;  %v1446_v25 = vpop.f32.mrf.mxu3  ;;  %v4986_v62 = vld [vmem:[#allocation11_spill] sm:$0xff] }
 0x1ad   : > { %v4532_v40 = vpop.f32.mrf.mxu0  ;;  %v926_v27 = vadd.f32 %v925_v44, %v4983_v9  ;;  %v2346_v9 = vld [vmem:[#allocation2 + $0xc1] sm:$0xff] }
 0x1ae   : > { %v4526_v55 = vadd.f32 %v1446_v25, %v1214_v45  ;;  %3473 = vmatmul.msk.f32.gmra.mxu0 %vm372_vm1, %v4984_v42  ;;  %v4987_v45 = vld [vmem:[#allocation18_spill] sm:$0xff] }
 0x1af   : > { %3372 = vmatmul.msk.f32.gmra.mxu1 %vm372_vm1, %v4981_v32 }
 0x1b0   : > { %3406 = vmatmul.msk.f32.gmra.mxu2 %vm372_vm1, %v4982_v16 }
 0x1b1   : > { %3440 = vmatmul.msk.f32.gmra.mxu3 %vm372_vm1, %v2344_v46 }
 0x1b3   : > { %v1171_v58 = vpop.f32.mrf.mxu2 }
 0x1b4   : > { %v1215_v26 = vadd.f32 %v1171_v58, %v926_v27  ;;  %v928_v35 = vpop.f32.mrf.mxu1  ;;  %v1449_v41 = vpop.f32.mrf.mxu3  ;;  %v4988_v27 = vld [vmem:[#allocation19_spill] sm:$0xff] }
 0x1b5   : > { %v4544_v7 = vpop.f32.mrf.mxu0  ;;  %v929_v0 = vadd.f32 %v928_v35, %v4986_v62 }
 0x1b6   : > { %v4538_v38 = vadd.f32 %v1449_v41, %v1215_v26  ;;  %3474 = vmatmul.msk.f32.gmra.mxu0 %vm372_vm1, %v4987_v45  ;;  %v4990_v41 = vld [vmem:[#allocation21_spill] sm:$0xff] }
 0x1b7   : > { %3373 = vmatmul.msk.f32.gmra.mxu1 %vm372_vm1, %v4984_v42  ;;  %v4989_v42 = vld [vmem:[#allocation14_spill] sm:$0xff] }
 0x1b8   : > { %3407 = vmatmul.msk.f32.gmra.mxu2 %vm372_vm1, %v4985_v30 }
 0x1b9   : > { %3441 = vmatmul.msk.f32.gmra.mxu3 %vm372_vm1, %v2345_v49 }
 0x1bb   : > { %v1174_v32 = vpop.f32.mrf.mxu2 }
 0x1bc   : > { %v1216_v44 = vadd.f32 %v1174_v32, %v929_v0  ;;  %v931_v25 = vpop.f32.mrf.mxu1  ;;  %v1452_v46 = vpop.f32.mrf.mxu3  ;;  %v2347_v32 = vld [vmem:[#allocation2 + $0xc9] sm:$0xff] }
 0x1bd   : > { %v4556_v58 = vpop.f32.mrf.mxu0  ;;  %v932_v26 = vadd.f32 %v931_v25, %v4989_v42 }
 0x1be   : > { %v4550_v16 = vadd.f32 %v1452_v46, %v1216_v44  ;;  %3475 = vmatmul.msk.f32.gmra.mxu0 %vm372_vm1, %v4990_v41  ;;  %v4991_v44 = vld [vmem:[#allocation17_spill] sm:$0xff] }
 0x1bf   : > { %3374 = vmatmul.msk.f32.gmra.mxu1 %vm372_vm1, %v4987_v45 }
 0x1c0   : > { %3408 = vmatmul.msk.f32.gmra.mxu2 %vm372_vm1, %v4988_v27 }
 0x1c1   : > { %3442 = vmatmul.msk.f32.gmra.mxu3 %vm372_vm1, %v2346_v9  ;;  %v4992_v9 = vld [vmem:[#allocation24_spill] sm:$0xff] }
 0x1c3   : > { %v1177_v35 = vpop.f32.mrf.mxu2 }
 0x1c4   : > { %v1217_v49 = vadd.f32 %v1177_v35, %v932_v26  ;;  %v934_v30 = vpop.f32.mrf.mxu1  ;;  %v1455_v62 = vpop.f32.mrf.mxu3 }
 0x1c5   : > { %v4568_v45 = vpop.f32.mrf.mxu0  ;;  %v935_v25 = vadd.f32 %v934_v30, %v4991_v44 }
 0x1c6   : > { %v4562_v0 = vadd.f32 %v1455_v62, %v1217_v49  ;;  %3476 = vmatmul.msk.f32.gmra.mxu0 %vm372_vm1, %v4992_v9  ;;  %v2348_v49 = vld [vmem:[#allocation2 + $0xd9] sm:$0xff] }
 0x1c7   : > { %3375 = vmatmul.msk.f32.gmra.mxu1 %vm372_vm1, %v4990_v41  ;;  %v4993_v41 = vld [vmem:[#allocation20_spill] sm:$0xff] }
 0x1c8   : > { %3409 = vmatmul.msk.f32.gmra.mxu2 %vm372_vm1, %v4162_v31 }
 0x1c9   : > { %3443 = vmatmul.msk.f32.gmra.mxu3 %vm372_vm1, %v2347_v32 }
 0x1cb   : > { %v1180_v46 = vpop.f32.mrf.mxu2 }
 0x1cc   : > { %v1218_v27 = vadd.f32 %v1180_v46, %v935_v25  ;;  %v937_v42 = vpop.f32.mrf.mxu1  ;;  %v1458_v26 = vpop.f32.mrf.mxu3 }
 0x1cd   : > { %v4580_v31 = vpop.f32.mrf.mxu0  ;;  %v938_v30 = vadd.f32 %v937_v42, %v4993_v41 }
 0x1ce   : > { %v4574_v35 = vadd.f32 %v1458_v26, %v1218_v27  ;;  %3477 = vmatmul.msk.f32.gmra.mxu0 %vm372_vm1, %v4193_v39  ;;  %v2349_v27 = vld [vmem:[#allocation2 + $0xe1] sm:$0xff] }
 0x1cf   : > { %3376 = vmatmul.msk.f32.gmra.mxu1 %vm372_vm1, %v4992_v9  ;;  %v4995_v9 = vld [vmem:[#allocation23_spill] sm:$0xff] }
 0x1d0   : > { %3410 = vmatmul.msk.f32.gmra.mxu2 %vm372_vm1, %v4180_v8 }
 0x1d1   : > { %3444 = vmatmul.msk.f32.gmra.mxu3 %vm372_vm1, %v2348_v49 }
 0x1d3   : > { %v1183_v62 = vpop.f32.mrf.mxu2 }
 0x1d4   : > { %v1219_v32 = vadd.f32 %v1183_v62, %v938_v30  ;;  %v940_v44 = vpop.f32.mrf.mxu1  ;;  %v1461_v25 = vpop.f32.mrf.mxu3 }
 0x1d5   : > { %v4592_v8 = vpop.f32.mrf.mxu0  ;;  %v941_v42 = vadd.f32 %v940_v44, %v4995_v9 }
 0x1d6   : > { %v4586_v46 = vadd.f32 %v1461_v25, %v1219_v32  ;;  %4994 = vst [vmem:[#allocation4_spill] sm:$0xff] %v4592_v8  ;;  %3478 = vmatmul.msk.f32.gmra.mxu0 %vm372_vm1, %v4210_v19  ;;  %v2350_v32 = vld [vmem:[#allocation2 + $0xf1] sm:$0xff] }
 0x1d7   : > { %3377 = vmatmul.msk.f32.gmra.mxu1 %vm372_vm1, %v4193_v39  ;;  %v4998_v39 = vld [vmem:[#allocation26_spill] sm:$0xff] }
 0x1d8   : > { %3411 = vmatmul.msk.f32.gmra.mxu2 %vm372_vm1, %v4197_v11  ;;  %v4997_v11 = vld [vmem:[#allocation25_spill] sm:$0xff] }
 0x1d9   : > { %3445 = vmatmul.msk.f32.gmra.mxu3 %vm372_vm1, %v2349_v27  ;;  %v1745_v25 = vadd.f32 %v4998_v39, %v4997_v11  ;;  %v5000_v11 = vld [vmem:[#allocation27_spill] sm:$0xff]  ;;  %v5001_v39 = vld [vmem:[#allocation28_spill] sm:$0xff] }
 0x1db   : > { %v1186_v26 = vpop.f32.mrf.mxu2 }
 0x1dc   : > { %v1220_v49 = vadd.f32 %v1186_v26, %v941_v42  ;;  %v1464_v41 = vpop.f32.mrf.mxu3  ;;  %v1927_v30 = vpop.f32.mrf.mxu1 }
 0x1dd   : > { %v4606_v44 = vpop.f32.mrf.mxu0  ;;  %v2023_v27 = vadd.f32 %v1927_v30, %v1745_v25 }
 0x1de   : > { %v4598_v62 = vadd.f32 %v1464_v41, %v1220_v49  ;;  %4999 = vst [vmem:[#allocation6_spill] sm:$0xff] %v4606_v44  ;;  %3479 = vmatmul.msk.f32.gmra.mxu0 %vm372_vm1, %v4227_v48  ;;  %v2351_v41 = vld [vmem:[#allocation2 + $0xf9] sm:$0xff] }
 0x1df   : > { %3378 = vmatmul.msk.f32.gmra.mxu1 %vm372_vm1, %v4210_v19 }
 0x1e0   : > { %4996 = vst [vmem:[#allocation22_spill] sm:$0xff] %v4598_v62  ;;  %3412 = vmatmul.msk.f32.gmra.mxu2 %vm372_vm1, %v4214_v28  ;;  %v1746_v28 = vadd.f32 %v5001_v39, %v5000_v11  ;;  %v5002_v11 = vld [vmem:[#allocation29_spill] sm:$0xff]  ;;  %v5003_v39 = vld [vmem:[#allocation30_spill] sm:$0xff] }
 0x1e1   : > { %3446 = vmatmul.msk.f32.gmra.mxu3 %vm372_vm1, %v2350_v32  ;;  %v5006_v62 = vld [vmem:[#allocation34_spill] sm:$0xff] }
 0x1e3   : > { %v2206_v9 = vpop.f32.mrf.mxu2 }
 0x1e4   : > { %v2302_v42 = vadd.f32 %v2206_v9, %v2023_v27  ;;  %v1930_v26 = vpop.f32.mrf.mxu1  ;;  %v2484_v49 = vpop.f32.mrf.mxu3 }
 0x1e5   : > { %v2762_v30 = vpop.f32.mrf.mxu0  ;;  %v2024_v32 = vadd.f32 %v1930_v26, %v1746_v28 }
 0x1e6   : > { %v2580_v19 = vadd.f32 %v2484_v49, %v2302_v42  ;;  %3480 = vmatmul.msk.f32.gmra.mxu0 %vm372_vm1, %v4244_v14  ;;  %v2352_v49 = vld [vmem:[#allocation2 + $0x109] sm:$0xff] }
 0x1e7   : > { %3379 = vmatmul.msk.f32.gmra.mxu1 %vm372_vm1, %v4227_v48 }
 0x1e8   : > { %3413 = vmatmul.msk.f32.gmra.mxu2 %vm372_vm1, %v4231_v61  ;;  %v2858_v25 = vadd.f32 %v2762_v30, %v2580_v19 }
 0x1e9   : > { %3447 = vmatmul.msk.f32.gmra.mxu3 %vm372_vm1, %v2351_v41  ;;  %v1747_v41 = vadd.f32 %v5003_v39, %v5002_v11 }
 0x1ea   : > { %2890 = vst.msk [vmem:[%s4622_s29] sm:$0xff] %vm372_vm1, %v2858_v25  ;;  %v2991_v19 = vmul.f32 %v2858_v25, %v2858_v25 }
 0x1eb   : > { %v2209_v27 = vpop.f32.mrf.mxu2 }
 0x1ec   : > { %v2303_v61 = vadd.f32 %v2209_v27, %v2024_v32  ;;  %v1933_v48 = vpop.f32.mrf.mxu1  ;;  %v2487_v9 = vpop.f32.mrf.mxu3  ;;  %v2922_v27 = vsel %vm372_vm1, %v2858_v25, 0.0 }
 0x1ed   : > { %v2765_v26 = vpop.f32.mrf.mxu0  ;;  %v2025_v28 = vadd.f32 %v1933_v48, %v1747_v41  ;;  %v2353_v41 = vld [vmem:[#allocation2 + $0x111] sm:$0xff] }
 0x1ee   : > { %v2581_v42 = vadd.f32 %v2487_v9, %v2303_v61  ;;  %3481 = vmatmul.msk.f32.gmra.mxu0 %vm372_vm1, %v4261_v43 }
 0x1ef   : > { %3380 = vmatmul.msk.f32.gmra.mxu1 %vm372_vm1, %v4244_v14 }
 0x1f0   : > { %3414 = vmatmul.msk.f32.gmra.mxu2 %vm372_vm1, %v4248_v10  ;;  %v2859_v30 = vadd.f32 %v2765_v26, %v2581_v42  ;;  %v5004_v26 = vld [vmem:[#allocation31_spill] sm:$0xff] }
 0x1f1   : > { %3448 = vmatmul.msk.f32.gmra.mxu3 %vm372_vm1, %v2352_v49  ;;  %v3023_v49 = vsel %vm372_vm1, %v2991_v19, 0.0 }
 0x1f2   : > { %2891 = vst.msk [vmem:[%s4622_s29 + $0x8] sm:$0xff] %vm372_vm1, %v2859_v30  ;;  %v2923_v61 = vsel %vm372_vm1, %v2859_v30, 0.0  ;;  %v2992_v14 = vmul.f32 %v2859_v30, %v2859_v30  ;;  %v5005_v30 = vld [vmem:[#allocation32_spill] sm:$0xff] }
 0x1f3   : > { %v2212_v32 = vpop.f32.mrf.mxu2  ;;  %v2924_v39 = vadd.f32 %v2923_v61, %v2922_v27  ;;  %v1748_v44 = vadd.f32 %v5005_v30, %v5004_v26  ;;  %v5010_v30 = vld [vmem:[#allocation38_spill] sm:$0xff] }
 0x1f4   : > { %v2304_v9 = vadd.f32 %v2212_v32, %v2025_v28  ;;  %v1936_v11 = vpop.f32.mrf.mxu1  ;;  %v2490_v10 = vpop.f32.mrf.mxu3  ;;  %v3024_v48 = vsel %vm372_vm1, %v2992_v14, 0.0 }
 0x1f5   : > { %v3025_v25 = vadd.f32 %v3024_v48, %v3023_v49  ;;  %v2768_v28 = vpop.f32.mrf.mxu0  ;;  %v2026_v32 = vadd.f32 %v1936_v11, %v1748_v44  ;;  %v5008_v44 = vld [vmem:[#allocation33_spill] sm:$0xff]  ;;  %v5009_v11 = vld [vmem:[#allocation35_spill] sm:$0xff] }
 0x1f6   : > { %v2582_v42 = vadd.f32 %v2490_v10, %v2304_v9  ;;  %v5007_v9 = vld [vmem:[#allocation36_spill] sm:$0xff] }
 0x1f7   : > { %3381 = vmatmul.msk.f32.gmra.mxu1 %vm372_vm1, %v4261_v43  ;;  %3482 = vmatmul.msk.f32.gmra.mxu0 %vm372_vm1, %v5007_v9 }
 0x1f8   : > { %3415 = vmatmul.msk.f32.gmra.mxu2 %vm372_vm1, %v5006_v62  ;;  %v2860_v27 = vadd.f32 %v2768_v28, %v2582_v42  ;;  %v1749_v42 = vadd.f32 %v5009_v11, %v5008_v44  ;;  %v2077_v11 = vld [vmem:[#allocation2 + $0x128] sm:$0xff] }
 0x1f9   : > { %3449 = vmatmul.msk.f32.gmra.mxu3 %vm372_vm1, %v2353_v41 }
 0x1fa   : > { %2892 = vst.msk [vmem:[%s4622_s29 + $0x10] sm:$0xff] %vm372_vm1, %v2860_v27  ;;  %v2925_v61 = vsel %vm372_vm1, %v2860_v27, 0.0  ;;  %v2993_v14 = vmul.f32 %v2860_v27, %v2860_v27  ;;  %v5011_v27 = vld [vmem:[#allocation43_spill] sm:$0xff] }
 0x1fb   : > { %v2215_v19 = vpop.f32.mrf.mxu2  ;;  %v2926_v48 = vadd.f32 %v2925_v61, %v2924_v39 }
 0x1fc   : > { %v2305_v43 = vadd.f32 %v2215_v19, %v2026_v32  ;;  %v1939_v10 = vpop.f32.mrf.mxu1  ;;  %v2493_v49 = vpop.f32.mrf.mxu3  ;;  %v3026_v62 = vsel %vm372_vm1, %v2993_v14, 0.0  ;;  %v5012_v14 = vld [vmem:[#allocation40_spill] sm:$0xff] }
 0x1fd   : > { %v3027_v41 = vadd.f32 %v3026_v62, %v3025_v25  ;;  %v2771_v28 = vpop.f32.mrf.mxu0  ;;  %v2027_v32 = vadd.f32 %v1939_v10, %v1749_v42  ;;  %v1798_v62 = vld [vmem:[#allocation2 + $0x112] sm:$0xff]  ;;  %v5013_v42 = vld [vmem:[#allocation37_spill] sm:$0xff] }
 0x1fe   : > { %v2583_v26 = vadd.f32 %v2493_v49, %v2305_v43 }
 0x1ff   : > { %3382 = vmatmul.msk.f32.gmra.mxu1 %vm372_vm1, %v5007_v9  ;;  %3483 = vmatmul.msk.f32.gmra.mxu0 %vm372_vm1, %v5012_v14  ;;  %v5015_v14 = vld [vmem:[#allocation47_spill] sm:$0xff] }
 0x200   : > { %3416 = vmatmul.msk.f32.gmra.mxu2 %vm372_vm1, %v5010_v30  ;;  %v2861_v19 = vadd.f32 %v2771_v28, %v2583_v26  ;;  %v5014_v28 = vld [vmem:[#allocation39_spill] sm:$0xff] }
 0x201   : > { %3450 = vmatmul.msk.f32.gmra.mxu3 %vm372_vm1, %v5011_v27  ;;  %v1750_v27 = vadd.f32 %v5014_v28, %v5013_v42 }
 0x202   : > { %2893 = vst.msk [vmem:[%s4622_s29 + $0x18] sm:$0xff] %vm372_vm1, %v2861_v19  ;;  %v2927_v25 = vsel %vm372_vm1, %v2861_v19, 0.0  ;;  %v2994_v61 = vmul.f32 %v2861_v19, %v2861_v19 }
 0x203   : > { %v2218_v39 = vpop.f32.mrf.mxu2  ;;  %v2928_v44 = vadd.f32 %v2927_v25, %v2926_v48 }
 0x204   : > { %v2306_v9 = vadd.f32 %v2218_v39, %v2027_v32  ;;  %v1942_v43 = vpop.f32.mrf.mxu1  ;;  %v2496_v49 = vpop.f32.mrf.mxu3  ;;  %v3028_v30 = vsel %vm372_vm1, %v2994_v61, 0.0 }
 0x205   : > { %v3029_v26 = vadd.f32 %v3028_v30, %v3027_v41  ;;  %v2774_v19 = vpop.f32.mrf.mxu0  ;;  %v2028_v32 = vadd.f32 %v1942_v43, %v1750_v27  ;;  %v5016_v41 = vld [vmem:[#allocation44_spill] sm:$0xff]  ;;  %v5017_v27 = vld [vmem:[#allocation41_spill] sm:$0xff] }
 0x206   : > { %v2584_v10 = vadd.f32 %v2496_v49, %v2306_v9  ;;  %v2078_v30 = vld [vmem:[#allocation2 + $0x138] sm:$0xff] }
 0x207   : > { %3383 = vmatmul.msk.f32.gmra.mxu1 %vm372_vm1, %v1798_v62  ;;  %3484 = vmatmul.msk.f32.gmra.mxu0 %vm372_vm1, %v5016_v41  ;;  %v1799_v62 = vld [vmem:[#allocation2 + $0x122] sm:$0xff] }
 0x208   : > { %3417 = vmatmul.msk.f32.gmra.mxu2 %vm372_vm1, %v2077_v11  ;;  %v2862_v39 = vadd.f32 %v2774_v19, %v2584_v10  ;;  %v2356_v10 = vld [vmem:[#allocation2 + $0x139] sm:$0xff]  ;;  %v5018_v19 = vld [vmem:[#allocation42_spill] sm:$0xff] }
 0x209   : > { %3451 = vmatmul.msk.f32.gmra.mxu3 %vm372_vm1, %v5015_v14  ;;  %v1751_v14 = vadd.f32 %v5018_v19, %v5017_v27  ;;  %v2357_v27 = vld [vmem:[#allocation2 + $0x141] sm:$0xff] }
 0x20a   : > { %2894 = vst.msk [vmem:[%s4622_s29 + $0x20] sm:$0xff] %vm372_vm1, %v2862_v39  ;;  %v2929_v48 = vsel %vm372_vm1, %v2862_v39, 0.0  ;;  %v2995_v25 = vmul.f32 %v2862_v39, %v2862_v39  ;;  %v5020_v19 = vld [vmem:[#allocation46_spill] sm:$0xff] }
 0x20b   : > { %v2221_v8 = vpop.f32.mrf.mxu2  ;;  %v2930_v11 = vadd.f32 %v2929_v48, %v2928_v44 }
 0x20c   : > { %v2307_v61 = vadd.f32 %v2221_v8, %v2028_v32  ;;  %v1945_v9 = vpop.f32.mrf.mxu1  ;;  %v2499_v49 = vpop.f32.mrf.mxu3  ;;  %v3030_v42 = vsel %vm372_vm1, %v2995_v25, 0.0  ;;  %v2633_v8 = vld [vmem:[#allocation2 + $0x12a] sm:$0xff] }
 0x20d   : > { %v3031_v28 = vadd.f32 %v3030_v42, %v3029_v26  ;;  %v2777_v39 = vpop.f32.mrf.mxu0  ;;  %v2029_v32 = vadd.f32 %v1945_v9, %v1751_v14 }
 0x20e   : > { %v2585_v43 = vadd.f32 %v2499_v49, %v2307_v61 }
 0x20f   : > { %3384 = vmatmul.msk.f32.gmra.mxu1 %vm372_vm1, %v1799_v62  ;;  %3485 = vmatmul.msk.f32.gmra.mxu0 %vm372_vm1, %v2633_v8 }
 0x210   : > { %3418 = vmatmul.msk.f32.gmra.mxu2 %vm372_vm1, %v2078_v30  ;;  %v2863_v41 = vadd.f32 %v2777_v39, %v2585_v43  ;;  %v2079_v30 = vld [vmem:[#allocation2 + $0x140] sm:$0xff] }
 0x211   : > { %3452 = vmatmul.msk.f32.gmra.mxu3 %vm372_vm1, %v2356_v10  ;;  %v5019_v43 = vld [vmem:[#allocation45_spill] sm:$0xff] }
 0x212   : > { %2895 = vst.msk [vmem:[%s4622_s29 + $0x28] sm:$0xff] %vm372_vm1, %v2863_v41  ;;  %v2931_v48 = vsel %vm372_vm1, %v2863_v41, 0.0  ;;  %v2996_v25 = vmul.f32 %v2863_v41, %v2863_v41  ;;  %v1752_v14 = vadd.f32 %v5020_v19, %v5019_v43  ;;  %v2358_v43 = vld [vmem:[#allocation2 + $0x151] sm:$0xff]  ;;  %v5022_v19 = vld [vmem:[#allocation49_spill] sm:$0xff] }
 0x213   : > { %v2224_v44 = vpop.f32.mrf.mxu2  ;;  %v2932_v62 = vadd.f32 %v2931_v48, %v2930_v11 }
 0x214   : > { %v2308_v26 = vadd.f32 %v2224_v44, %v2029_v32  ;;  %v1948_v61 = vpop.f32.mrf.mxu1  ;;  %v2502_v49 = vpop.f32.mrf.mxu3  ;;  %v3032_v42 = vsel %vm372_vm1, %v2996_v25, 0.0  ;;  %v2634_v32 = vld [vmem:[#allocation2 + $0x13a] sm:$0xff] }
 0x215   : > { %v3033_v9 = vadd.f32 %v3032_v42, %v3031_v28  ;;  %v2780_v39 = vpop.f32.mrf.mxu0  ;;  %v2030_v41 = vadd.f32 %v1948_v61, %v1752_v14 }
 0x216   : > { %v2586_v10 = vadd.f32 %v2502_v49, %v2308_v26 }
 0x217   : > { %3385 = vmatmul.msk.f32.gmra.mxu1 %vm372_vm1, %v2633_v8  ;;  %3486 = vmatmul.msk.f32.gmra.mxu0 %vm372_vm1, %v2634_v32 }
 0x218   : > { %3419 = vmatmul.msk.f32.gmra.mxu2 %vm372_vm1, %v2079_v30  ;;  %v2864_v44 = vadd.f32 %v2780_v39, %v2586_v10  ;;  %v2080_v30 = vld [vmem:[#allocation2 + $0x150] sm:$0xff]  ;;  %v5021_v10 = vld [vmem:[#allocation48_spill] sm:$0xff] }
 0x219   : > { %3453 = vmatmul.msk.f32.gmra.mxu3 %vm372_vm1, %v2357_v27  ;;  %v1753_v14 = vadd.f32 %v5022_v19, %v5021_v10  ;;  %v2359_v10 = vld [vmem:[#allocation2 + $0x159] sm:$0xff] }
 0x21a   : > { %2896 = vst.msk [vmem:[%s4622_s29 + $0x30] sm:$0xff] %vm372_vm1, %v2864_v44  ;;  %v2933_v48 = vsel %vm372_vm1, %v2864_v44, 0.0  ;;  %v2997_v25 = vmul.f32 %v2864_v44, %v2864_v44 }
 0x21b   : > { %v2227_v11 = vpop.f32.mrf.mxu2  ;;  %v2934_v49 = vadd.f32 %v2933_v48, %v2932_v62 }
 0x21c   : > { %v2309_v28 = vadd.f32 %v2227_v11, %v2030_v41  ;;  %v1951_v8 = vpop.f32.mrf.mxu1  ;;  %v2505_v26 = vpop.f32.mrf.mxu3  ;;  %v3034_v42 = vsel %vm372_vm1, %v2997_v25, 0.0  ;;  %v2635_v41 = vld [vmem:[#allocation2 + $0x142] sm:$0xff] }
 0x21d   : > { %v3035_v61 = vadd.f32 %v3034_v42, %v3033_v9  ;;  %v2783_v39 = vpop.f32.mrf.mxu0  ;;  %v2031_v44 = vadd.f32 %v1951_v8, %v1753_v14  ;;  %v2636_v14 = vld [vmem:[#allocation2 + $0x152] sm:$0xff] }
 0x21e   : > { %v2587_v27 = vadd.f32 %v2505_v26, %v2309_v28 }
 0x21f   : > { %3386 = vmatmul.msk.f32.gmra.mxu1 %vm372_vm1, %v2634_v32  ;;  %3487 = vmatmul.msk.f32.gmra.mxu0 %vm372_vm1, %v2635_v41 }
 0x220   : > { %3420 = vmatmul.msk.f32.gmra.mxu2 %vm372_vm1, %v2080_v30  ;;  %v2865_v11 = vadd.f32 %v2783_v39, %v2587_v27  ;;  %v2081_v30 = vld [vmem:[#allocation2 + $0x158] sm:$0xff]  ;;  %v1754_v27 = vadd.f32 %v4350_v29, %v4346_v24  ;;  %v2082_v29 = vld [vmem:[#allocation2 + $0x168] sm:$0xff] }
 0x221   : > { %3454 = vmatmul.msk.f32.gmra.mxu3 %vm372_vm1, %v2358_v43 }
 0x222   : > { %2897 = vst.msk [vmem:[%s4622_s29 + $0x38] sm:$0xff] %vm372_vm1, %v2865_v11  ;;  %v2935_v48 = vsel %vm372_vm1, %v2865_v11, 0.0  ;;  %v2998_v25 = vmul.f32 %v2865_v11, %v2865_v11 }
 0x223   : > { %v2230_v62 = vpop.f32.mrf.mxu2  ;;  %v2936_v26 = vadd.f32 %v2935_v48, %v2934_v49 }
 0x224   : > { %v2310_v9 = vadd.f32 %v2230_v62, %v2031_v44  ;;  %v1954_v32 = vpop.f32.mrf.mxu1  ;;  %v2508_v28 = vpop.f32.mrf.mxu3  ;;  %v3036_v42 = vsel %vm372_vm1, %v2998_v25, 0.0 }
 0x225   : > { %v3037_v8 = vadd.f32 %v3036_v42, %v3035_v61  ;;  %v2786_v19 = vpop.f32.mrf.mxu0  ;;  %v2032_v39 = vadd.f32 %v1954_v32, %v1754_v27 }
 0x226   : > { %v2588_v43 = vadd.f32 %v2508_v28, %v2310_v9  ;;  %v2360_v28 = vld [vmem:[#allocation2 + $0x169] sm:$0xff] }
 0x227   : > { %3387 = vmatmul.msk.f32.gmra.mxu1 %vm372_vm1, %v2635_v41  ;;  %3488 = vmatmul.msk.f32.gmra.mxu0 %vm372_vm1, %v2636_v14 }
 0x228   : > { %3421 = vmatmul.msk.f32.gmra.mxu2 %vm372_vm1, %v2081_v30  ;;  %v2866_v44 = vadd.f32 %v2786_v19, %v2588_v43  ;;  %v1755_v30 = vadd.f32 %v4361_v63, %v4357_v13  ;;  %v2637_v43 = vld [vmem:[#allocation2 + $0x15a] sm:$0xff]  ;;  %v2083_v63 = vld [vmem:[#allocation2 + $0x170] sm:$0xff] }
 0x229   : > { %3455 = vmatmul.msk.f32.gmra.mxu3 %vm372_vm1, %v2359_v10 }
 0x22a   : > { %2898 = vst.msk [vmem:[%s4622_s29 + $0x40] sm:$0xff] %vm372_vm1, %v2866_v44  ;;  %v2937_v11 = vsel %vm372_vm1, %v2866_v44, 0.0  ;;  %v2999_v62 = vmul.f32 %v2866_v44, %v2866_v44 }
 0x22b   : > { %v2233_v49 = vpop.f32.mrf.mxu2  ;;  %v2938_v24 = vadd.f32 %v2937_v11, %v2936_v26 }
 0x22c   : > { %v2311_v61 = vadd.f32 %v2233_v49, %v2032_v39  ;;  %v1957_v41 = vpop.f32.mrf.mxu1  ;;  %v2511_v48 = vpop.f32.mrf.mxu3  ;;  %v3038_v25 = vsel %vm372_vm1, %v2999_v62, 0.0  ;;  %v2361_v62 = vld [vmem:[#allocation2 + $0x171] sm:$0xff] }
 0x22d   : > { %v3039_v32 = vadd.f32 %v3038_v25, %v3037_v8  ;;  %v2789_v42 = vpop.f32.mrf.mxu0  ;;  %v2033_v10 = vadd.f32 %v1957_v41, %v1755_v30  ;;  %v1756_v41 = vadd.f32 %v4371_v22, %v4367_v15  ;;  %v2084_v22 = vld [vmem:[#allocation2 + $0x180] sm:$0xff] }
 0x22e   : > { %v2589_v9 = vadd.f32 %v2511_v48, %v2311_v61 }
 0x22f   : > { %3388 = vmatmul.msk.f32.gmra.mxu1 %vm372_vm1, %v2636_v14  ;;  %3489 = vmatmul.msk.f32.gmra.mxu0 %vm372_vm1, %v2637_v43 }
 0x230   : > { %3422 = vmatmul.msk.f32.gmra.mxu2 %vm372_vm1, %v2082_v29  ;;  %v2867_v27 = vadd.f32 %v2789_v42, %v2589_v9  ;;  %v2638_v29 = vld [vmem:[#allocation2 + $0x16a] sm:$0xff] }
 0x231   : > { %3456 = vmatmul.msk.f32.gmra.mxu3 %vm372_vm1, %v2360_v28 }
 0x232   : > { %2899 = vst.msk [vmem:[%s4622_s29 + $0x48] sm:$0xff] %vm372_vm1, %v2867_v27  ;;  %v2939_v19 = vsel %vm372_vm1, %v2867_v27, 0.0  ;;  %v3000_v39 = vmul.f32 %v2867_v27, %v2867_v27 }
 0x233   : > { %v2236_v26 = vpop.f32.mrf.mxu2  ;;  %v2940_v13 = vadd.f32 %v2939_v19, %v2938_v24 }
 0x234   : > { %v2312_v8 = vadd.f32 %v2236_v26, %v2033_v10  ;;  %v1960_v14 = vpop.f32.mrf.mxu1  ;;  %v2514_v44 = vpop.f32.mrf.mxu3  ;;  %v3040_v49 = vsel %vm372_vm1, %v3000_v39, 0.0  ;;  %v2362_v26 = vld [vmem:[#allocation2 + $0x181] sm:$0xff]  ;;  %v1757_v39 = vadd.f32 %v4381_v4, %v4377_v34 }
 0x235   : > { %v3041_v61 = vadd.f32 %v3040_v49, %v3039_v32  ;;  %v2792_v48 = vpop.f32.mrf.mxu0  ;;  %v2034_v25 = vadd.f32 %v1960_v14, %v1756_v41  ;;  %v2639_v14 = vld [vmem:[#allocation2 + $0x172] sm:$0xff]  ;;  %v2085_v4 = vld [vmem:[#allocation2 + $0x188] sm:$0xff] }
 0x236   : > { %v2590_v11 = vadd.f32 %v2514_v44, %v2312_v8 }
 0x237   : > { %3389 = vmatmul.msk.f32.gmra.mxu1 %vm372_vm1, %v2637_v43  ;;  %3490 = vmatmul.msk.f32.gmra.mxu0 %vm372_vm1, %v2638_v29 }
 0x238   : > { %3423 = vmatmul.msk.f32.gmra.mxu2 %vm372_vm1, %v2083_v63  ;;  %v2868_v9 = vadd.f32 %v2792_v48, %v2590_v11 }
 0x239   : > { %3457 = vmatmul.msk.f32.gmra.mxu3 %vm372_vm1, %v2361_v62 }
 0x23a   : > { %2900 = vst.msk [vmem:[%s4622_s29 + $0x50] sm:$0xff] %vm372_vm1, %v2868_v9  ;;  %v2941_v28 = vsel %vm372_vm1, %v2868_v9, 0.0  ;;  %v3001_v30 = vmul.f32 %v2868_v9, %v2868_v9 }
 0x23b   : > { %v2239_v24 = vpop.f32.mrf.mxu2  ;;  %v2942_v15 = vadd.f32 %v2941_v28, %v2940_v13 }
 0x23c   : > { %v2313_v32 = vadd.f32 %v2239_v24, %v2034_v25  ;;  %v1963_v42 = vpop.f32.mrf.mxu1  ;;  %v2517_v43 = vpop.f32.mrf.mxu3  ;;  %v3042_v10 = vsel %vm372_vm1, %v3001_v30, 0.0  ;;  %v2363_v25 = vld [vmem:[#allocation2 + $0x189] sm:$0xff]  ;;  %v1758_v24 = vadd.f32 %v4391_v20, %v4387_v21  ;;  %v2086_v20 = vld [vmem:[#allocation2 + $0x198] sm:$0xff] }
 0x23d   : > { %v3043_v19 = vadd.f32 %v3042_v10, %v3041_v61  ;;  %v2795_v8 = vpop.f32.mrf.mxu0  ;;  %v2035_v44 = vadd.f32 %v1963_v42, %v1757_v39  ;;  %v2640_v30 = vld [vmem:[#allocation2 + $0x182] sm:$0xff] }
 0x23e   : > { %v2591_v27 = vadd.f32 %v2517_v43, %v2313_v32 }
 0x23f   : > { %3390 = vmatmul.msk.f32.gmra.mxu1 %vm372_vm1, %v2638_v29  ;;  %3491 = vmatmul.msk.f32.gmra.mxu0 %vm372_vm1, %v2639_v14 }
 0x240   : > { %3424 = vmatmul.msk.f32.gmra.mxu2 %vm372_vm1, %v2084_v22  ;;  %v2869_v63 = vadd.f32 %v2795_v8, %v2591_v27  ;;  %v2364_v8 = vld [vmem:[#allocation2 + $0x199] sm:$0xff] }
 0x241   : > { %3458 = vmatmul.msk.f32.gmra.mxu3 %vm372_vm1, %v2362_v26 }
 0x242   : > { %2901 = vst.msk [vmem:[%s4622_s29 + $0x58] sm:$0xff] %vm372_vm1, %v2869_v63  ;;  %v2943_v49 = vsel %vm372_vm1, %v2869_v63, 0.0  ;;  %v3002_v11 = vmul.f32 %v2869_v63, %v2869_v63 }
 0x243   : > { %v2242_v13 = vpop.f32.mrf.mxu2  ;;  %v2944_v34 = vadd.f32 %v2943_v49, %v2942_v15 }
 0x244   : > { %v2314_v62 = vadd.f32 %v2242_v13, %v2035_v44  ;;  %v1966_v61 = vpop.f32.mrf.mxu1  ;;  %v2520_v41 = vpop.f32.mrf.mxu3  ;;  %v3044_v48 = vsel %vm372_vm1, %v3002_v11, 0.0  ;;  %v1759_v44 = vadd.f32 %v4401_v5, %v4397_v33  ;;  %v2641_v13 = vld [vmem:[#allocation2 + $0x18a] sm:$0xff]  ;;  %v2087_v5 = vld [vmem:[#allocation2 + $0x1a0] sm:$0xff] }
 0x245   : > { %v3045_v9 = vadd.f32 %v3044_v48, %v3043_v19  ;;  %v2798_v28 = vpop.f32.mrf.mxu0  ;;  %v2036_v32 = vadd.f32 %v1966_v61, %v1758_v24 }
 0x246   : > { %v2592_v29 = vadd.f32 %v2520_v41, %v2314_v62 }
 0x247   : > { %3391 = vmatmul.msk.f32.gmra.mxu1 %vm372_vm1, %v2639_v14  ;;  %3492 = vmatmul.msk.f32.gmra.mxu0 %vm372_vm1, %v2640_v30 }
 0x248   : > { %3425 = vmatmul.msk.f32.gmra.mxu2 %vm372_vm1, %v2085_v4  ;;  %v2870_v42 = vadd.f32 %v2798_v28, %v2592_v29  ;;  %v1760_v28 = vadd.f32 %v4412_v17, %v4406_v1 }
 0x249   : > { %3459 = vmatmul.msk.f32.gmra.mxu3 %vm372_vm1, %v2363_v25 }
 0x24a   : > { %2902 = vst.msk [vmem:[%s4622_s29 + $0x60] sm:$0xff] %vm372_vm1, %v2870_v42  ;;  %v2945_v15 = vsel %vm372_vm1, %v2870_v42, 0.0  ;;  %v3003_v22 = vmul.f32 %v2870_v42, %v2870_v42 }
 0x24b   : > { %v2245_v43 = vpop.f32.mrf.mxu2  ;;  %v2946_v21 = vadd.f32 %v2945_v15, %v2944_v34 }
 0x24c   : > { %v2315_v10 = vadd.f32 %v2245_v43, %v2036_v32  ;;  %v1969_v27 = vpop.f32.mrf.mxu1  ;;  %v2523_v26 = vpop.f32.mrf.mxu3  ;;  %v3046_v19 = vsel %vm372_vm1, %v3003_v22, 0.0  ;;  %v2642_v32 = vld [vmem:[#allocation2 + $0x19a] sm:$0xff] }
 0x24d   : > { %v3047_v14 = vadd.f32 %v3046_v19, %v3045_v9  ;;  %v2801_v63 = vpop.f32.mrf.mxu0  ;;  %v2037_v49 = vadd.f32 %v1969_v27, %v1759_v44  ;;  %v2365_v9 = vld [vmem:[#allocation2 + $0x1a1] sm:$0xff] }
 0x24e   : > { %v2593_v39 = vadd.f32 %v2523_v26, %v2315_v10 }
 0x24f   : > { %3392 = vmatmul.msk.f32.gmra.mxu1 %vm372_vm1, %v2640_v30  ;;  %3493 = vmatmul.msk.f32.gmra.mxu0 %vm372_vm1, %v2641_v13 }
 0x250   : > { %3426 = vmatmul.msk.f32.gmra.mxu2 %vm372_vm1, %v2086_v20  ;;  %v2871_v11 = vadd.f32 %v2801_v63, %v2593_v39  ;;  %v1761_v39 = vadd.f32 %v4423_v6, %v4417_v23 }
 0x251   : > { %3460 = vmatmul.msk.f32.gmra.mxu3 %vm372_vm1, %v2364_v8 }
 0x252   : > { %2903 = vst.msk [vmem:[%s4622_s29 + $0x68] sm:$0xff] %vm372_vm1, %v2871_v11  ;;  %v2947_v61 = vsel %vm372_vm1, %v2871_v11, 0.0  ;;  %v3004_v41 = vmul.f32 %v2871_v11, %v2871_v11 }
 0x253   : > { %v2248_v62 = vpop.f32.mrf.mxu2  ;;  %v2948_v33 = vadd.f32 %v2947_v61, %v2946_v21 }
 0x254   : > { %v2316_v34 = vadd.f32 %v2248_v62, %v2037_v49  ;;  %v1972_v4 = vpop.f32.mrf.mxu1  ;;  %v2526_v48 = vpop.f32.mrf.mxu3  ;;  %v3048_v29 = vsel %vm372_vm1, %v3004_v41, 0.0 }
 0x255   : > { %v3049_v24 = vadd.f32 %v3048_v29, %v3047_v14  ;;  %v2804_v30 = vpop.f32.mrf.mxu0  ;;  %v2038_v42 = vadd.f32 %v1972_v4, %v1760_v28  ;;  %v2643_v14 = vld [vmem:[#allocation2 + $0x1a2] sm:$0xff] }
 0x256   : > { %v2594_v25 = vadd.f32 %v2526_v48, %v2316_v34  ;;  %v1762_v48 = vadd.f32 %v4435_v51, %v4429_v12  ;;  %v1763_v12 = vadd.f32 %v4447_v52, %v4441_v37  ;;  %v1764_v37 = vadd.f32 %v4460_v56, %v4454_v36 }
 0x257   : > { %3393 = vmatmul.msk.f32.gmra.mxu1 %vm372_vm1, %v2641_v13  ;;  %3494 = vmatmul.msk.f32.gmra.mxu0 %vm372_vm1, %v2642_v32  ;;  %v1765_v36 = vadd.f32 %v4472_v57, %v4466_v3  ;;  %v1766_v3 = vadd.f32 %v4484_v59, %v4478_v53  ;;  %v1767_v53 = vadd.f32 %v4496_v2, %v4490_v54 }
 0x258   : > { %3427 = vmatmul.msk.f32.gmra.mxu2 %vm372_vm1, %v2087_v5  ;;  %v2872_v43 = vadd.f32 %v2804_v30, %v2594_v25  ;;  %v1768_v54 = vadd.f32 %v4508_v50, %v4502_v47  ;;  %v1769_v47 = vadd.f32 %v4520_v18, %v4514_v60  ;;  %v1770_v60 = vadd.f32 %v4532_v40, %v4526_v55 }
 0x259   : > { %3461 = vmatmul.msk.f32.gmra.mxu3 %vm372_vm1, %v2365_v9  ;;  %v1771_v55 = vadd.f32 %v4544_v7, %v4538_v38  ;;  %v1772_v38 = vadd.f32 %v4556_v58, %v4550_v16  ;;  %v1773_v16 = vadd.f32 %v4568_v45, %v4562_v0  ;;  %v1774_v0 = vadd.f32 %v4580_v31, %v4574_v35  ;;  %v5023_v35 = vld [vmem:[#allocation4_spill] sm:$0xff] }
 0x25a   : > { %2904 = vst.msk [vmem:[%s4622_s29 + $0x70] sm:$0xff] %vm372_vm1, %v2872_v43  ;;  %v2949_v22 = vsel %vm372_vm1, %v2872_v43, 0.0  ;;  %v3005_v10 = vmul.f32 %v2872_v43, %v2872_v43  ;;  %v1775_v31 = vadd.f32 %v5023_v35, %v4586_v46  ;;  %v5025_v46 = vld [vmem:[#allocation6_spill] sm:$0xff] }
 0x25b   : > { %v2251_v15 = vpop.f32.mrf.mxu2  ;;  %v2950_v17 = vadd.f32 %v2949_v22, %v2948_v33 }
 0x25c   : > { %v2317_v27 = vadd.f32 %v2251_v15, %v2038_v42  ;;  %v1975_v26 = vpop.f32.mrf.mxu1  ;;  %v2529_v1 = vpop.f32.mrf.mxu3  ;;  %v3050_v21 = vsel %vm372_vm1, %v3005_v10, 0.0 }
 0x25d   : > { %v3051_v19 = vadd.f32 %v3050_v21, %v3049_v24  ;;  %v2807_v8 = vpop.f32.mrf.mxu0  ;;  %v2039_v44 = vadd.f32 %v1975_v26, %v1761_v39 }
 0x25e   : > { %v2595_v20 = vadd.f32 %v2529_v1, %v2317_v27 }
 0x25f   : > { %3495 = vmatmul.msk.f32.gmra.mxu0 %vm372_vm1, %v2643_v14 }
 0x260   : > { %v2873_v63 = vadd.f32 %v2807_v8, %v2595_v20 }
 0x262   : > { %2905 = vst.msk [vmem:[%s4622_s29 + $0x78] sm:$0xff] %vm372_vm1, %v2873_v63  ;;  %v2951_v49 = vsel %vm372_vm1, %v2873_v63, 0.0  ;;  %v3006_v11 = vmul.f32 %v2873_v63, %v2873_v63 }
 0x263   : > { %v2254_v13 = vpop.f32.mrf.mxu2  ;;  %v2952_v34 = vadd.f32 %v2951_v49, %v2950_v17 }
 0x264   : > { %v2318_v62 = vadd.f32 %v2254_v13, %v2039_v44  ;;  %v1978_v61 = vpop.f32.mrf.mxu1  ;;  %v2532_v41 = vpop.f32.mrf.mxu3  ;;  %v3052_v4 = vsel %vm372_vm1, %v3006_v11, 0.0 }
 0x265   : > { %v3053_v6 = vadd.f32 %v3052_v4, %v3051_v19  ;;  %v2810_v33 = vpop.f32.mrf.mxu0  ;;  %v2040_v5 = vadd.f32 %v1978_v61, %v1762_v48 }
 0x266   : > { %v2596_v23 = vadd.f32 %v2532_v41, %v2318_v62 }
 0x268   : > { %v2874_v29 = vadd.f32 %v2810_v33, %v2596_v23 }
 0x26a   : > { %2906 = vst.msk [vmem:[%s4622_s29 + $0x80] sm:$0xff] %vm372_vm1, %v2874_v29  ;;  %v2953_v9 = vsel %vm372_vm1, %v2874_v29, 0.0  ;;  %v3007_v24 = vmul.f32 %v2874_v29, %v2874_v29 }
 0x26b   : > { %v2257_v25 = vpop.f32.mrf.mxu2  ;;  %v2954_v42 = vadd.f32 %v2953_v9, %v2952_v34 }
 0x26c   : > { %v2319_v28 = vadd.f32 %v2257_v25, %v2040_v5  ;;  %v1981_v30 = vpop.f32.mrf.mxu1  ;;  %v2535_v32 = vpop.f32.mrf.mxu3  ;;  %v3054_v43 = vsel %vm372_vm1, %v3007_v24, 0.0 }
 0x26d   : > { %v3055_v22 = vadd.f32 %v3054_v43, %v3053_v6  ;;  %v2813_v51 = vpop.f32.mrf.mxu0  ;;  %v2041_v10 = vadd.f32 %v1981_v30, %v1763_v12 }
 0x26e   : > { %v2597_v15 = vadd.f32 %v2535_v32, %v2319_v28 }
 0x270   : > { %v2875_v27 = vadd.f32 %v2813_v51, %v2597_v15 }
 0x272   : > { %2907 = vst.msk [vmem:[%s4622_s29 + $0x88] sm:$0xff] %vm372_vm1, %v2875_v27  ;;  %v2955_v1 = vsel %vm372_vm1, %v2875_v27, 0.0  ;;  %v3008_v17 = vmul.f32 %v2875_v27, %v2875_v27 }
 0x273   : > { %v2260_v26 = vpop.f32.mrf.mxu2  ;;  %v2956_v39 = vadd.f32 %v2955_v1, %v2954_v42 }
 0x274   : > { %v2320_v21 = vadd.f32 %v2260_v26, %v2041_v10  ;;  %v1984_v20 = vpop.f32.mrf.mxu1  ;;  %v2538_v19 = vpop.f32.mrf.mxu3  ;;  %v3056_v8 = vsel %vm372_vm1, %v3008_v17, 0.0 }
 0x275   : > { %v3057_v44 = vadd.f32 %v3056_v8, %v3055_v22  ;;  %v2816_v52 = vpop.f32.mrf.mxu0  ;;  %v2042_v63 = vadd.f32 %v1984_v20, %v1764_v37 }
 0x276   : > { %v2598_v14 = vadd.f32 %v2538_v19, %v2320_v21 }
 0x278   : > { %v2876_v13 = vadd.f32 %v2816_v52, %v2598_v14 }
 0x27a   : > { %2908 = vst.msk [vmem:[%s4622_s29 + $0x90] sm:$0xff] %vm372_vm1, %v2876_v13  ;;  %v2957_v11 = vsel %vm372_vm1, %v2876_v13, 0.0  ;;  %v3009_v62 = vmul.f32 %v2876_v13, %v2876_v13 }
 0x27b   : > { %v2263_v49 = vpop.f32.mrf.mxu2  ;;  %v2958_v4 = vadd.f32 %v2957_v11, %v2956_v39 }
 0x27c   : > { %v2321_v61 = vadd.f32 %v2263_v49, %v2042_v63  ;;  %v1987_v41 = vpop.f32.mrf.mxu1  ;;  %v2541_v34 = vpop.f32.mrf.mxu3  ;;  %v3058_v23 = vsel %vm372_vm1, %v3009_v62, 0.0 }
 0x27d   : > { %v3059_v48 = vadd.f32 %v3058_v23, %v3057_v44  ;;  %v2819_v56 = vpop.f32.mrf.mxu0  ;;  %v2043_v33 = vadd.f32 %v1987_v41, %v1765_v36 }
 0x27e   : > { %v2599_v6 = vadd.f32 %v2541_v34, %v2321_v61 }
 0x280   : > { %v2877_v5 = vadd.f32 %v2819_v56, %v2599_v6 }
 0x282   : > { %2909 = vst.msk [vmem:[%s4622_s29 + $0x98] sm:$0xff] %vm372_vm1, %v2877_v5  ;;  %v2959_v25 = vsel %vm372_vm1, %v2877_v5, 0.0  ;;  %v3010_v9 = vmul.f32 %v2877_v5, %v2877_v5 }
 0x283   : > { %v2266_v29 = vpop.f32.mrf.mxu2  ;;  %v2960_v32 = vadd.f32 %v2959_v25, %v2958_v4 }
 0x284   : > { %v2322_v24 = vadd.f32 %v2266_v29, %v2043_v33  ;;  %v1990_v28 = vpop.f32.mrf.mxu1  ;;  %v2544_v30 = vpop.f32.mrf.mxu3  ;;  %v3060_v42 = vsel %vm372_vm1, %v3010_v9, 0.0 }
 0x285   : > { %v3061_v15 = vadd.f32 %v3060_v42, %v3059_v48  ;;  %v2822_v57 = vpop.f32.mrf.mxu0  ;;  %v2044_v22 = vadd.f32 %v1990_v28, %v1766_v3 }
 0x286   : > { %v2600_v43 = vadd.f32 %v2544_v30, %v2322_v24 }
 0x288   : > { %v2878_v12 = vadd.f32 %v2822_v57, %v2600_v43 }
 0x28a   : > { %2910 = vst.msk [vmem:[%s4622_s29 + $0xa0] sm:$0xff] %vm372_vm1, %v2878_v12  ;;  %v2961_v10 = vsel %vm372_vm1, %v2878_v12, 0.0  ;;  %v3011_v27 = vmul.f32 %v2878_v12, %v2878_v12 }
 0x28b   : > { %v2269_v51 = vpop.f32.mrf.mxu2  ;;  %v2962_v21 = vadd.f32 %v2961_v10, %v2960_v32 }
 0x28c   : > { %v2323_v26 = vadd.f32 %v2269_v51, %v2044_v22  ;;  %v1993_v1 = vpop.f32.mrf.mxu1  ;;  %v2547_v17 = vpop.f32.mrf.mxu3  ;;  %v3062_v20 = vsel %vm372_vm1, %v3011_v27, 0.0 }
 0x28d   : > { %v3063_v39 = vadd.f32 %v3062_v20, %v3061_v15  ;;  %v2825_v59 = vpop.f32.mrf.mxu0  ;;  %v2045_v8 = vadd.f32 %v1993_v1, %v1767_v53 }
 0x28e   : > { %v2601_v19 = vadd.f32 %v2547_v17, %v2323_v26 }
 0x290   : > { %v2879_v14 = vadd.f32 %v2825_v59, %v2601_v19 }
 0x292   : > { %2911 = vst.msk [vmem:[%s4622_s29 + $0xa8] sm:$0xff] %vm372_vm1, %v2879_v14  ;;  %v2963_v37 = vsel %vm372_vm1, %v2879_v14, 0.0  ;;  %v3012_v52 = vmul.f32 %v2879_v14, %v2879_v14 }
 0x293   : > { %v2272_v44 = vpop.f32.mrf.mxu2  ;;  %v2964_v11 = vadd.f32 %v2963_v37, %v2962_v21 }
 0x294   : > { %v2324_v63 = vadd.f32 %v2272_v44, %v2045_v8  ;;  %v1996_v13 = vpop.f32.mrf.mxu1  ;;  %v2550_v49 = vpop.f32.mrf.mxu3  ;;  %v3064_v62 = vsel %vm372_vm1, %v3012_v52, 0.0 }
 0x295   : > { %v3065_v41 = vadd.f32 %v3064_v62, %v3063_v39  ;;  %v2828_v2 = vpop.f32.mrf.mxu0  ;;  %v2046_v34 = vadd.f32 %v1996_v13, %v1768_v54 }
 0x296   : > { %v2602_v61 = vadd.f32 %v2550_v49, %v2324_v63 }
 0x298   : > { %v2880_v4 = vadd.f32 %v2828_v2, %v2602_v61 }
 0x29a   : > { %2912 = vst.msk [vmem:[%s4622_s29 + $0xb0] sm:$0xff] %vm372_vm1, %v2880_v4  ;;  %v2965_v6 = vsel %vm372_vm1, %v2880_v4, 0.0  ;;  %v3013_v48 = vmul.f32 %v2880_v4, %v2880_v4 }
 0x29b   : > { %v2275_v23 = vpop.f32.mrf.mxu2  ;;  %v2966_v5 = vadd.f32 %v2965_v6, %v2964_v11 }
 0x29c   : > { %v2325_v36 = vadd.f32 %v2275_v23, %v2046_v34  ;;  %v1999_v56 = vpop.f32.mrf.mxu1  ;;  %v2553_v33 = vpop.f32.mrf.mxu3  ;;  %v3066_v29 = vsel %vm372_vm1, %v3013_v48, 0.0 }
 0x29d   : > { %v3067_v9 = vadd.f32 %v3066_v29, %v3065_v41  ;;  %v2831_v50 = vpop.f32.mrf.mxu0  ;;  %v2047_v24 = vadd.f32 %v1999_v56, %v1769_v47 }
 0x29e   : > { %v2603_v25 = vadd.f32 %v2553_v33, %v2325_v36 }
 0x2a0   : > { %v2881_v28 = vadd.f32 %v2831_v50, %v2603_v25 }
 0x2a2   : > { %2913 = vst.msk [vmem:[%s4622_s29 + $0xb8] sm:$0xff] %vm372_vm1, %v2881_v28  ;;  %v2967_v32 = vsel %vm372_vm1, %v2881_v28, 0.0  ;;  %v3014_v42 = vmul.f32 %v2881_v28, %v2881_v28 }
 0x2a3   : > { %v2278_v30 = vpop.f32.mrf.mxu2  ;;  %v2968_v57 = vadd.f32 %v2967_v32, %v2966_v5 }
 0x2a4   : > { %v2326_v43 = vadd.f32 %v2278_v30, %v2047_v24  ;;  %v2002_v15 = vpop.f32.mrf.mxu1  ;;  %v2556_v3 = vpop.f32.mrf.mxu3  ;;  %v3068_v22 = vsel %vm372_vm1, %v3014_v42, 0.0 }
 0x2a5   : > { %v3069_v51 = vadd.f32 %v3068_v22, %v3067_v9  ;;  %v2834_v18 = vpop.f32.mrf.mxu0  ;;  %v2048_v10 = vadd.f32 %v2002_v15, %v1770_v60 }
 0x2a6   : > { %v2604_v12 = vadd.f32 %v2556_v3, %v2326_v43 }
 0x2a8   : > { %v2882_v27 = vadd.f32 %v2834_v18, %v2604_v12 }
 0x2aa   : > { %2914 = vst.msk [vmem:[%s4622_s29 + $0xc0] sm:$0xff] %vm372_vm1, %v2882_v27  ;;  %v2969_v1 = vsel %vm372_vm1, %v2882_v27, 0.0  ;;  %v3015_v17 = vmul.f32 %v2882_v27, %v2882_v27 }
 0x2ab   : > { %v2281_v26 = vpop.f32.mrf.mxu2  ;;  %v2970_v39 = vadd.f32 %v2969_v1, %v2968_v57 }
 0x2ac   : > { %v2327_v21 = vadd.f32 %v2281_v26, %v2048_v10  ;;  %v2005_v20 = vpop.f32.mrf.mxu1  ;;  %v2559_v19 = vpop.f32.mrf.mxu3  ;;  %v3070_v53 = vsel %vm372_vm1, %v3015_v17, 0.0 }
 0x2ad   : > { %v3071_v8 = vadd.f32 %v3070_v53, %v3069_v51  ;;  %v2837_v40 = vpop.f32.mrf.mxu0  ;;  %v2049_v14 = vadd.f32 %v2005_v20, %v1771_v55 }
 0x2ae   : > { %v2605_v59 = vadd.f32 %v2559_v19, %v2327_v21 }
 0x2b0   : > { %v2883_v44 = vadd.f32 %v2837_v40, %v2605_v59 }
 0x2b2   : > { %2915 = vst.msk [vmem:[%s4622_s29 + $0xc8] sm:$0xff] %vm372_vm1, %v2883_v44  ;;  %v2971_v52 = vsel %vm372_vm1, %v2883_v44, 0.0  ;;  %v3016_v63 = vmul.f32 %v2883_v44, %v2883_v44 }
 0x2b3   : > { %v2284_v37 = vpop.f32.mrf.mxu2  ;;  %v2972_v62 = vadd.f32 %v2971_v52, %v2970_v39 }
 0x2b4   : > { %v2328_v13 = vadd.f32 %v2284_v37, %v2049_v14  ;;  %v2008_v49 = vpop.f32.mrf.mxu1  ;;  %v2562_v11 = vpop.f32.mrf.mxu3  ;;  %v3072_v61 = vsel %vm372_vm1, %v3016_v63, 0.0 }
 0x2b5   : > { %v3073_v54 = vadd.f32 %v3072_v61, %v3071_v8  ;;  %v2840_v7 = vpop.f32.mrf.mxu0  ;;  %v2050_v2 = vadd.f32 %v2008_v49, %v1772_v38  ;;  %v5024_v49 = vld [vmem:[#allocation22_spill] sm:$0xff] }
 0x2b6   : > { %v2606_v41 = vadd.f32 %v2562_v11, %v2328_v13  ;;  %v1776_v11 = vadd.f32 %v5025_v46, %v5024_v49 }
 0x2b8   : > { %v2884_v34 = vadd.f32 %v2840_v7, %v2606_v41 }
 0x2ba   : > { %2916 = vst.msk [vmem:[%s4622_s29 + $0xd0] sm:$0xff] %vm372_vm1, %v2884_v34  ;;  %v2973_v23 = vsel %vm372_vm1, %v2884_v34, 0.0  ;;  %v3017_v6 = vmul.f32 %v2884_v34, %v2884_v34 }
 0x2bb   : > { %v2287_v4 = vpop.f32.mrf.mxu2  ;;  %v2974_v33 = vadd.f32 %v2973_v23, %v2972_v62 }
 0x2bc   : > { %v2329_v48 = vadd.f32 %v2287_v4, %v2050_v2  ;;  %v2011_v36 = vpop.f32.mrf.mxu1  ;;  %v2565_v56 = vpop.f32.mrf.mxu3  ;;  %v3074_v5 = vsel %vm372_vm1, %v3017_v6, 0.0 }
 0x2bd   : > { %v3075_v25 = vadd.f32 %v3074_v5, %v3073_v54  ;;  %v2843_v58 = vpop.f32.mrf.mxu0  ;;  %v2051_v9 = vadd.f32 %v2011_v36, %v1773_v16 }
 0x2be   : > { %v2607_v29 = vadd.f32 %v2565_v56, %v2329_v48 }
 0x2c0   : > { %v2885_v47 = vadd.f32 %v2843_v58, %v2607_v29 }
 0x2c2   : > { %2917 = vst.msk [vmem:[%s4622_s29 + $0xd8] sm:$0xff] %vm372_vm1, %v2885_v47  ;;  %v2975_v24 = vsel %vm372_vm1, %v2885_v47, 0.0  ;;  %v3018_v28 = vmul.f32 %v2885_v47, %v2885_v47 }
 0x2c3   : > { %v2290_v50 = vpop.f32.mrf.mxu2  ;;  %v2976_v43 = vadd.f32 %v2975_v24, %v2974_v33 }
 0x2c4   : > { %v2330_v30 = vadd.f32 %v2290_v50, %v2051_v9  ;;  %v2014_v32 = vpop.f32.mrf.mxu1  ;;  %v2568_v42 = vpop.f32.mrf.mxu3  ;;  %v3076_v15 = vsel %vm372_vm1, %v3018_v28, 0.0 }
 0x2c5   : > { %v3077_v57 = vadd.f32 %v3076_v15, %v3075_v25  ;;  %v2846_v45 = vpop.f32.mrf.mxu0  ;;  %v2052_v22 = vadd.f32 %v2014_v32, %v1774_v0 }
 0x2c6   : > { %v2608_v3 = vadd.f32 %v2568_v42, %v2330_v30 }
 0x2c8   : > { %v2886_v12 = vadd.f32 %v2846_v45, %v2608_v3 }
 0x2ca   : > { %2918 = vst.msk [vmem:[%s4622_s29 + $0xe0] sm:$0xff] %vm372_vm1, %v2886_v12  ;;  %v2977_v60 = vsel %vm372_vm1, %v2886_v12, 0.0  ;;  %v3019_v18 = vmul.f32 %v2886_v12, %v2886_v12 }
 0x2cb   : > { %v2293_v51 = vpop.f32.mrf.mxu2  ;;  %v2978_v26 = vadd.f32 %v2977_v60, %v2976_v43 }
 0x2cc   : > { %v2331_v10 = vadd.f32 %v2293_v51, %v2052_v22  ;;  %v2571_v27 = vpop.f32.mrf.mxu3  ;;  %v2017_v1 = vpop.f32.mrf.mxu1  ;;  %v3078_v17 = vsel %vm372_vm1, %v3019_v18, 0.0 }
 0x2cd   : > { %v3079_v20 = vadd.f32 %v3078_v17, %v3077_v57  ;;  %v2849_v19 = vpop.f32.mrf.mxu0  ;;  %v2053_v39 = vadd.f32 %v2017_v1, %v1775_v31 }
 0x2ce   : > { %v2609_v21 = vadd.f32 %v2571_v27, %v2331_v10 }
 0x2d0   : > { %v2887_v53 = vadd.f32 %v2849_v19, %v2609_v21 }
 0x2d2   : > { %2919 = vst.msk [vmem:[%s4622_s29 + $0xe8] sm:$0xff] %vm372_vm1, %v2887_v53  ;;  %v2979_v8 = vsel %vm372_vm1, %v2887_v53, 0.0  ;;  %v3020_v55 = vmul.f32 %v2887_v53, %v2887_v53 }
 0x2d3   : > { %v2296_v59 = vpop.f32.mrf.mxu2  ;;  %v2980_v44 = vadd.f32 %v2979_v8, %v2978_v26 }
 0x2d4   : > { %v2332_v40 = vadd.f32 %v2296_v59, %v2053_v39  ;;  %v2574_v14 = vpop.f32.mrf.mxu3  ;;  %v3080_v37 = vsel %vm372_vm1, %v3020_v55, 0.0  ;;  %v2020_v13 = vpop.f32.mrf.mxu1 }
 0x2d5   : > { %v3081_v63 = vadd.f32 %v3080_v37, %v3079_v20  ;;  %v2852_v62 = vpop.f32.mrf.mxu0  ;;  %v2054_v61 = vadd.f32 %v2020_v13, %v1776_v11 }
 0x2d6   : > { %v2610_v52 = vadd.f32 %v2574_v14, %v2332_v40 }
 0x2d8   : > { %v2888_v41 = vadd.f32 %v2852_v62, %v2610_v52 }
 0x2da   : > { %2920 = vst.msk [vmem:[%s4622_s29 + $0xf0] sm:$0xff] %vm372_vm1, %v2888_v41  ;;  %v2981_v38 = vsel %vm372_vm1, %v2888_v41, 0.0  ;;  %v3021_v7 = vmul.f32 %v2888_v41, %v2888_v41 }
 0x2db   : > { %v2299_v54 = vpop.f32.mrf.mxu2  ;;  %v2982_v4 = vadd.f32 %v2981_v38, %v2980_v44 }
 0x2dc   : > { %v2333_v2 = vadd.f32 %v2299_v54, %v2054_v61  ;;  %v2577_v34 = vpop.f32.mrf.mxu3  ;;  %v3082_v23 = vsel %vm372_vm1, %v3021_v7, 0.0 }
 0x2dd   : > { %v3083_v48 = vadd.f32 %v3082_v23, %v3081_v63  ;;  %v2855_v36 = vpop.f32.mrf.mxu0 }
 0x2de   : > { %v2611_v6 = vadd.f32 %v2577_v34, %v2333_v2 }
 0x2e0   : > { %v2889_v56 = vadd.f32 %v2855_v36, %v2611_v6 }
 0x2e2   : > { %2921 = vst.msk [vmem:[%s4622_s29 + $0xf8] sm:$0xff] %vm372_vm1, %v2889_v56  ;;  %v2983_v33 = vsel %vm372_vm1, %v2889_v56, 0.0  ;;  %v3022_v5 = vmul.f32 %v2889_v56, %v2889_v56 }
 0x2e3   : > { %v2984_v29 = vadd.f32 %v2983_v33, %v2982_v4 }
 0x2e4   : > { %v3084_v25 = vsel %vm372_vm1, %v3022_v5, 0.0 }
 0x2e5   : > { %v2985_v16 = vrot.slane %v2984_v29, 4  ;;  %v3085_v58 = vadd.f32 %v3084_v25, %v3083_v48 }
 0x2e7   : > { %v2986_v9 = vadd.f32 %v2985_v16, %v2984_v29  ;;  %v3086_v47 = vrot.slane %v3085_v58, 4 }
 0x2e9   : > { %v2987_v50 = vrot.slane %v2986_v9, 2  ;;  %v3087_v24 = vadd.f32 %v3086_v47, %v3085_v58 }
 0x2eb   : > { %v2988_v28 = vadd.f32 %v2987_v50, %v2986_v9  ;;  %v3088_v30 = vrot.slane %v3087_v24, 2 }
 0x2ed   : > { %v2989_v32 = vrot.slane %v2988_v28, 1  ;;  %v3089_v42 = vadd.f32 %v3088_v30, %v3087_v24 }
 0x2ef   : > { %v3090_v43 = vrot.slane %v3089_v42, 1  ;;  %v2990_v15 = vadd.f32 %v2989_v32, %v2988_v28 }
 0x2f1   : > { %v3091_v3 = vadd.f32 %v3090_v43, %v3089_v42 }
 0x2f3   : > { %v3093_v57 = vsel %vm3092_vm4, %v2990_v15, %v3091_v3 }
 0x2f4   : > { %3094 = vst.msk [vmem:[%s235_s8] sm:$0x3] %vm375_vm2, %v3093_v57 }
 0x2f5 PF: > { %s16_s18 = sadd.s32 1, %s3522_s18  }
 0x2f6   : > { %p13_p4 = scmp.ge.s32.totalorder %s16_s18, 4  }
 0x2f8   :  { %15 = sbr.rel (!%p13_p4) target bundleno = 1 (0x1), region = 89 }

// kernel: basic_block_forward.3
= control target key start
LH: loop header
LB: loop body
LE: loop exit
PB: predicated region body
PF: predicated region fallthrough
CT: control target
= control target key end

     0   :  { %s3383_s12 = smov 0   ;;  %s4656_s0 = inlined_call_operand.vmem [shape: f32[2,16,16,4], index: 0, kind: input, shape index: {}]   ;;  %s4657_s1 = inlined_call_operand.vmem [shape: f32[9,4,4], index: 1, kind: input, shape index: {}]   ;;  %s4658_s2 = inlined_call_operand.vmem [shape: f32[2,256,4], index: 2, kind: output, shape index: {0}]   ;;  %s4659_s3 = inlined_call_operand.vmem [shape: f32[2,2,4], index: 3, kind: output, shape index: {1}]  }
   0x1 LB: > { %s3023_s13 = sadd.s32 4294967295, %s3360_s12   ;;  %p3027_p0 = scmp.ge.s32.totalorder %s3360_s12, 1  ;;  %s3360_s12 = sphi %s3383_s12, %s14_s12  }
   0x2   : > { %p140_p1 = scmp.lt.s32.totalorder %s3360_s12, 3 }
   0x4   : > { %p141_p2 = pnand %p3027_p0, %p140_p1 }
   0x6   : > { %144 = sbr.rel (%p141_p2) target bundleno = 752 (0x2f0), region = 28 }
   0xb   : > { %v3033_v0 = vld [vmem:[%s4657_s1 + $0x4] sm:$0xf]  ;;  %vm456_vm0 = vcmask 1043456   ;;  %p168_p3 = scmp.lt.s32.totalorder %s3023_s13, 1  ;;  %vm214_vm1 = vcmask 31744   ;;  %v3362_v4 = vmov 0.0  }
   0xc   : > { %3342 = vmatpush.msk.msra.mxu1 %vm456_vm0, %v3033_v0  ;;  %3343 = vmatpush.msk.msra.mxu2 %vm456_vm0, %v3033_v0  ;;  %v3100_v1 = vld [vmem:[%s4657_s1 + $0x8] sm:$0xf]  ;;  %v3134_v2 = vld [vmem:[%s4657_s1 + $0xc] sm:$0xf]  ;;  %v325_v3 = vld [vmem:[%s4657_s1] sm:$0xf] }
   0xd   : > { %s4791_s13 = smov (!%p168_p3, %s3023_s13), 1  ;;  %3344 = vmatpush.msk.msra.mxu3 %vm456_vm0, %v3033_v0  ;;  %215 = vst.msk [vmem:[#allocation2] sm:$0xff] %vm214_vm1, %v3362_v4  ;;  %v3168_v5 = vld [vmem:[%s4657_s1 + $0x10] sm:$0xf]  ;;  %vm217_vm2 = vcmask 25600   ;;  %3034 = vmatpush.msk.msra.mxu0 %vm456_vm0, %v3033_v0  ;;  %vm223_vm3 = vcmask 24576  }
   0xe   : > { %3101 = vmatpush.msk.msrb.mxu2 %vm456_vm0, %v3100_v1  ;;  %3067 = vmatpush.msk.msrb.mxu1 %vm456_vm0, %v325_v3  ;;  %216 = vst.msk [vmem:[#allocation2 + $0x8] sm:$0xff] %vm214_vm1, %v3362_v4  ;;  %s3340_s24 = sshll.u32 %s4791_s13, 8  ;;  %v3236_v56 = vld [vmem:[%s4657_s1 + $0x18] sm:$0xf]  ;;  %v3270_v58 = vld [vmem:[%s4657_s1 + $0x1c] sm:$0xf] }
   0xf   : > { %3135 = vmatpush.msk.msrb.mxu3 %vm456_vm0, %v3134_v2  ;;  %220 = vst.msk [vmem:[#allocation2 + $0x198] sm:$0xff] %vm214_vm1, %v3362_v4  ;;  %s3427_s27 = scalar_lea.vmem %s4656_s0, %s3340_s24  ;;  %3169 = vmatpush.msk.msrb.mxu0 %vm456_vm0, %v3168_v5  ;;  %v3202_v59 = vld [vmem:[%s4657_s1 + $0x14] sm:$0xf]  ;;  %v3304_v0 = vld [vmem:[%s4657_s1 + $0x20] sm:$0xf]  ;;  %s4385_s11 = scalar_lea.vmem %s4658_s2, %s3340_s24  ;;  %vm2934_vm4 = vcmask 1040384  }
  0x10   : > { %221 = vst.msk [vmem:[#allocation2 + $0x1a0] sm:$0xff] %vm214_vm1, %v3362_v4  ;;  %v188_v6 = vld [vmem:[%s3427_s27 + $0x30] sm:$0xff]  ;;  %v189_v9 = vld [vmem:[%s3427_s27 + $0x38] sm:$0xff]  ;;  %v190_v13 = vld [vmem:[%s3427_s27 + $0x40] sm:$0xff]  ;;  %s3032_s14 = sshll.u32 %s4791_s13, 1 }
  0x11   : > { %v196_v7 = vld [vmem:[%s3427_s27 + $0x70] sm:$0xff]  ;;  %218 = vst.msk [vmem:[#allocation2 + $0x10] sm:$0x3] %vm217_vm2, %v3362_v4  ;;  %v197_v10 = vld [vmem:[%s3427_s27 + $0x78] sm:$0xff]  ;;  %v198_v14 = vld [vmem:[%s3427_s27 + $0x80] sm:$0xff]  ;;  %s181_s17 = scalar_lea.vmem %s4659_s3, %s3032_s14 }
  0x12   : > { %v204_v8 = vld [vmem:[%s3427_s27 + $0xb0] sm:$0xff]  ;;  %267 = vst.msk [vmem:[#allocation2 + $0x61] sm:$0xff] %vm214_vm1, %v188_v6  ;;  %v205_v11 = vld [vmem:[%s3427_s27 + $0xb8] sm:$0xff]  ;;  %v206_v15 = vld [vmem:[%s3427_s27 + $0xc0] sm:$0xff] }
  0x13   : > { %275 = vst.msk [vmem:[#allocation2 + $0xc1] sm:$0xff] %vm214_vm1, %v196_v7  ;;  %v191_v17 = vld [vmem:[%s3427_s27 + $0x48] sm:$0xff]  ;;  %v182_v22 = vld [vmem:[%s3427_s27] sm:$0xff]  ;;  %v192_v24 = vld [vmem:[%s3427_s27 + $0x50] sm:$0xff] }
  0x14   : > { %283 = vst.msk [vmem:[#allocation2 + $0x121] sm:$0xff] %vm214_vm1, %v204_v8  ;;  %v199_v19 = vld [vmem:[%s3427_s27 + $0x88] sm:$0xff]  ;;  %v200_v25 = vld [vmem:[%s3427_s27 + $0x90] sm:$0xff]  ;;  %v193_v31 = vld [vmem:[%s3427_s27 + $0x58] sm:$0xff] }
  0x15   : > { %268 = vst.msk [vmem:[#allocation2 + $0x69] sm:$0xff] %vm214_vm1, %v189_v9  ;;  %v326_v12 = vld [vmem:[#allocation2 + $0x1] sm:$0xff]  ;;  %v208_v29 = vld [vmem:[%s3427_s27 + $0xd0] sm:$0xff]  ;;  %v201_v32 = vld [vmem:[%s3427_s27 + $0x98] sm:$0xff] }
  0x16   : > { %276 = vst.msk [vmem:[#allocation2 + $0xc9] sm:$0xff] %vm214_vm1, %v197_v10  ;;  %3035 = vmatmul.msk.f32.vlgmr.msra.gmra.mxu0 %vm214_vm1, %v326_v12  ;;  %v207_v23 = vld [vmem:[%s3427_s27 + $0xc8] sm:$0xff]  ;;  %v184_v33 = vld [vmem:[%s3427_s27 + $0x10] sm:$0xff]  ;;  %v209_v34 = vld [vmem:[%s3427_s27 + $0xd8] sm:$0xff] }
  0x17   : > { %284 = vst.msk [vmem:[#allocation2 + $0x129] sm:$0xff] %vm214_vm1, %v205_v11  ;;  %v183_v27 = vld [vmem:[%s3427_s27 + $0x8] sm:$0xff]  ;;  %v194_v36 = vld [vmem:[%s3427_s27 + $0x60] sm:$0xff]  ;;  %v185_v39 = vld [vmem:[%s3427_s27 + $0x18] sm:$0xff]  ;;  %3305 = vmatpush.msk.msra.mxu0 %vm456_vm0, %v3304_v0 }
  0x18   : > { %269 = vst.msk [vmem:[#allocation2 + $0x79] sm:$0xff] %vm214_vm1, %v190_v13  ;;  %v327_v21 = vld [vmem:[#allocation2 + $0x9] sm:$0xff]  ;;  %v202_v37 = vld [vmem:[%s3427_s27 + $0xa0] sm:$0xff] }
  0x19   : > { %v3451_v16 = vld [vmem:[#allocation2 + $0x61] sm:$0xff]  ;;  %277 = vst.msk [vmem:[#allocation2 + $0xd9] sm:$0xff] %vm214_vm1, %v198_v14 }
  0x1a   : > { %3043 = vmatmul.msk.f32.vlgmr.msra.gmra.mxu1 %vm214_vm1, %v3451_v16  ;;  %v3457_v18 = vld [vmem:[#allocation2 + $0xc1] sm:$0xff]  ;;  %222 = vst.msk [vmem:[#allocation2 + $0x1a8] sm:$0x3] %vm217_vm2, %v3362_v4 }
  0x1b   : > { %3051 = vmatmul.msk.f32.vlgmr.msra.gmra.mxu2 %vm214_vm1, %v3457_v18  ;;  %v3464_v20 = vld [vmem:[#allocation2 + $0x121] sm:$0xff]  ;;  %285 = vst.msk [vmem:[#allocation2 + $0x139] sm:$0xff] %vm214_vm1, %v206_v15  ;;  %3203 = vmatpush.msk.msra.mxu1 %vm456_vm0, %v3202_v59 }
  0x1c   : > { %3059 = vmatmul.msk.f32.vlgmr.msra.gmra.mxu3 %vm214_vm1, %v3464_v20  ;;  %270 = vst.msk [vmem:[#allocation2 + $0x81] sm:$0xff] %vm214_vm1, %v191_v17  ;;  %v3477_v26 = vld [vmem:[#allocation2 + $0x69] sm:$0xff]  ;;  %v210_v41 = vld [vmem:[%s3427_s27 + $0xe0] sm:$0xff]  ;;  %3237 = vmatpush.msk.msra.mxu2 %vm456_vm0, %v3236_v56 }
  0x1d   : > { %278 = vst.msk [vmem:[#allocation2 + $0xe1] sm:$0xff] %vm214_vm1, %v199_v19  ;;  %v3481_v28 = vld [vmem:[#allocation2 + $0xc9] sm:$0xff]  ;;  %v186_v46 = vld [vmem:[%s3427_s27 + $0x20] sm:$0xff]  ;;  %3271 = vmatpush.msk.msra.mxu3 %vm456_vm0, %v3270_v58 }
  0x1e   : > { %3036 = vmatmul.msk.f32.gmra.mxu0 %vm214_vm1, %v327_v21  ;;  %261 = vst.msk [vmem:[#allocation2 + $0x19] sm:$0xff] %vm214_vm1, %v182_v22  ;;  %v3485_v30 = vld [vmem:[#allocation2 + $0x129] sm:$0xff] }
  0x1f   : > { %286 = vst.msk [vmem:[#allocation2 + $0x141] sm:$0xff] %vm214_vm1, %v207_v23  ;;  %v3509_v38 = vld [vmem:[#allocation2 + $0x79] sm:$0xff]  ;;  %v195_v43 = vld [vmem:[%s3427_s27 + $0x68] sm:$0xff] }
  0x20   : > { %271 = vst.msk [vmem:[#allocation2 + $0x91] sm:$0xff] %vm214_vm1, %v192_v24  ;;  %v3513_v40 = vld [vmem:[#allocation2 + $0xd9] sm:$0xff]  ;;  %v203_v44 = vld [vmem:[%s3427_s27 + $0xa8] sm:$0xff] }
  0x21   : > { %279 = vst.msk [vmem:[#allocation2 + $0xf1] sm:$0xff] %vm214_vm1, %v200_v25  ;;  %v211_v47 = vld [vmem:[%s3427_s27 + $0xe8] sm:$0xff] }
  0x22   : > { %3044 = vmatmul.msk.f32.gmra.mxu1 %vm214_vm1, %v3477_v26  ;;  %262 = vst.msk [vmem:[#allocation2 + $0x21] sm:$0xff] %vm214_vm1, %v183_v27  ;;  %v3517_v42 = vld [vmem:[#allocation2 + $0x139] sm:$0xff]  ;;  %v187_v7 = vld [vmem:[%s3427_s27 + $0x28] sm:$0xff] }
  0x23   : > { %3052 = vmatmul.msk.f32.gmra.mxu2 %vm214_vm1, %v3481_v28  ;;  %287 = vst.msk [vmem:[#allocation2 + $0x151] sm:$0xff] %vm214_vm1, %v208_v29  ;;  %v3539_v48 = vld [vmem:[#allocation2 + $0x81] sm:$0xff] }
  0x24   : > { %3060 = vmatmul.msk.f32.gmra.mxu3 %vm214_vm1, %v3485_v30  ;;  %272 = vst.msk [vmem:[#allocation2 + $0x99] sm:$0xff] %vm214_vm1, %v193_v31  ;;  %v3542_v49 = vld [vmem:[#allocation2 + $0xe1] sm:$0xff] }
  0x25   : > { %v3501_v35 = vld [vmem:[#allocation2 + $0x19] sm:$0xff]  ;;  %280 = vst.msk [vmem:[#allocation2 + $0xf9] sm:$0xff] %vm214_vm1, %v201_v32  ;;  %v785_v9 = vld [vmem:[#allocation2 + $0x2] sm:$0xff] }
  0x26   : > { %3037 = vmatmul.msk.f32.gmra.mxu0 %vm214_vm1, %v3501_v35  ;;  %263 = vst.msk [vmem:[#allocation2 + $0x31] sm:$0xff] %vm214_vm1, %v184_v33  ;;  %v3544_v50 = vld [vmem:[#allocation2 + $0x141] sm:$0xff] }
  0x27   : > { %288 = vst.msk [vmem:[#allocation2 + $0x159] sm:$0xff] %vm214_vm1, %v209_v34  ;;  %v3564_v52 = vld [vmem:[#allocation2 + $0x91] sm:$0xff]  ;;  %v294_v12 = vld [vmem:[#allocation2 + $0x8] sm:$0xff] }
  0x28   : > { %273 = vst.msk [vmem:[#allocation2 + $0xa9] sm:$0xff] %vm214_vm1, %v194_v36  ;;  %v3568_v53 = vld [vmem:[#allocation2 + $0xf1] sm:$0xff]  ;;  %v3774_v31 = vld [vmem:[#allocation2 + $0x68] sm:$0xff] }
  0x29   : > { %281 = vst.msk [vmem:[#allocation2 + $0x109] sm:$0xff] %vm214_vm1, %v202_v37  ;;  %v3527_v45 = vld [vmem:[#allocation2 + $0x21] sm:$0xff] }
  0x2a   : > { %3045 = vmatmul.msk.f32.gmra.mxu1 %vm214_vm1, %v3509_v38  ;;  %264 = vst.msk [vmem:[#allocation2 + $0x39] sm:$0xff] %vm214_vm1, %v185_v39  ;;  %v3572_v54 = vld [vmem:[#allocation2 + $0x151] sm:$0xff]  ;;  %v1064_v14 = vld [vmem:[#allocation2 + $0x20] sm:$0xff] }
  0x2b   : > { %3053 = vmatmul.msk.f32.gmra.mxu2 %vm214_vm1, %v3513_v40  ;;  %289 = vst.msk [vmem:[#allocation2 + $0x169] sm:$0xff] %vm214_vm1, %v210_v41  ;;  %v3596_v57 = vld [vmem:[#allocation2 + $0x99] sm:$0xff]  ;;  %v3788_v34 = vld [vmem:[#allocation2 + $0x62] sm:$0xff] }
  0x2c   : > { %3061 = vmatmul.msk.f32.gmra.mxu3 %vm214_vm1, %v3517_v42  ;;  %274 = vst.msk [vmem:[#allocation2 + $0xb1] sm:$0xff] %vm214_vm1, %v195_v43  ;;  %v3610_v60 = vld [vmem:[#allocation2 + $0xf9] sm:$0xff] }
  0x2d   : > { %282 = vst.msk [vmem:[#allocation2 + $0x111] sm:$0xff] %vm214_vm1, %v203_v44  ;;  %v3550_v51 = vld [vmem:[#allocation2 + $0x31] sm:$0xff]  ;;  %v3810_v43 = vld [vmem:[#allocation2 + $0x80] sm:$0xff] }
  0x2e   : > { %3038 = vmatmul.msk.f32.gmra.mxu0 %vm214_vm1, %v3527_v45  ;;  %265 = vst.msk [vmem:[#allocation2 + $0x49] sm:$0xff] %vm214_vm1, %v186_v46  ;;  %v3616_v61 = vld [vmem:[#allocation2 + $0x159] sm:$0xff] }
  0x2f   : > { %290 = vst.msk [vmem:[#allocation2 + $0x171] sm:$0xff] %vm214_vm1, %v211_v47  ;;  %v3640_v63 = vld [vmem:[#allocation2 + $0xa9] sm:$0xff]  ;;  %v3826_v46 = vld [vmem:[#allocation2 + $0x7a] sm:$0xff] }
  0x30   : > { %224 = vst.msk [vmem:[#allocation2] sm:$0x1] %vm223_vm3, %v3362_v4  ;;  %v3647_v1 = vld [vmem:[#allocation2 + $0x109] sm:$0xff]  ;;  %v3848_v0 = vld [vmem:[#allocation2 + $0x98] sm:$0xff] }
  0x31   : > { %225 = vst.msk [vmem:[#allocation2 + $0x18] sm:$0x1] %vm223_vm3, %v3362_v4  ;;  %v3582_v55 = vld [vmem:[#allocation2 + $0x39] sm:$0xff] }
  0x32   : > { %3046 = vmatmul.msk.f32.gmra.mxu1 %vm214_vm1, %v3539_v48  ;;  %226 = vst.msk [vmem:[#allocation2 + $0x30] sm:$0x1] %vm223_vm3, %v3362_v4  ;;  %v3652_v2 = vld [vmem:[#allocation2 + $0x169] sm:$0xff]  ;;  %v3727_v19 = vld [vmem:[#allocation2 + $0x38] sm:$0xff] }
  0x33   : > { %3054 = vmatmul.msk.f32.gmra.mxu2 %vm214_vm1, %v3542_v49  ;;  %227 = vst.msk [vmem:[#allocation2 + $0x48] sm:$0x1] %vm223_vm3, %v3362_v4  ;;  %v3672_v3 = vld [vmem:[#allocation2 + $0xb1] sm:$0xff] }
  0x34   : > { %3062 = vmatmul.msk.f32.gmra.mxu3 %vm214_vm1, %v3544_v50  ;;  %228 = vst.msk [vmem:[#allocation2 + $0x60] sm:$0x1] %vm223_vm3, %v3362_v4  ;;  %v3676_v5 = vld [vmem:[#allocation2 + $0x111] sm:$0xff] }
  0x35   : > { %229 = vst.msk [vmem:[#allocation2 + $0x78] sm:$0x1] %vm223_vm3, %v3362_v4  ;;  %v3626_v62 = vld [vmem:[#allocation2 + $0x49] sm:$0xff]  ;;  %v3736_v21 = vld [vmem:[#allocation2 + $0x32] sm:$0xff] }
  0x36   : > { %3039 = vmatmul.msk.f32.gmra.mxu0 %vm214_vm1, %v3550_v51  ;;  %230 = vst.msk [vmem:[#allocation2 + $0x90] sm:$0x1] %vm223_vm3, %v3362_v4  ;;  %v3680_v6 = vld [vmem:[#allocation2 + $0x171] sm:$0xff] }
  0x37   : > { %231 = vst.msk [vmem:[#allocation2 + $0xa8] sm:$0x1] %vm223_vm3, %v3362_v4  ;;  %v293_v8 = vld [vmem:[#allocation2] sm:$0xff] }
  0x38   : > { %232 = vst.msk [vmem:[#allocation2 + $0xc0] sm:$0x1] %vm223_vm3, %v3362_v4  ;;  %v1063_v10 = vld [vmem:[#allocation2 + $0x18] sm:$0xff] }
  0x39   : > { %233 = vst.msk [vmem:[#allocation2 + $0xd8] sm:$0x1] %vm223_vm3, %v3362_v4  ;;  %v3716_v15 = vld [vmem:[#allocation2 + $0x30] sm:$0xff] }
  0x3a   : > { %3047 = vmatmul.msk.f32.gmra.mxu1 %vm214_vm1, %v3564_v52  ;;  %234 = vst.msk [vmem:[#allocation2 + $0xf0] sm:$0x1] %vm223_vm3, %v3362_v4  ;;  %v3738_v22 = vld [vmem:[#allocation2 + $0x48] sm:$0xff] }
  0x3b   : > { %3055 = vmatmul.msk.f32.gmra.mxu2 %vm214_vm1, %v3568_v53  ;;  %235 = vst.msk [vmem:[#allocation2 + $0x108] sm:$0x1] %vm223_vm3, %v3362_v4  ;;  %v3762_v27 = vld [vmem:[#allocation2 + $0x60] sm:$0xff] }
  0x3c   : > { %3063 = vmatmul.msk.f32.gmra.mxu3 %vm214_vm1, %v3572_v54  ;;  %236 = vst.msk [vmem:[#allocation2 + $0x120] sm:$0x1] %vm223_vm3, %v3362_v4 }
  0x3d   : > { %237 = vst.msk [vmem:[#allocation2 + $0x138] sm:$0x1] %vm223_vm3, %v3362_v4  ;;  %v3828_v47 = vld [vmem:[#allocation2 + $0x90] sm:$0xff] }
  0x3e   : > { %3040 = vmatmul.msk.f32.gmra.mxu0 %vm214_vm1, %v3582_v55  ;;  %238 = vst.msk [vmem:[#allocation2 + $0x150] sm:$0x1] %vm223_vm3, %v3362_v4 }
  0x3f   : > { %239 = vst.msk [vmem:[#allocation2 + $0x168] sm:$0x1] %vm223_vm3, %v3362_v4 }
  0x40   : > { %240 = vst.msk [vmem:[#allocation2 + $0x180] sm:$0x1] %vm223_vm3, %v3362_v4 }
  0x41   : > { %241 = vst.msk [vmem:[#allocation2 + $0x198] sm:$0x1] %vm223_vm3, %v3362_v4 }
  0x42   : > { %3048 = vmatmul.msk.f32.gmra.mxu1 %vm214_vm1, %v3596_v57  ;;  %242 = vst.msk [vmem:[#allocation2 + $0x11] sm:$0x1] %vm223_vm3, %v3362_v4 }
  0x43   : > { %3056 = vmatmul.msk.f32.gmra.mxu2 %vm214_vm1, %v3610_v60  ;;  %243 = vst.msk [vmem:[#allocation2 + $0x29] sm:$0x1] %vm223_vm3, %v3362_v4 }
  0x44   : > { %3064 = vmatmul.msk.f32.gmra.mxu3 %vm214_vm1, %v3616_v61  ;;  %244 = vst.msk [vmem:[#allocation2 + $0x41] sm:$0x1] %vm223_vm3, %v3362_v4 }
  0x45   : > { %245 = vst.msk [vmem:[#allocation2 + $0x59] sm:$0x1] %vm223_vm3, %v3362_v4 }
  0x46   : > { %3041 = vmatmul.msk.f32.gmra.mxu0 %vm214_vm1, %v3626_v62  ;;  %246 = vst.msk [vmem:[#allocation2 + $0x71] sm:$0x1] %vm223_vm3, %v3362_v4 }
  0x47   : > { %247 = vst.msk [vmem:[#allocation2 + $0x89] sm:$0x1] %vm223_vm3, %v3362_v4 }
  0x48   : > { %248 = vst.msk [vmem:[#allocation2 + $0xa1] sm:$0x1] %vm223_vm3, %v3362_v4 }
  0x49   : > { %249 = vst.msk [vmem:[#allocation2 + $0xb9] sm:$0x1] %vm223_vm3, %v3362_v4  ;;  %v786_v13 = vld [vmem:[#allocation2 + $0xa] sm:$0xff] }
  0x4a   : > { %3049 = vmatmul.msk.f32.gmra.mxu1 %vm214_vm1, %v3640_v63  ;;  %250 = vst.msk [vmem:[#allocation2 + $0xd1] sm:$0x1] %vm223_vm3, %v3362_v4  ;;  %v3725_v17 = vld [vmem:[#allocation2 + $0x22] sm:$0xff] }
  0x4b   : > { %3057 = vmatmul.msk.f32.gmra.mxu2 %vm214_vm1, %v3647_v1  ;;  %251 = vst.msk [vmem:[#allocation2 + $0xe9] sm:$0x1] %vm223_vm3, %v3362_v4  ;;  %v3748_v23 = vld [vmem:[#allocation2 + $0x3a] sm:$0xff] }
  0x4c   : > { %3065 = vmatmul.msk.f32.gmra.mxu3 %vm214_vm1, %v3652_v2  ;;  %252 = vst.msk [vmem:[#allocation2 + $0x101] sm:$0x1] %vm223_vm3, %v3362_v4 }
  0x4d   : > { %253 = vst.msk [vmem:[#allocation2 + $0x119] sm:$0x1] %vm223_vm3, %v3362_v4  ;;  %v3806_v39 = vld [vmem:[#allocation2 + $0x6a] sm:$0xff] }
  0x4e   : > { %254 = vst.msk [vmem:[#allocation2 + $0x131] sm:$0x1] %vm223_vm3, %v3362_v4  ;;  %v3846_v59 = vld [vmem:[#allocation2 + $0x82] sm:$0xff] }
  0x4f   : > { %255 = vst.msk [vmem:[#allocation2 + $0x149] sm:$0x1] %vm223_vm3, %v3362_v4 }
  0x50   : > { %256 = vst.msk [vmem:[#allocation2 + $0x161] sm:$0x1] %vm223_vm3, %v3362_v4 }
  0x51   : > { %257 = vst.msk [vmem:[#allocation2 + $0x179] sm:$0x1] %vm223_vm3, %v3362_v4 }
  0x52   : > { %3050 = vmatmul.msk.f32.gmra.mxu1 %vm214_vm1, %v3672_v3  ;;  %258 = vst.msk [vmem:[#allocation2 + $0x191] sm:$0x1] %vm223_vm3, %v3362_v4 }
  0x53   : > { %3058 = vmatmul.msk.f32.gmra.mxu2 %vm214_vm1, %v3676_v5  ;;  %259 = vst.msk [vmem:[#allocation2 + $0x1a9] sm:$0x1] %vm223_vm3, %v3362_v4  ;;  %v3714_v4 = vld [vmem:[#allocation2 + $0x1a] sm:$0xff] }
  0x54   : > { %3066 = vmatmul.msk.f32.gmra.mxu3 %vm214_vm1, %v3680_v6  ;;  %266 = vst.msk [vmem:[#allocation2 + $0x51] sm:$0xff] %vm214_vm1, %v187_v7 }
  0x55   : > { %4686 = vst [vmem:[#allocation3_spill] sm:$0xff] %v3788_v34 }
  0x56   : > { %4689 = vst [vmem:[#allocation6_spill] sm:$0xff] %v3806_v39 }
  0x57   : > { %4690 = vst [vmem:[#allocation7_spill] sm:$0xff] %v3810_v43 }
  0x58   : > { %4692 = vst [vmem:[#allocation9_spill] sm:$0xff] %v3826_v46 }
  0x59   : > { %4693 = vst [vmem:[#allocation10_spill] sm:$0xff] %v3828_v47 }
  0x5a   : > { %3068 = vmatmul.msk.f32.vlgmr.msrb.gmra.mxu1 %vm214_vm1, %v293_v8  ;;  %4695 = vst [vmem:[#allocation12_spill] sm:$0xff] %v3846_v59 }
  0x5b   : > { %3102 = vmatmul.msk.f32.vlgmr.msrb.gmra.mxu2 %vm214_vm1, %v785_v9  ;;  %v3705_v11 = vld [vmem:[#allocation2 + $0x51] sm:$0xff]  ;;  %4696 = vst [vmem:[#allocation13_spill] sm:$0xff] %v3848_v0 }
  0x5c   : > { %3136 = vmatmul.msk.f32.vlgmr.msrb.gmra.mxu3 %vm214_vm1, %v1063_v10  ;;  %3042 = vmatmul.msk.f32.gmra.mxu0 %vm214_vm1, %v3705_v11  ;;  %v3750_v24 = vld [vmem:[#allocation2 + $0x50] sm:$0xff] }
  0x5d   : > { %v3760_v25 = vld [vmem:[#allocation2 + $0x4a] sm:$0xff]  ;;  %v3772_v29 = vld [vmem:[#allocation2 + $0x52] sm:$0xff] }
  0x62   : > { %3069 = vmatmul.msk.f32.gmra.mxu1 %vm214_vm1, %v294_v12  ;;  %v3868_v12 = vld [vmem:[#allocation2 + $0xa8] sm:$0xff] }
  0x63   : > { %3103 = vmatmul.msk.f32.gmra.mxu2 %vm214_vm1, %v786_v13  ;;  %4699 = vst [vmem:[#allocation16_spill] sm:$0xff] %v3868_v12 }
  0x64   : > { %3137 = vmatmul.msk.f32.gmra.mxu3 %vm214_vm1, %v1064_v14  ;;  %3170 = vmatmul.msk.f32.vlgmr.msrb.gmra.mxu0 %vm214_vm1, %v3501_v35  ;;  %v3790_v35 = vld [vmem:[#allocation2 + $0x78] sm:$0xff] }
  0x65   : > { %4687 = vst [vmem:[#allocation4_spill] sm:$0xff] %v3790_v35 }
  0x6a   : > { %3070 = vmatmul.msk.f32.gmra.mxu1 %vm214_vm1, %v1063_v10  ;;  %v3866_v10 = vld [vmem:[#allocation2 + $0x92] sm:$0xff] }
  0x6b   : > { %3104 = vmatmul.msk.f32.gmra.mxu2 %vm214_vm1, %v3714_v4  ;;  %4698 = vst [vmem:[#allocation15_spill] sm:$0xff] %v3866_v10 }
  0x6c   : > { %3138 = vmatmul.msk.f32.gmra.mxu3 %vm214_vm1, %v3716_v15  ;;  %3171 = vmatmul.msk.f32.gmra.mxu0 %vm214_vm1, %v3527_v45 }
  0x72   : > { %3071 = vmatmul.msk.f32.gmra.mxu1 %vm214_vm1, %v1064_v14 }
  0x73   : > { %3105 = vmatmul.msk.f32.gmra.mxu2 %vm214_vm1, %v3725_v17 }
  0x74   : > { %3139 = vmatmul.msk.f32.gmra.mxu3 %vm214_vm1, %v3727_v19  ;;  %3172 = vmatmul.msk.f32.gmra.mxu0 %vm214_vm1, %v3550_v51 }
  0x7a   : > { %3072 = vmatmul.msk.f32.gmra.mxu1 %vm214_vm1, %v3716_v15 }
  0x7b   : > { %3106 = vmatmul.msk.f32.gmra.mxu2 %vm214_vm1, %v3736_v21 }
  0x7c   : > { %3140 = vmatmul.msk.f32.gmra.mxu3 %vm214_vm1, %v3738_v22  ;;  %3173 = vmatmul.msk.f32.gmra.mxu0 %vm214_vm1, %v3582_v55 }
  0x82   : > { %3073 = vmatmul.msk.f32.gmra.mxu1 %vm214_vm1, %v3727_v19 }
  0x83   : > { %3107 = vmatmul.msk.f32.gmra.mxu2 %vm214_vm1, %v3748_v23 }
  0x84   : > { %3141 = vmatmul.msk.f32.gmra.mxu3 %vm214_vm1, %v3750_v24  ;;  %3174 = vmatmul.msk.f32.gmra.mxu0 %vm214_vm1, %v3626_v62 }
  0x8a   : > { %3074 = vmatmul.msk.f32.gmra.mxu1 %vm214_vm1, %v3738_v22 }
  0x8b   : > { %3108 = vmatmul.msk.f32.gmra.mxu2 %vm214_vm1, %v3760_v25 }
  0x8c   : > { %3142 = vmatmul.msk.f32.gmra.mxu3 %vm214_vm1, %v3762_v27  ;;  %3175 = vmatmul.msk.f32.gmra.mxu0 %vm214_vm1, %v3705_v11 }
  0x92   : > { %3075 = vmatmul.msk.f32.gmra.mxu1 %vm214_vm1, %v3750_v24 }
  0x93   : > { %3109 = vmatmul.msk.f32.gmra.mxu2 %vm214_vm1, %v3772_v29  ;;  %v3782_v32 = vpop.f32.mrf.mxu0 }
  0x94   : > { %3143 = vmatmul.msk.f32.gmra.mxu3 %vm214_vm1, %v3774_v31  ;;  %3176 = vmatmul.msk.f32.gmra.mxu0 %vm214_vm1, %v3451_v16 }
  0x97   : > { %v3786_v33 = vpop.f32.mrf.mxu1 }
  0x9a   : > { %3076 = vmatmul.msk.f32.gmra.mxu1 %vm214_vm1, %v3762_v27 }
  0x9b   : > { %3110 = vmatmul.msk.f32.gmra.mxu2 %vm214_vm1, %v3788_v34  ;;  %v3808_v41 = vpop.f32.mrf.mxu0  ;;  %v3961_v34 = vld [vmem:[#allocation2 + $0xe0] sm:$0xff] }
  0x9c   : > { %3144 = vmatmul.msk.f32.gmra.mxu3 %vm214_vm1, %v3790_v35  ;;  %3177 = vmatmul.msk.f32.gmra.mxu0 %vm214_vm1, %v3477_v26 }
  0x9e   : > { %v3798_v36 = vpop.f32.mrf.mxu2 }
  0x9f   : > { %v3802_v16 = vpop.f32.mrf.mxu1  ;;  %v3804_v37 = vpop.f32.mrf.mxu3 }
  0xa0   : > { %4688 = vst [vmem:[#allocation5_spill] sm:$0xff] %v3804_v37  ;;  %v3906_v37 = vld [vmem:[#allocation2 + $0xaa] sm:$0xff] }
  0xa1   : > { %4704 = vst [vmem:[#allocation21_spill] sm:$0xff] %v3906_v37 }
  0xa2   : > { %3077 = vmatmul.msk.f32.gmra.mxu1 %vm214_vm1, %v3774_v31 }
  0xa3   : > { %3111 = vmatmul.msk.f32.gmra.mxu2 %vm214_vm1, %v3806_v39  ;;  %v3832_v51 = vpop.f32.mrf.mxu0  ;;  %v3944_v39 = vld [vmem:[#allocation2 + $0xd8] sm:$0xff] }
  0xa4   : > { %3145 = vmatmul.msk.f32.gmra.mxu3 %vm214_vm1, %v3810_v43  ;;  %3178 = vmatmul.msk.f32.gmra.mxu0 %vm214_vm1, %v3509_v38 }
  0xa6   : > { %v3818_v26 = vpop.f32.mrf.mxu2 }
  0xa7   : > { %v3822_v44 = vpop.f32.mrf.mxu1  ;;  %v3824_v45 = vpop.f32.mrf.mxu3 }
  0xa8   : > { %4691 = vst [vmem:[#allocation8_spill] sm:$0xff] %v3824_v45  ;;  %v3888_v45 = vld [vmem:[#allocation2 + $0xb0] sm:$0xff] }
  0xa9   : > { %4702 = vst [vmem:[#allocation19_spill] sm:$0xff] %v3888_v45 }
  0xaa   : > { %3078 = vmatmul.msk.f32.gmra.mxu1 %vm214_vm1, %v3790_v35  ;;  %v3957_v35 = vld [vmem:[#allocation2 + $0xca] sm:$0xff] }
  0xab   : > { %3112 = vmatmul.msk.f32.gmra.mxu2 %vm214_vm1, %v3826_v46  ;;  %v3856_v7 = vpop.f32.mrf.mxu0  ;;  %v3926_v46 = vld [vmem:[#allocation2 + $0xc8] sm:$0xff] }
  0xac   : > { %3146 = vmatmul.msk.f32.gmra.mxu3 %vm214_vm1, %v3828_v47  ;;  %3179 = vmatmul.msk.f32.gmra.mxu0 %vm214_vm1, %v3539_v48 }
  0xae   : > { %v3838_v38 = vpop.f32.mrf.mxu2 }
  0xaf   : > { %v3842_v56 = vpop.f32.mrf.mxu1  ;;  %v3844_v58 = vpop.f32.mrf.mxu3 }
  0xb0   : > { %4694 = vst [vmem:[#allocation11_spill] sm:$0xff] %v3844_v58  ;;  %v3886_v58 = vld [vmem:[#allocation2 + $0x9a] sm:$0xff] }
  0xb1   : > { %4701 = vst [vmem:[#allocation18_spill] sm:$0xff] %v3886_v58 }
  0xb2   : > { %3079 = vmatmul.msk.f32.gmra.mxu1 %vm214_vm1, %v3810_v43  ;;  %v3942_v43 = vld [vmem:[#allocation2 + $0xc2] sm:$0xff] }
  0xb3   : > { %3113 = vmatmul.msk.f32.gmra.mxu2 %vm214_vm1, %v3846_v59  ;;  %4711 = vst [vmem:[#allocation28_spill] sm:$0xff] %v3942_v43 }
  0xb4   : > { %3147 = vmatmul.msk.f32.gmra.mxu3 %vm214_vm1, %v3848_v0  ;;  %3180 = vmatmul.msk.f32.gmra.mxu0 %vm214_vm1, %v3564_v52  ;;  %v3878_v52 = vpop.f32.mrf.mxu0 }
  0xb6   : > { %v3858_v48 = vpop.f32.mrf.mxu2 }
  0xb7   : > { %v3862_v8 = vpop.f32.mrf.mxu1  ;;  %v3864_v9 = vpop.f32.mrf.mxu3 }
  0xb8   : > { %4697 = vst [vmem:[#allocation14_spill] sm:$0xff] %v3864_v9 }
  0xba   : > { %3080 = vmatmul.msk.f32.gmra.mxu1 %vm214_vm1, %v3828_v47  ;;  %v3924_v47 = vld [vmem:[#allocation2 + $0xb2] sm:$0xff] }
  0xbb   : > { %3114 = vmatmul.msk.f32.gmra.mxu2 %vm214_vm1, %v3866_v10  ;;  %4708 = vst [vmem:[#allocation25_spill] sm:$0xff] %v3924_v47 }
  0xbc   : > { %3148 = vmatmul.msk.f32.gmra.mxu3 %vm214_vm1, %v3868_v12  ;;  %3181 = vmatmul.msk.f32.gmra.mxu0 %vm214_vm1, %v3596_v57  ;;  %v3904_v59 = vpop.f32.mrf.mxu0 }
  0xbe   : > { %v3876_v13 = vpop.f32.mrf.mxu2 }
  0xbf   : > { %v3882_v14 = vpop.f32.mrf.mxu1  ;;  %v3884_v9 = vpop.f32.mrf.mxu3 }
  0xc0   : > { %4700 = vst [vmem:[#allocation17_spill] sm:$0xff] %v3884_v9 }
  0xc2   : > { %3081 = vmatmul.msk.f32.gmra.mxu1 %vm214_vm1, %v3848_v0  ;;  %v3908_v0 = vld [vmem:[#allocation2 + $0xc0] sm:$0xff] }
  0xc3   : > { %3115 = vmatmul.msk.f32.gmra.mxu2 %vm214_vm1, %v3886_v58  ;;  %4705 = vst [vmem:[#allocation22_spill] sm:$0xff] %v3908_v0 }
  0xc4   : > { %3149 = vmatmul.msk.f32.gmra.mxu3 %vm214_vm1, %v3888_v45  ;;  %3182 = vmatmul.msk.f32.gmra.mxu0 %vm214_vm1, %v3640_v63 }
  0xc6   : > { %v3896_v10 = vpop.f32.mrf.mxu2 }
  0xc7   : > { %v3900_v57 = vpop.f32.mrf.mxu1  ;;  %v3902_v9 = vpop.f32.mrf.mxu3 }
  0xc8   : > { %4703 = vst [vmem:[#allocation20_spill] sm:$0xff] %v3902_v9 }
  0xca   : > { %3082 = vmatmul.msk.f32.gmra.mxu1 %vm214_vm1, %v3868_v12  ;;  %v3928_v12 = vpop.f32.mrf.mxu0 }
  0xcb   : > { %3116 = vmatmul.msk.f32.gmra.mxu2 %vm214_vm1, %v3906_v37 }
  0xcc   : > { %3150 = vmatmul.msk.f32.gmra.mxu3 %vm214_vm1, %v3908_v0  ;;  %3183 = vmatmul.msk.f32.gmra.mxu0 %vm214_vm1, %v3672_v3 }
  0xce   : > { %v3916_v63 = vpop.f32.mrf.mxu2 }
  0xcf   : > { %4706 = vst [vmem:[#allocation23_spill] sm:$0xff] %v3916_v63  ;;  %v3920_v9 = vpop.f32.mrf.mxu1  ;;  %v3922_v58 = vpop.f32.mrf.mxu3 }
  0xd0   : > { %4707 = vst [vmem:[#allocation24_spill] sm:$0xff] %v3922_v58 }
  0xd2   : > { %3083 = vmatmul.msk.f32.gmra.mxu1 %vm214_vm1, %v3888_v45 }
  0xd3   : > { %3117 = vmatmul.msk.f32.gmra.mxu2 %vm214_vm1, %v3924_v47 }
  0xd4   : > { %3151 = vmatmul.msk.f32.gmra.mxu3 %vm214_vm1, %v3926_v46  ;;  %3184 = vmatmul.msk.f32.gmra.mxu0 %vm214_vm1, %v3457_v18 }
  0xd6   : > { %v3936_v3 = vpop.f32.mrf.mxu2 }
  0xd7   : > { %4709 = vst [vmem:[#allocation26_spill] sm:$0xff] %v3936_v3  ;;  %v3940_v58 = vpop.f32.mrf.mxu3  ;;  %v689_v37 = vpop.f32.mrf.mxu1 }
  0xd8   : > { %4710 = vst [vmem:[#allocation27_spill] sm:$0xff] %v3940_v58  ;;  %v690_v18 = vadd.f32 %v689_v37, %v3782_v32 }
  0xd9   : > { %v3950_v47 = vpop.f32.mrf.mxu0 }
  0xda   : > { %3084 = vmatmul.msk.f32.gmra.mxu1 %vm214_vm1, %v3908_v0 }
  0xdb   : > { %3118 = vmatmul.msk.f32.gmra.mxu2 %vm214_vm1, %v3942_v43  ;;  %v3978_v43 = vld [vmem:[#allocation2 + $0xf0] sm:$0xff] }
  0xdc   : > { %3152 = vmatmul.msk.f32.gmra.mxu3 %vm214_vm1, %v3944_v39  ;;  %3185 = vmatmul.msk.f32.gmra.mxu0 %vm214_vm1, %v3481_v28 }
  0xde   : > { %v935_v45 = vpop.f32.mrf.mxu2 }
  0xdf   : > { %v1031_v58 = vadd.f32 %v935_v45, %v690_v18  ;;  %v692_v3 = vpop.f32.mrf.mxu1  ;;  %v1213_v63 = vpop.f32.mrf.mxu3  ;;  %v3974_v18 = vld [vmem:[#allocation2 + $0xda] sm:$0xff] }
  0xe0   : > { %v693_v28 = vadd.f32 %v692_v3, %v3808_v41 }
  0xe1   : > { %v3959_v0 = vadd.f32 %v1213_v63, %v1031_v58  ;;  %v3967_v32 = vpop.f32.mrf.mxu0 }
  0xe2   : > { %3085 = vmatmul.msk.f32.gmra.mxu1 %vm214_vm1, %v3926_v46  ;;  %4713 = vst [vmem:[#allocation30_spill] sm:$0xff] %v3967_v32  ;;  %v3995_v32 = vld [vmem:[#allocation2 + $0xf8] sm:$0xff] }
  0xe3   : > { %4712 = vst [vmem:[#allocation29_spill] sm:$0xff] %v3959_v0  ;;  %3119 = vmatmul.msk.f32.gmra.mxu2 %vm214_vm1, %v3957_v35 }
  0xe4   : > { %3153 = vmatmul.msk.f32.gmra.mxu3 %vm214_vm1, %v3961_v34  ;;  %3186 = vmatmul.msk.f32.gmra.mxu0 %vm214_vm1, %v3513_v40 }
  0xe6   : > { %v938_v37 = vpop.f32.mrf.mxu2 }
  0xe7   : > { %v1032_v45 = vadd.f32 %v938_v37, %v693_v28  ;;  %v695_v58 = vpop.f32.mrf.mxu1  ;;  %v1216_v63 = vpop.f32.mrf.mxu3 }
  0xe8   : > { %v696_v40 = vadd.f32 %v695_v58, %v3832_v51 }
  0xe9   : > { %v3976_v0 = vadd.f32 %v1216_v63, %v1032_v45  ;;  %v3984_v41 = vpop.f32.mrf.mxu0  ;;  %v3991_v63 = vld [vmem:[#allocation2 + $0xe2] sm:$0xff] }
  0xea   : > { %3086 = vmatmul.msk.f32.gmra.mxu1 %vm214_vm1, %v3944_v39  ;;  %4715 = vst [vmem:[#allocation32_spill] sm:$0xff] %v3984_v41  ;;  %v4012_v41 = vld [vmem:[#allocation2 + $0x108] sm:$0xff] }
  0xeb   : > { %4714 = vst [vmem:[#allocation31_spill] sm:$0xff] %v3976_v0  ;;  %3120 = vmatmul.msk.f32.gmra.mxu2 %vm214_vm1, %v3974_v18 }
  0xec   : > { %3154 = vmatmul.msk.f32.gmra.mxu3 %vm214_vm1, %v3978_v43  ;;  %3187 = vmatmul.msk.f32.gmra.mxu0 %vm214_vm1, %v3542_v49 }
  0xee   : > { %v941_v3 = vpop.f32.mrf.mxu2 }
  0xef   : > { %v1033_v28 = vadd.f32 %v941_v3, %v696_v40  ;;  %v698_v37 = vpop.f32.mrf.mxu1  ;;  %v1219_v45 = vpop.f32.mrf.mxu3 }
  0xf0   : > { %v699_v49 = vadd.f32 %v698_v37, %v3856_v7 }
  0xf1   : > { %v3993_v0 = vadd.f32 %v1219_v45, %v1033_v28  ;;  %v4001_v51 = vpop.f32.mrf.mxu0  ;;  %v4008_v45 = vld [vmem:[#allocation2 + $0xf2] sm:$0xff] }
  0xf2   : > { %3087 = vmatmul.msk.f32.gmra.mxu1 %vm214_vm1, %v3961_v34  ;;  %4717 = vst [vmem:[#allocation34_spill] sm:$0xff] %v4001_v51  ;;  %v4029_v51 = vld [vmem:[#allocation2 + $0x110] sm:$0xff] }
  0xf3   : > { %4716 = vst [vmem:[#allocation33_spill] sm:$0xff] %v3993_v0  ;;  %3121 = vmatmul.msk.f32.gmra.mxu2 %vm214_vm1, %v3991_v63 }
  0xf4   : > { %3155 = vmatmul.msk.f32.gmra.mxu3 %vm214_vm1, %v3995_v32  ;;  %3188 = vmatmul.msk.f32.gmra.mxu0 %vm214_vm1, %v3568_v53 }
  0xf6   : > { %v944_v58 = vpop.f32.mrf.mxu2 }
  0xf7   : > { %v1034_v40 = vadd.f32 %v944_v58, %v699_v49  ;;  %v701_v3 = vpop.f32.mrf.mxu1  ;;  %v1222_v28 = vpop.f32.mrf.mxu3 }
  0xf8   : > { %v702_v53 = vadd.f32 %v701_v3, %v3878_v52 }
  0xf9   : > { %v4010_v0 = vadd.f32 %v1222_v28, %v1034_v40  ;;  %v4018_v7 = vpop.f32.mrf.mxu0  ;;  %v4025_v28 = vld [vmem:[#allocation2 + $0xfa] sm:$0xff] }
  0xfa   : > { %3088 = vmatmul.msk.f32.gmra.mxu1 %vm214_vm1, %v3978_v43  ;;  %4719 = vst [vmem:[#allocation36_spill] sm:$0xff] %v4018_v7  ;;  %v4046_v7 = vld [vmem:[#allocation2 + $0x120] sm:$0xff] }
  0xfb   : > { %4718 = vst [vmem:[#allocation35_spill] sm:$0xff] %v4010_v0  ;;  %3122 = vmatmul.msk.f32.gmra.mxu2 %vm214_vm1, %v4008_v45 }
  0xfc   : > { %3156 = vmatmul.msk.f32.gmra.mxu3 %vm214_vm1, %v4012_v41  ;;  %3189 = vmatmul.msk.f32.gmra.mxu0 %vm214_vm1, %v3610_v60 }
  0xfe   : > { %v947_v37 = vpop.f32.mrf.mxu2 }
  0xff   : > { %v1035_v49 = vadd.f32 %v947_v37, %v702_v53  ;;  %v704_v58 = vpop.f32.mrf.mxu1  ;;  %v1225_v40 = vpop.f32.mrf.mxu3 }
 0x100   : > { %v705_v60 = vadd.f32 %v704_v58, %v3904_v59 }
 0x101   : > { %v4027_v0 = vadd.f32 %v1225_v40, %v1035_v49  ;;  %v4035_v52 = vpop.f32.mrf.mxu0  ;;  %v4042_v40 = vld [vmem:[#allocation2 + $0x10a] sm:$0xff] }
 0x102   : > { %3089 = vmatmul.msk.f32.gmra.mxu1 %vm214_vm1, %v3995_v32  ;;  %4721 = vst [vmem:[#allocation38_spill] sm:$0xff] %v4035_v52  ;;  %v4063_v52 = vld [vmem:[#allocation2 + $0x128] sm:$0xff] }
 0x103   : > { %4720 = vst [vmem:[#allocation37_spill] sm:$0xff] %v4027_v0  ;;  %3123 = vmatmul.msk.f32.gmra.mxu2 %vm214_vm1, %v4025_v28 }
 0x104   : > { %3157 = vmatmul.msk.f32.gmra.mxu3 %vm214_vm1, %v4029_v51  ;;  %3190 = vmatmul.msk.f32.gmra.mxu0 %vm214_vm1, %v3647_v1 }
 0x106   : > { %v950_v3 = vpop.f32.mrf.mxu2 }
 0x107   : > { %v1036_v53 = vadd.f32 %v950_v3, %v705_v60  ;;  %v707_v37 = vpop.f32.mrf.mxu1  ;;  %v1228_v49 = vpop.f32.mrf.mxu3 }
 0x108   : > { %v708_v1 = vadd.f32 %v707_v37, %v3928_v12 }
 0x109   : > { %v4044_v0 = vadd.f32 %v1228_v49, %v1036_v53  ;;  %v4052_v59 = vpop.f32.mrf.mxu0  ;;  %v4059_v49 = vld [vmem:[#allocation2 + $0x112] sm:$0xff] }
 0x10a   : > { %3090 = vmatmul.msk.f32.gmra.mxu1 %vm214_vm1, %v4012_v41  ;;  %4723 = vst [vmem:[#allocation40_spill] sm:$0xff] %v4052_v59  ;;  %v1087_v59 = vld [vmem:[#allocation2 + $0x138] sm:$0xff] }
 0x10b   : > { %4722 = vst [vmem:[#allocation39_spill] sm:$0xff] %v4044_v0  ;;  %3124 = vmatmul.msk.f32.gmra.mxu2 %vm214_vm1, %v4042_v40 }
 0x10c   : > { %3158 = vmatmul.msk.f32.gmra.mxu3 %vm214_vm1, %v4046_v7  ;;  %3191 = vmatmul.msk.f32.gmra.mxu0 %vm214_vm1, %v3676_v5 }
 0x10e   : > { %v953_v58 = vpop.f32.mrf.mxu2 }
 0x10f   : > { %v1037_v60 = vadd.f32 %v953_v58, %v708_v1  ;;  %v710_v3 = vpop.f32.mrf.mxu1  ;;  %v1231_v53 = vpop.f32.mrf.mxu3 }
 0x110   : > { %v711_v5 = vadd.f32 %v710_v3, %v3950_v47 }
 0x111   : > { %v4061_v0 = vadd.f32 %v1231_v53, %v1037_v60  ;;  %v4069_v12 = vpop.f32.mrf.mxu0  ;;  %v4076_v53 = vld [vmem:[#allocation2 + $0x122] sm:$0xff] }
 0x112   : > { %3091 = vmatmul.msk.f32.gmra.mxu1 %vm214_vm1, %v4029_v51  ;;  %4725 = vst [vmem:[#allocation42_spill] sm:$0xff] %v4069_v12 }
 0x113   : > { %4724 = vst [vmem:[#allocation41_spill] sm:$0xff] %v4061_v0  ;;  %3125 = vmatmul.msk.f32.gmra.mxu2 %vm214_vm1, %v4059_v49 }
 0x114   : > { %3159 = vmatmul.msk.f32.gmra.mxu3 %vm214_vm1, %v4063_v52  ;;  %3192 = vmatmul.msk.f32.gmra.mxu0 %vm214_vm1, %v3464_v20 }
 0x116   : > { %v956_v37 = vpop.f32.mrf.mxu2 }
 0x117   : > { %v1038_v1 = vadd.f32 %v956_v37, %v711_v5  ;;  %v713_v58 = vpop.f32.mrf.mxu1  ;;  %v1234_v60 = vpop.f32.mrf.mxu3 }
 0x118   : > { %v714_v20 = vadd.f32 %v713_v58, %v3786_v33  ;;  %v212_v58 = vld [vmem:[%s3427_s27 + $0xf0] sm:$0xff] }
 0x119   : > { %v4078_v0 = vadd.f32 %v1234_v60, %v1038_v1  ;;  %v4084_v12 = vpop.f32.mrf.mxu0  ;;  %v4090_v1 = vld [vmem:[#allocation2 + $0x12a] sm:$0xff]  ;;  %291 = vst.msk [vmem:[#allocation2 + $0x181] sm:$0xff] %vm214_vm1, %v212_v58 }
 0x11a   : > { %3092 = vmatmul.msk.f32.gmra.mxu1 %vm214_vm1, %v4046_v7  ;;  %4727 = vst [vmem:[#allocation44_spill] sm:$0xff] %v4084_v12 }
 0x11b   : > { %4726 = vst [vmem:[#allocation43_spill] sm:$0xff] %v4078_v0  ;;  %3126 = vmatmul.msk.f32.gmra.mxu2 %vm214_vm1, %v4076_v53  ;;  %v1088_v0 = vld [vmem:[#allocation2 + $0x140] sm:$0xff] }
 0x11c   : > { %3160 = vmatmul.msk.f32.gmra.mxu3 %vm214_vm1, %v1087_v59  ;;  %3193 = vmatmul.msk.f32.gmra.mxu0 %vm214_vm1, %v3485_v30  ;;  %4728 = vst [vmem:[#allocation45_spill] sm:$0xff] %v4090_v1 }
 0x11e   : > { %v959_v47 = vpop.f32.mrf.mxu2 }
 0x11f   : > { %v1039_v3 = vadd.f32 %v959_v47, %v714_v20  ;;  %v716_v5 = vpop.f32.mrf.mxu1  ;;  %v1237_v37 = vpop.f32.mrf.mxu3 }
 0x120   : > { %v717_v30 = vadd.f32 %v716_v5, %v3802_v16 }
 0x121   : > { %v4092_v60 = vadd.f32 %v1237_v37, %v1039_v3  ;;  %v4098_v12 = vpop.f32.mrf.mxu0  ;;  %v811_v37 = vld [vmem:[#allocation2 + $0x13a] sm:$0xff] }
 0x122   : > { %3093 = vmatmul.msk.f32.gmra.mxu1 %vm214_vm1, %v4063_v52 }
 0x123   : > { %4729 = vst [vmem:[#allocation46_spill] sm:$0xff] %v4092_v60  ;;  %3127 = vmatmul.msk.f32.gmra.mxu2 %vm214_vm1, %v4090_v1  ;;  %v1089_v1 = vld [vmem:[#allocation2 + $0x150] sm:$0xff] }
 0x124   : > { %3161 = vmatmul.msk.f32.gmra.mxu3 %vm214_vm1, %v1088_v0  ;;  %3194 = vmatmul.msk.f32.gmra.mxu0 %vm214_vm1, %v3517_v42 }
 0x126   : > { %v962_v33 = vpop.f32.mrf.mxu2 }
 0x127   : > { %v1040_v20 = vadd.f32 %v962_v33, %v717_v30  ;;  %v719_v47 = vpop.f32.mrf.mxu1  ;;  %v1240_v3 = vpop.f32.mrf.mxu3  ;;  %v213_v30 = vld [vmem:[%s3427_s27 + $0xf8] sm:$0xff] }
 0x128   : > { %v720_v5 = vadd.f32 %v719_v47, %v3822_v44  ;;  %292 = vst.msk [vmem:[#allocation2 + $0x189] sm:$0xff] %vm214_vm1, %v213_v30  ;;  %v813_v30 = vld [vmem:[#allocation2 + $0x152] sm:$0xff] }
 0x129   : > { %v4106_v60 = vadd.f32 %v1240_v3, %v1040_v20  ;;  %v4110_v16 = vpop.f32.mrf.mxu0  ;;  %v812_v3 = vld [vmem:[#allocation2 + $0x142] sm:$0xff] }
 0x12a   : > { %3094 = vmatmul.msk.f32.gmra.mxu1 %vm214_vm1, %v1087_v59  ;;  %4730 = vst [vmem:[#allocation47_spill] sm:$0xff] %v4110_v16 }
 0x12b   : > { %3128 = vmatmul.msk.f32.gmra.mxu2 %vm214_vm1, %v811_v37  ;;  %v1090_v37 = vld [vmem:[#allocation2 + $0x158] sm:$0xff] }
 0x12c   : > { %3162 = vmatmul.msk.f32.gmra.mxu3 %vm214_vm1, %v1089_v1  ;;  %3195 = vmatmul.msk.f32.gmra.mxu0 %vm214_vm1, %v3544_v50 }
 0x12e   : > { %v965_v42 = vpop.f32.mrf.mxu2 }
 0x12f   : > { %v1041_v33 = vadd.f32 %v965_v42, %v720_v5  ;;  %v722_v58 = vpop.f32.mrf.mxu1  ;;  %v1243_v20 = vpop.f32.mrf.mxu3 }
 0x130   : > { %v723_v44 = vadd.f32 %v722_v58, %v3842_v56 }
 0x131   : > { %v4118_v59 = vadd.f32 %v1243_v20, %v1041_v33  ;;  %v4122_v16 = vpop.f32.mrf.mxu0  ;;  %v1091_v20 = vld [vmem:[#allocation2 + $0x168] sm:$0xff] }
 0x132   : > { %3095 = vmatmul.msk.f32.gmra.mxu1 %vm214_vm1, %v1088_v0 }
 0x133   : > { %3129 = vmatmul.msk.f32.gmra.mxu2 %vm214_vm1, %v812_v3 }
 0x134   : > { %3163 = vmatmul.msk.f32.gmra.mxu3 %vm214_vm1, %v1090_v37  ;;  %3196 = vmatmul.msk.f32.gmra.mxu0 %vm214_vm1, %v3572_v54 }
 0x136   : > { %v968_v50 = vpop.f32.mrf.mxu2 }
 0x137   : > { %v1042_v47 = vadd.f32 %v968_v50, %v723_v44  ;;  %v725_v5 = vpop.f32.mrf.mxu1  ;;  %v1246_v42 = vpop.f32.mrf.mxu3  ;;  %v814_v50 = vld [vmem:[#allocation2 + $0x15a] sm:$0xff] }
 0x138   : > { %v726_v56 = vadd.f32 %v725_v5, %v3862_v8 }
 0x139   : > { %v4128_v33 = vadd.f32 %v1246_v42, %v1042_v47  ;;  %v4132_v0 = vpop.f32.mrf.mxu0  ;;  %v1092_v42 = vld [vmem:[#allocation2 + $0x170] sm:$0xff] }
 0x13a   : > { %3096 = vmatmul.msk.f32.gmra.mxu1 %vm214_vm1, %v1089_v1 }
 0x13b   : > { %3130 = vmatmul.msk.f32.gmra.mxu2 %vm214_vm1, %v813_v30 }
 0x13c   : > { %3164 = vmatmul.msk.f32.gmra.mxu3 %vm214_vm1, %v1091_v20  ;;  %3197 = vmatmul.msk.f32.gmra.mxu0 %vm214_vm1, %v3616_v61 }
 0x13e   : > { %v971_v58 = vpop.f32.mrf.mxu2 }
 0x13f   : > { %v1043_v54 = vadd.f32 %v971_v58, %v726_v56  ;;  %v728_v3 = vpop.f32.mrf.mxu1  ;;  %v1249_v44 = vpop.f32.mrf.mxu3  ;;  %v815_v58 = vld [vmem:[#allocation2 + $0x16a] sm:$0xff] }
 0x140   : > { %v729_v8 = vadd.f32 %v728_v3, %v3882_v14 }
 0x141   : > { %v4138_v47 = vadd.f32 %v1249_v44, %v1043_v54  ;;  %v4142_v1 = vpop.f32.mrf.mxu0  ;;  %v1093_v44 = vld [vmem:[#allocation2 + $0x180] sm:$0xff] }
 0x142   : > { %3097 = vmatmul.msk.f32.gmra.mxu1 %vm214_vm1, %v1090_v37 }
 0x143   : > { %3131 = vmatmul.msk.f32.gmra.mxu2 %vm214_vm1, %v814_v50 }
 0x144   : > { %3165 = vmatmul.msk.f32.gmra.mxu3 %vm214_vm1, %v1092_v42  ;;  %3198 = vmatmul.msk.f32.gmra.mxu0 %vm214_vm1, %v3652_v2 }
 0x146   : > { %v974_v5 = vpop.f32.mrf.mxu2 }
 0x147   : > { %v1044_v61 = vadd.f32 %v974_v5, %v729_v8  ;;  %v731_v30 = vpop.f32.mrf.mxu1  ;;  %v1252_v56 = vpop.f32.mrf.mxu3  ;;  %v816_v5 = vld [vmem:[#allocation2 + $0x172] sm:$0xff] }
 0x148   : > { %v732_v14 = vadd.f32 %v731_v30, %v3900_v57  ;;  %v1371_v57 = vld [vmem:[#allocation2 + $0x181] sm:$0xff] }
 0x149   : > { %v4148_v54 = vadd.f32 %v1252_v56, %v1044_v61  ;;  %v4152_v37 = vpop.f32.mrf.mxu0  ;;  %v1094_v56 = vld [vmem:[#allocation2 + $0x188] sm:$0xff] }
 0x14a   : > { %3098 = vmatmul.msk.f32.gmra.mxu1 %vm214_vm1, %v1091_v20 }
 0x14b   : > { %3132 = vmatmul.msk.f32.gmra.mxu2 %vm214_vm1, %v815_v58 }
 0x14c   : > { %3166 = vmatmul.msk.f32.gmra.mxu3 %vm214_vm1, %v1093_v44  ;;  %3199 = vmatmul.msk.f32.gmra.mxu0 %vm214_vm1, %v3680_v6 }
 0x14e   : > { %v977_v3 = vpop.f32.mrf.mxu2 }
 0x14f   : > { %v1045_v2 = vadd.f32 %v977_v3, %v732_v14  ;;  %v734_v50 = vpop.f32.mrf.mxu1  ;;  %v1255_v8 = vpop.f32.mrf.mxu3 }
 0x150   : > { %v735_v30 = vadd.f32 %v734_v50, %v3920_v9 }
 0x151   : > { %v4158_v61 = vadd.f32 %v1255_v8, %v1045_v2  ;;  %v4162_v20 = vpop.f32.mrf.mxu0  ;;  %v2176_v2 = vld [vmem:[#allocation2 + $0x31] sm:$0xff]  ;;  %v1372_v8 = vld [vmem:[#allocation2 + $0x189] sm:$0xff] }
 0x152   : > { %3099 = vmatmul.msk.f32.gmra.mxu1 %vm214_vm1, %v1092_v42 }
 0x153   : > { %3133 = vmatmul.msk.f32.gmra.mxu2 %vm214_vm1, %v816_v5 }
 0x154   : > { %3167 = vmatmul.msk.f32.gmra.mxu3 %vm214_vm1, %v1094_v56  ;;  %3200 = vmatmul.msk.f32.gmra.mxu0 %vm214_vm1, %v1371_v57 }
 0x156   : > { %v980_v58 = vpop.f32.mrf.mxu2 }
 0x157   : > { %v1046_v6 = vadd.f32 %v980_v58, %v735_v30  ;;  %v737_v44 = vpop.f32.mrf.mxu1  ;;  %v1258_v14 = vpop.f32.mrf.mxu3 }
 0x158   : > { %v738_v9 = vadd.f32 %v737_v44, %v3798_v36 }
 0x159   : > { %v4167_v3 = vadd.f32 %v1258_v14, %v1046_v6  ;;  %v4173_v42 = vpop.f32.mrf.mxu0 }
 0x15a   : > { %3204 = vmatmul.msk.f32.vlgmr.msra.gmra.mxu1 %vm214_vm1, %v3714_v4 }
 0x15b   : > { %3238 = vmatmul.msk.f32.vlgmr.msra.gmra.mxu2 %vm214_vm1, %v3716_v15 }
 0x15c   : > { %3272 = vmatmul.msk.f32.vlgmr.msra.gmra.mxu3 %vm214_vm1, %v2176_v2  ;;  %3201 = vmatmul.msk.f32.gmra.mxu0 %vm214_vm1, %v1372_v8 }
 0x15e   : > { %v983_v50 = vpop.f32.mrf.mxu2 }
 0x15f   : > { %v1047_v5 = vadd.f32 %v983_v50, %v738_v9  ;;  %v740_v56 = vpop.f32.mrf.mxu1  ;;  %v1261_v57 = vpop.f32.mrf.mxu3 }
 0x160   : > { %v741_v15 = vadd.f32 %v740_v56, %v3818_v26 }
 0x161   : > { %v4178_v30 = vadd.f32 %v1261_v57, %v1047_v5  ;;  %v4184_v4 = vpop.f32.mrf.mxu0 }
 0x162   : > { %3205 = vmatmul.msk.f32.gmra.mxu1 %vm214_vm1, %v3725_v17 }
 0x163   : > { %3239 = vmatmul.msk.f32.gmra.mxu2 %vm214_vm1, %v3727_v19 }
 0x164   : > { %3273 = vmatmul.msk.f32.gmra.mxu3 %vm214_vm1, %v3582_v55  ;;  %3306 = vmatmul.msk.f32.vlgmr.msra.gmra.mxu0 %vm214_vm1, %v3736_v21 }
 0x166   : > { %v986_v36 = vpop.f32.mrf.mxu2 }
 0x167   : > { %v1048_v58 = vadd.f32 %v986_v36, %v741_v15  ;;  %v743_v6 = vpop.f32.mrf.mxu1  ;;  %v1264_v44 = vpop.f32.mrf.mxu3 }
 0x168   : > { %v744_v55 = vadd.f32 %v743_v6, %v3838_v38  ;;  %v2181_v6 = vld [vmem:[#allocation2 + $0x69] sm:$0xff] }
 0x169   : > { %v4191_v14 = vadd.f32 %v1264_v44, %v1048_v58  ;;  %v4197_v17 = vpop.f32.mrf.mxu0  ;;  %v4731_v44 = vld [vmem:[#allocation3_spill] sm:$0xff] }
 0x16a   : > { %3206 = vmatmul.msk.f32.gmra.mxu1 %vm214_vm1, %v3736_v21 }
 0x16b   : > { %3240 = vmatmul.msk.f32.gmra.mxu2 %vm214_vm1, %v3738_v22 }
 0x16c   : > { %3274 = vmatmul.msk.f32.gmra.mxu3 %vm214_vm1, %v3626_v62  ;;  %3307 = vmatmul.msk.f32.gmra.mxu0 %vm214_vm1, %v3748_v23 }
 0x16e   : > { %v989_v19 = vpop.f32.mrf.mxu2 }
 0x16f   : > { %v1049_v26 = vadd.f32 %v989_v19, %v744_v55  ;;  %v746_v2 = vpop.f32.mrf.mxu1  ;;  %v1267_v8 = vpop.f32.mrf.mxu3 }
 0x170   : > { %v747_v62 = vadd.f32 %v746_v2, %v3858_v48 }
 0x171   : > { %v4204_v9 = vadd.f32 %v1267_v8, %v1049_v26  ;;  %v4210_v21 = vpop.f32.mrf.mxu0  ;;  %v2182_v8 = vld [vmem:[#allocation2 + $0x79] sm:$0xff] }
 0x172   : > { %3207 = vmatmul.msk.f32.gmra.mxu1 %vm214_vm1, %v3748_v23  ;;  %v2180_v23 = vld [vmem:[#allocation2 + $0x61] sm:$0xff] }
 0x173   : > { %3241 = vmatmul.msk.f32.gmra.mxu2 %vm214_vm1, %v3750_v24 }
 0x174   : > { %3275 = vmatmul.msk.f32.gmra.mxu3 %vm214_vm1, %v3705_v11  ;;  %3308 = vmatmul.msk.f32.gmra.mxu0 %vm214_vm1, %v3760_v25 }
 0x176   : > { %v992_v22 = vpop.f32.mrf.mxu2 }
 0x177   : > { %v1050_v38 = vadd.f32 %v992_v22, %v747_v62  ;;  %v749_v50 = vpop.f32.mrf.mxu1  ;;  %v1270_v5 = vpop.f32.mrf.mxu3 }
 0x178   : > { %v750_v11 = vadd.f32 %v749_v50, %v3876_v13 }
 0x179   : > { %v4217_v56 = vadd.f32 %v1270_v5, %v1050_v38  ;;  %v4223_v24 = vpop.f32.mrf.mxu0  ;;  %v4734_v38 = vld [vmem:[#allocation6_spill] sm:$0xff] }
 0x17a   : > { %3208 = vmatmul.msk.f32.gmra.mxu1 %vm214_vm1, %v3760_v25 }
 0x17b   : > { %3242 = vmatmul.msk.f32.gmra.mxu2 %vm214_vm1, %v3762_v27 }
 0x17c   : > { %3276 = vmatmul.msk.f32.gmra.mxu3 %vm214_vm1, %v2180_v23  ;;  %3309 = vmatmul.msk.f32.gmra.mxu0 %vm214_vm1, %v3772_v29 }
 0x17e   : > { %v995_v48 = vpop.f32.mrf.mxu2 }
 0x17f   : > { %v1051_v57 = vadd.f32 %v995_v48, %v750_v11  ;;  %v752_v15 = vpop.f32.mrf.mxu1  ;;  %v1273_v36 = vpop.f32.mrf.mxu3  ;;  %v2183_v48 = vld [vmem:[#allocation2 + $0x81] sm:$0xff] }
 0x180   : > { %v753_v27 = vadd.f32 %v752_v15, %v3896_v10  ;;  %v4733_v10 = vld [vmem:[#allocation23_spill] sm:$0xff] }
 0x181   : > { %v4229_v58 = vadd.f32 %v1273_v36, %v1051_v57  ;;  %v4235_v25 = vpop.f32.mrf.mxu0  ;;  %v4735_v57 = vld [vmem:[#allocation7_spill] sm:$0xff]  ;;  %v4736_v36 = vld [vmem:[#allocation26_spill] sm:$0xff] }
 0x182   : > { %3209 = vmatmul.msk.f32.gmra.mxu1 %vm214_vm1, %v3772_v29  ;;  %v4732_v29 = vld [vmem:[#allocation4_spill] sm:$0xff] }
 0x183   : > { %3243 = vmatmul.msk.f32.gmra.mxu2 %vm214_vm1, %v3774_v31 }
 0x184   : > { %3277 = vmatmul.msk.f32.gmra.mxu3 %vm214_vm1, %v2181_v6  ;;  %3310 = vmatmul.msk.f32.gmra.mxu0 %vm214_vm1, %v4731_v44 }
 0x186   : > { %v998_v13 = vpop.f32.mrf.mxu2 }
 0x187   : > { %v1052_v55 = vadd.f32 %v998_v13, %v753_v27  ;;  %v755_v19 = vpop.f32.mrf.mxu1  ;;  %v1276_v26 = vpop.f32.mrf.mxu3  ;;  %v4737_v13 = vld [vmem:[#allocation9_spill] sm:$0xff] }
 0x188   : > { %v756_v62 = vadd.f32 %v755_v19, %v4733_v10 }
 0x189   : > { %v4241_v2 = vadd.f32 %v1276_v26, %v1052_v55  ;;  %v4247_v31 = vpop.f32.mrf.mxu0 }
 0x18a   : > { %3210 = vmatmul.msk.f32.gmra.mxu1 %vm214_vm1, %v4731_v44 }
 0x18b   : > { %3244 = vmatmul.msk.f32.gmra.mxu2 %vm214_vm1, %v4732_v29  ;;  %v4738_v29 = vld [vmem:[#allocation10_spill] sm:$0xff] }
 0x18c   : > { %3278 = vmatmul.msk.f32.gmra.mxu3 %vm214_vm1, %v2182_v8  ;;  %3311 = vmatmul.msk.f32.gmra.mxu0 %vm214_vm1, %v4734_v38  ;;  %v2184_v8 = vld [vmem:[#allocation2 + $0x91] sm:$0xff] }
 0x18e   : > { %v1001_v22 = vpop.f32.mrf.mxu2 }
 0x18f   : > { %v1053_v50 = vadd.f32 %v1001_v22, %v756_v62  ;;  %v758_v5 = vpop.f32.mrf.mxu1  ;;  %v1279_v23 = vpop.f32.mrf.mxu3  ;;  %v4739_v62 = vld [vmem:[#allocation5_spill] sm:$0xff] }
 0x190   : > { %v759_v6 = vadd.f32 %v758_v5, %v4736_v36  ;;  %v2185_v36 = vld [vmem:[#allocation2 + $0x99] sm:$0xff] }
 0x191   : > { %v4253_v11 = vadd.f32 %v1279_v23, %v1053_v50  ;;  %v4259_v15 = vpop.f32.mrf.mxu0  ;;  %v4740_v50 = vld [vmem:[#allocation12_spill] sm:$0xff] }
 0x192   : > { %3211 = vmatmul.msk.f32.gmra.mxu1 %vm214_vm1, %v4734_v38 }
 0x193   : > { %3245 = vmatmul.msk.f32.gmra.mxu2 %vm214_vm1, %v4735_v57 }
 0x194   : > { %3279 = vmatmul.msk.f32.gmra.mxu3 %vm214_vm1, %v2183_v48  ;;  %3312 = vmatmul.msk.f32.gmra.mxu0 %vm214_vm1, %v4737_v13 }
 0x196   : > { %v1004_v27 = vpop.f32.mrf.mxu2 }
 0x197   : > { %v1054_v44 = vadd.f32 %v1004_v27, %v759_v6  ;;  %v761_v55 = vpop.f32.mrf.mxu1  ;;  %v1282_v19 = vpop.f32.mrf.mxu3  ;;  %v4741_v6 = vld [vmem:[#allocation13_spill] sm:$0xff] }
 0x198   : > { %v762_v22 = vadd.f32 %v761_v55, %v4739_v62 }
 0x199   : > { %v4265_v26 = vadd.f32 %v1282_v19, %v1054_v44  ;;  %v4271_v10 = vpop.f32.mrf.mxu0  ;;  %v4743_v19 = vld [vmem:[#allocation15_spill] sm:$0xff] }
 0x19a   : > { %3212 = vmatmul.msk.f32.gmra.mxu1 %vm214_vm1, %v4737_v13  ;;  %v4742_v13 = vld [vmem:[#allocation8_spill] sm:$0xff] }
 0x19b   : > { %3246 = vmatmul.msk.f32.gmra.mxu2 %vm214_vm1, %v4738_v29 }
 0x19c   : > { %3280 = vmatmul.msk.f32.gmra.mxu3 %vm214_vm1, %v2184_v8  ;;  %3313 = vmatmul.msk.f32.gmra.mxu0 %vm214_vm1, %v4740_v50 }
 0x19e   : > { %v1007_v38 = vpop.f32.mrf.mxu2 }
 0x19f   : > { %v1055_v5 = vadd.f32 %v1007_v38, %v762_v22  ;;  %v764_v23 = vpop.f32.mrf.mxu1  ;;  %v1285_v48 = vpop.f32.mrf.mxu3  ;;  %v2186_v38 = vld [vmem:[#allocation2 + $0xa9] sm:$0xff] }
 0x1a0   : > { %v765_v44 = vadd.f32 %v764_v23, %v4742_v13  ;;  %v4746_v23 = vld [vmem:[#allocation11_spill] sm:$0xff] }
 0x1a1   : > { %v4277_v57 = vadd.f32 %v1285_v48, %v1055_v5  ;;  %v4283_v27 = vpop.f32.mrf.mxu0 }
 0x1a2   : > { %3213 = vmatmul.msk.f32.gmra.mxu1 %vm214_vm1, %v4740_v50  ;;  %v4744_v50 = vld [vmem:[#allocation16_spill] sm:$0xff] }
 0x1a3   : > { %3247 = vmatmul.msk.f32.gmra.mxu2 %vm214_vm1, %v4741_v6  ;;  %v4747_v6 = vld [vmem:[#allocation18_spill] sm:$0xff] }
 0x1a4   : > { %3281 = vmatmul.msk.f32.gmra.mxu3 %vm214_vm1, %v2185_v36  ;;  %3314 = vmatmul.msk.f32.gmra.mxu0 %vm214_vm1, %v4743_v19 }
 0x1a6   : > { %v1010_v55 = vpop.f32.mrf.mxu2 }
 0x1a7   : > { %v1056_v8 = vadd.f32 %v1010_v55, %v765_v44  ;;  %v767_v29 = vpop.f32.mrf.mxu1  ;;  %v1288_v62 = vpop.f32.mrf.mxu3 }
 0x1a8   : > { %v768_v48 = vadd.f32 %v767_v29, %v4746_v23  ;;  %v4751_v29 = vld [vmem:[#allocation14_spill] sm:$0xff] }
 0x1a9   : > { %v4289_v22 = vadd.f32 %v1288_v62, %v1056_v8  ;;  %v4295_v5 = vpop.f32.mrf.mxu0  ;;  %v2187_v62 = vld [vmem:[#allocation2 + $0xb1] sm:$0xff] }
 0x1aa   : > { %3214 = vmatmul.msk.f32.gmra.mxu1 %vm214_vm1, %v4743_v19  ;;  %4745 = vst [vmem:[#allocation3_spill] sm:$0xff] %v4295_v5  ;;  %v4749_v19 = vld [vmem:[#allocation19_spill] sm:$0xff]  ;;  %v4752_v5 = vld [vmem:[#allocation21_spill] sm:$0xff] }
 0x1ab   : > { %3248 = vmatmul.msk.f32.gmra.mxu2 %vm214_vm1, %v4744_v50 }
 0x1ac   : > { %3282 = vmatmul.msk.f32.gmra.mxu3 %vm214_vm1, %v2186_v38  ;;  %3315 = vmatmul.msk.f32.gmra.mxu0 %vm214_vm1, %v4747_v6 }
 0x1ae   : > { %v1013_v36 = vpop.f32.mrf.mxu2 }
 0x1af   : > { %v1057_v13 = vadd.f32 %v1013_v36, %v768_v48  ;;  %v770_v44 = vpop.f32.mrf.mxu1  ;;  %v1291_v55 = vpop.f32.mrf.mxu3 }
 0x1b0   : > { %v771_v38 = vadd.f32 %v770_v44, %v4751_v29  ;;  %v4755_v44 = vld [vmem:[#allocation17_spill] sm:$0xff] }
 0x1b1   : > { %v4301_v8 = vadd.f32 %v1291_v55, %v1057_v13  ;;  %v4307_v50 = vpop.f32.mrf.mxu0 }
 0x1b2   : > { %3215 = vmatmul.msk.f32.gmra.mxu1 %vm214_vm1, %v4747_v6  ;;  %4750 = vst [vmem:[#allocation23_spill] sm:$0xff] %v4307_v50  ;;  %v4754_v6 = vld [vmem:[#allocation22_spill] sm:$0xff]  ;;  %v4756_v50 = vld [vmem:[#allocation25_spill] sm:$0xff] }
 0x1b3   : > { %4748 = vst [vmem:[#allocation4_spill] sm:$0xff] %v4301_v8  ;;  %3249 = vmatmul.msk.f32.gmra.mxu2 %vm214_vm1, %v4749_v19  ;;  %v2188_v8 = vld [vmem:[#allocation2 + $0xc1] sm:$0xff] }
 0x1b4   : > { %3283 = vmatmul.msk.f32.gmra.mxu3 %vm214_vm1, %v2187_v62  ;;  %3316 = vmatmul.msk.f32.gmra.mxu0 %vm214_vm1, %v4752_v5 }
 0x1b6   : > { %v1016_v23 = vpop.f32.mrf.mxu2 }
 0x1b7   : > { %v1058_v48 = vadd.f32 %v1016_v23, %v771_v38  ;;  %v773_v36 = vpop.f32.mrf.mxu1  ;;  %v1294_v13 = vpop.f32.mrf.mxu3 }
 0x1b8   : > { %v774_v62 = vadd.f32 %v773_v36, %v4755_v44  ;;  %v4759_v44 = vld [vmem:[#allocation28_spill] sm:$0xff] }
 0x1b9   : > { %v4313_v55 = vadd.f32 %v1294_v13, %v1058_v48  ;;  %v4319_v19 = vpop.f32.mrf.mxu0 }
 0x1ba   : > { %3216 = vmatmul.msk.f32.gmra.mxu1 %vm214_vm1, %v4752_v5 }
 0x1bb   : > { %4753 = vst [vmem:[#allocation6_spill] sm:$0xff] %v4313_v55  ;;  %3250 = vmatmul.msk.f32.gmra.mxu2 %vm214_vm1, %v4754_v6  ;;  %v2189_v55 = vld [vmem:[#allocation2 + $0xc9] sm:$0xff] }
 0x1bc   : > { %3284 = vmatmul.msk.f32.gmra.mxu3 %vm214_vm1, %v2188_v8  ;;  %3317 = vmatmul.msk.f32.gmra.mxu0 %vm214_vm1, %v4756_v50  ;;  %v4758_v8 = vld [vmem:[#allocation20_spill] sm:$0xff] }
 0x1be   : > { %v1019_v29 = vpop.f32.mrf.mxu2 }
 0x1bf   : > { %v1059_v38 = vadd.f32 %v1019_v29, %v774_v62  ;;  %v776_v23 = vpop.f32.mrf.mxu1  ;;  %v1297_v48 = vpop.f32.mrf.mxu3 }
 0x1c0   : > { %v777_v36 = vadd.f32 %v776_v23, %v4758_v8 }
 0x1c1   : > { %v4325_v13 = vadd.f32 %v1297_v48, %v1059_v38  ;;  %v4331_v5 = vpop.f32.mrf.mxu0 }
 0x1c2   : > { %3217 = vmatmul.msk.f32.gmra.mxu1 %vm214_vm1, %v4756_v50  ;;  %v4760_v50 = vld [vmem:[#allocation24_spill] sm:$0xff] }
 0x1c3   : > { %4757 = vst [vmem:[#allocation7_spill] sm:$0xff] %v4325_v13  ;;  %3251 = vmatmul.msk.f32.gmra.mxu2 %vm214_vm1, %v3926_v46  ;;  %v2190_v13 = vld [vmem:[#allocation2 + $0xd9] sm:$0xff] }
 0x1c4   : > { %3285 = vmatmul.msk.f32.gmra.mxu3 %vm214_vm1, %v2189_v55  ;;  %3318 = vmatmul.msk.f32.gmra.mxu0 %vm214_vm1, %v4759_v44 }
 0x1c6   : > { %v1022_v6 = vpop.f32.mrf.mxu2 }
 0x1c7   : > { %v1060_v62 = vadd.f32 %v1022_v6, %v777_v36  ;;  %v779_v29 = vpop.f32.mrf.mxu1  ;;  %v1300_v38 = vpop.f32.mrf.mxu3 }
 0x1c8   : > { %v780_v55 = vadd.f32 %v779_v29, %v4760_v50 }
 0x1c9   : > { %v4337_v48 = vadd.f32 %v1300_v38, %v1060_v62  ;;  %v4343_v46 = vpop.f32.mrf.mxu0  ;;  %v2191_v38 = vld [vmem:[#allocation2 + $0xe1] sm:$0xff] }
 0x1ca   : > { %3218 = vmatmul.msk.f32.gmra.mxu1 %vm214_vm1, %v4759_v44 }
 0x1cb   : > { %3252 = vmatmul.msk.f32.gmra.mxu2 %vm214_vm1, %v3944_v39 }
 0x1cc   : > { %3286 = vmatmul.msk.f32.gmra.mxu3 %vm214_vm1, %v2190_v13  ;;  %3319 = vmatmul.msk.f32.gmra.mxu0 %vm214_vm1, %v3957_v35  ;;  %v4762_v13 = vld [vmem:[#allocation27_spill] sm:$0xff] }
 0x1ce   : > { %v1025_v23 = vpop.f32.mrf.mxu2 }
 0x1cf   : > { %v1061_v8 = vadd.f32 %v1025_v23, %v780_v55  ;;  %v782_v36 = vpop.f32.mrf.mxu1  ;;  %v1303_v6 = vpop.f32.mrf.mxu3 }
 0x1d0   : > { %v783_v44 = vadd.f32 %v782_v36, %v4762_v13 }
 0x1d1   : > { %v4349_v62 = vadd.f32 %v1303_v6, %v1061_v8  ;;  %v4355_v39 = vpop.f32.mrf.mxu0  ;;  %v2192_v6 = vld [vmem:[#allocation2 + $0xf1] sm:$0xff] }
 0x1d2   : > { %3219 = vmatmul.msk.f32.gmra.mxu1 %vm214_vm1, %v3957_v35  ;;  %4761 = vst [vmem:[#allocation26_spill] sm:$0xff] %v4355_v39  ;;  %v4764_v35 = vld [vmem:[#allocation30_spill] sm:$0xff] }
 0x1d3   : > { %3253 = vmatmul.msk.f32.gmra.mxu2 %vm214_vm1, %v3961_v34  ;;  %v4763_v34 = vld [vmem:[#allocation29_spill] sm:$0xff] }
 0x1d4   : > { %3287 = vmatmul.msk.f32.gmra.mxu3 %vm214_vm1, %v2191_v38  ;;  %3320 = vmatmul.msk.f32.gmra.mxu0 %vm214_vm1, %v3974_v18  ;;  %v1587_v39 = vadd.f32 %v4764_v35, %v4763_v34  ;;  %v4766_v34 = vld [vmem:[#allocation31_spill] sm:$0xff]  ;;  %v4767_v35 = vld [vmem:[#allocation32_spill] sm:$0xff] }
 0x1d6   : > { %v1028_v29 = vpop.f32.mrf.mxu2 }
 0x1d7   : > { %v1062_v50 = vadd.f32 %v1028_v29, %v783_v44  ;;  %v1306_v55 = vpop.f32.mrf.mxu3  ;;  %v1769_v23 = vpop.f32.mrf.mxu1 }
 0x1d8   : > { %v1865_v38 = vadd.f32 %v1769_v23, %v1587_v39 }
 0x1d9   : > { %v4361_v8 = vadd.f32 %v1306_v55, %v1062_v50  ;;  %v4369_v36 = vpop.f32.mrf.mxu0  ;;  %v2193_v55 = vld [vmem:[#allocation2 + $0xf9] sm:$0xff] }
 0x1da   : > { %3220 = vmatmul.msk.f32.gmra.mxu1 %vm214_vm1, %v3974_v18  ;;  %4765 = vst [vmem:[#allocation9_spill] sm:$0xff] %v4369_v36 }
 0x1db   : > { %3254 = vmatmul.msk.f32.gmra.mxu2 %vm214_vm1, %v3978_v43  ;;  %v1588_v43 = vadd.f32 %v4767_v35, %v4766_v34  ;;  %v4768_v34 = vld [vmem:[#allocation33_spill] sm:$0xff]  ;;  %v4769_v35 = vld [vmem:[#allocation34_spill] sm:$0xff] }
 0x1dc   : > { %3288 = vmatmul.msk.f32.gmra.mxu3 %vm214_vm1, %v2192_v6  ;;  %3321 = vmatmul.msk.f32.gmra.mxu0 %vm214_vm1, %v3991_v63 }
 0x1de   : > { %v2048_v13 = vpop.f32.mrf.mxu2 }
 0x1df   : > { %v2144_v44 = vadd.f32 %v2048_v13, %v1865_v38  ;;  %v1772_v29 = vpop.f32.mrf.mxu1  ;;  %v2326_v50 = vpop.f32.mrf.mxu3 }
 0x1e0   : > { %v1866_v23 = vadd.f32 %v1772_v29, %v1588_v43 }
 0x1e1   : > { %v2422_v18 = vadd.f32 %v2326_v50, %v2144_v44  ;;  %v2604_v39 = vpop.f32.mrf.mxu0  ;;  %v2194_v50 = vld [vmem:[#allocation2 + $0x109] sm:$0xff] }
 0x1e2   : > { %3221 = vmatmul.msk.f32.gmra.mxu1 %vm214_vm1, %v3991_v63 }
 0x1e3   : > { %3255 = vmatmul.msk.f32.gmra.mxu2 %vm214_vm1, %v3995_v32  ;;  %v2700_v6 = vadd.f32 %v2604_v39, %v2422_v18 }
 0x1e4   : > { %3289 = vmatmul.msk.f32.gmra.mxu3 %vm214_vm1, %v2193_v55  ;;  %3322 = vmatmul.msk.f32.gmra.mxu0 %vm214_vm1, %v4008_v45  ;;  %v1589_v55 = vadd.f32 %v4769_v35, %v4768_v34 }
 0x1e5   : > { %2732 = vst.msk [vmem:[%s4385_s11] sm:$0xff] %vm214_vm1, %v2700_v6  ;;  %v2833_v18 = vmul.f32 %v2700_v6, %v2700_v6 }
 0x1e6   : > { %v2051_v38 = vpop.f32.mrf.mxu2 }
 0x1e7   : > { %v2145_v32 = vadd.f32 %v2051_v38, %v1866_v23  ;;  %v1775_v63 = vpop.f32.mrf.mxu1  ;;  %v2329_v13 = vpop.f32.mrf.mxu3  ;;  %v2764_v38 = vsel %vm214_vm1, %v2700_v6, 0.0 }
 0x1e8   : > { %v1867_v43 = vadd.f32 %v1775_v63, %v1589_v55  ;;  %v2195_v55 = vld [vmem:[#allocation2 + $0x111] sm:$0xff] }
 0x1e9   : > { %v2423_v44 = vadd.f32 %v2329_v13, %v2145_v32  ;;  %v2607_v29 = vpop.f32.mrf.mxu0 }
 0x1ea   : > { %3222 = vmatmul.msk.f32.gmra.mxu1 %vm214_vm1, %v4008_v45 }
 0x1eb   : > { %3256 = vmatmul.msk.f32.gmra.mxu2 %vm214_vm1, %v4012_v41  ;;  %v2701_v39 = vadd.f32 %v2607_v29, %v2423_v44  ;;  %v4770_v29 = vld [vmem:[#allocation35_spill] sm:$0xff] }
 0x1ec   : > { %3290 = vmatmul.msk.f32.gmra.mxu3 %vm214_vm1, %v2194_v50  ;;  %3323 = vmatmul.msk.f32.gmra.mxu0 %vm214_vm1, %v4025_v28  ;;  %v2865_v50 = vsel %vm214_vm1, %v2833_v18, 0.0 }
 0x1ed   : > { %2733 = vst.msk [vmem:[%s4385_s11 + $0x8] sm:$0xff] %vm214_vm1, %v2701_v39  ;;  %v2765_v32 = vsel %vm214_vm1, %v2701_v39, 0.0  ;;  %v2834_v45 = vmul.f32 %v2701_v39, %v2701_v39  ;;  %v4771_v39 = vld [vmem:[#allocation36_spill] sm:$0xff] }
 0x1ee   : > { %v2054_v23 = vpop.f32.mrf.mxu2  ;;  %v2766_v35 = vadd.f32 %v2765_v32, %v2764_v38  ;;  %v1590_v36 = vadd.f32 %v4771_v39, %v4770_v29 }
 0x1ef   : > { %v2146_v13 = vadd.f32 %v2054_v23, %v1867_v43  ;;  %v1778_v34 = vpop.f32.mrf.mxu1  ;;  %v2332_v41 = vpop.f32.mrf.mxu3  ;;  %v2866_v63 = vsel %vm214_vm1, %v2834_v45, 0.0 }
 0x1f0   : > { %v2867_v6 = vadd.f32 %v2866_v63, %v2865_v50  ;;  %v1868_v23 = vadd.f32 %v1778_v34, %v1590_v36  ;;  %v4772_v34 = vld [vmem:[#allocation37_spill] sm:$0xff] }
 0x1f1   : > { %v2424_v44 = vadd.f32 %v2332_v41, %v2146_v13  ;;  %v2610_v43 = vpop.f32.mrf.mxu0 }
 0x1f2   : > { %3223 = vmatmul.msk.f32.gmra.mxu1 %vm214_vm1, %v4025_v28 }
 0x1f3   : > { %3257 = vmatmul.msk.f32.gmra.mxu2 %vm214_vm1, %v4029_v51  ;;  %v2702_v38 = vadd.f32 %v2610_v43, %v2424_v44  ;;  %v4773_v44 = vld [vmem:[#allocation38_spill] sm:$0xff] }
 0x1f4   : > { %3291 = vmatmul.msk.f32.gmra.mxu3 %vm214_vm1, %v2195_v55  ;;  %3324 = vmatmul.msk.f32.gmra.mxu0 %vm214_vm1, %v4042_v40  ;;  %v2196_v55 = vld [vmem:[#allocation2 + $0x121] sm:$0xff]  ;;  %v1591_v29 = vadd.f32 %v4773_v44, %v4772_v34 }
 0x1f5   : > { %2734 = vst.msk [vmem:[%s4385_s11 + $0x10] sm:$0xff] %vm214_vm1, %v2702_v38  ;;  %v2767_v32 = vsel %vm214_vm1, %v2702_v38, 0.0  ;;  %v2835_v45 = vmul.f32 %v2702_v38, %v2702_v38 }
 0x1f6   : > { %v2057_v18 = vpop.f32.mrf.mxu2  ;;  %v2768_v50 = vadd.f32 %v2767_v32, %v2766_v35 }
 0x1f7   : > { %v2147_v28 = vadd.f32 %v2057_v18, %v1868_v23  ;;  %v1781_v13 = vpop.f32.mrf.mxu1  ;;  %v2335_v41 = vpop.f32.mrf.mxu3  ;;  %v2868_v51 = vsel %vm214_vm1, %v2835_v45, 0.0 }
 0x1f8   : > { %v2869_v36 = vadd.f32 %v2868_v51, %v2867_v6  ;;  %v1869_v43 = vadd.f32 %v1781_v13, %v1591_v29  ;;  %v4774_v51 = vld [vmem:[#allocation39_spill] sm:$0xff] }
 0x1f9   : > { %v2425_v63 = vadd.f32 %v2335_v41, %v2147_v28  ;;  %v2613_v39 = vpop.f32.mrf.mxu0  ;;  %v2197_v41 = vld [vmem:[#allocation2 + $0x129] sm:$0xff] }
 0x1fa   : > { %3224 = vmatmul.msk.f32.gmra.mxu1 %vm214_vm1, %v4042_v40 }
 0x1fb   : > { %3258 = vmatmul.msk.f32.gmra.mxu2 %vm214_vm1, %v4046_v7  ;;  %v2703_v23 = vadd.f32 %v2613_v39, %v2425_v63  ;;  %v4775_v63 = vld [vmem:[#allocation40_spill] sm:$0xff] }
 0x1fc   : > { %3292 = vmatmul.msk.f32.gmra.mxu3 %vm214_vm1, %v2196_v55  ;;  %3325 = vmatmul.msk.f32.gmra.mxu0 %vm214_vm1, %v4059_v49  ;;  %v1592_v55 = vadd.f32 %v4775_v63, %v4774_v51 }
 0x1fd   : > { %2735 = vst.msk [vmem:[%s4385_s11 + $0x18] sm:$0xff] %vm214_vm1, %v2703_v23  ;;  %v2769_v38 = vsel %vm214_vm1, %v2703_v23, 0.0  ;;  %v2836_v6 = vmul.f32 %v2703_v23, %v2703_v23 }
 0x1fe   : > { %v2060_v35 = vpop.f32.mrf.mxu2  ;;  %v2770_v45 = vadd.f32 %v2769_v38, %v2768_v50  ;;  %v1920_v38 = vld [vmem:[#allocation2 + $0x138] sm:$0xff] }
 0x1ff   : > { %v2148_v40 = vadd.f32 %v2060_v35, %v1869_v43  ;;  %v1784_v18 = vpop.f32.mrf.mxu1  ;;  %v2338_v32 = vpop.f32.mrf.mxu3  ;;  %v2870_v7 = vsel %vm214_vm1, %v2836_v6, 0.0  ;;  %v1641_v35 = vld [vmem:[#allocation2 + $0x122] sm:$0xff] }
 0x200   : > { %v2871_v13 = vadd.f32 %v2870_v7, %v2869_v36  ;;  %v1870_v44 = vadd.f32 %v1784_v18, %v1592_v55  ;;  %v2198_v18 = vld [vmem:[#allocation2 + $0x139] sm:$0xff] }
 0x201   : > { %v2426_v28 = vadd.f32 %v2338_v32, %v2148_v40  ;;  %v2616_v34 = vpop.f32.mrf.mxu0  ;;  %v4776_v7 = vld [vmem:[#allocation41_spill] sm:$0xff] }
 0x202   : > { %3225 = vmatmul.msk.f32.gmra.mxu1 %vm214_vm1, %v4059_v49 }
 0x203   : > { %3259 = vmatmul.msk.f32.gmra.mxu2 %vm214_vm1, %v4063_v52  ;;  %v2704_v29 = vadd.f32 %v2616_v34, %v2426_v28  ;;  %v4777_v28 = vld [vmem:[#allocation42_spill] sm:$0xff] }
 0x204   : > { %3293 = vmatmul.msk.f32.gmra.mxu3 %vm214_vm1, %v2197_v41  ;;  %3326 = vmatmul.msk.f32.gmra.mxu0 %vm214_vm1, %v4076_v53  ;;  %v1593_v41 = vadd.f32 %v4777_v28, %v4776_v7  ;;  %v2476_v28 = vld [vmem:[#allocation2 + $0x13a] sm:$0xff] }
 0x205   : > { %2736 = vst.msk [vmem:[%s4385_s11 + $0x20] sm:$0xff] %vm214_vm1, %v2704_v29  ;;  %v2771_v39 = vsel %vm214_vm1, %v2704_v29, 0.0  ;;  %v2837_v36 = vmul.f32 %v2704_v29, %v2704_v29 }
 0x206   : > { %v2063_v50 = vpop.f32.mrf.mxu2  ;;  %v2772_v52 = vadd.f32 %v2771_v39, %v2770_v45  ;;  %v1642_v39 = vld [vmem:[#allocation2 + $0x12a] sm:$0xff] }
 0x207   : > { %v2149_v49 = vadd.f32 %v2063_v50, %v1870_v44  ;;  %v1787_v43 = vpop.f32.mrf.mxu1  ;;  %v2341_v23 = vpop.f32.mrf.mxu3  ;;  %v2872_v6 = vsel %vm214_vm1, %v2837_v36, 0.0  ;;  %v4778_v44 = vld [vmem:[#allocation45_spill] sm:$0xff] }
 0x208   : > { %v2873_v32 = vadd.f32 %v2872_v6, %v2871_v13  ;;  %v1871_v51 = vadd.f32 %v1787_v43, %v1593_v41  ;;  %v4779_v6 = vld [vmem:[#allocation43_spill] sm:$0xff] }
 0x209   : > { %v2427_v40 = vadd.f32 %v2341_v23, %v2149_v49  ;;  %v2619_v53 = vpop.f32.mrf.mxu0  ;;  %v1921_v49 = vld [vmem:[#allocation2 + $0x140] sm:$0xff] }
 0x20a   : > { %3226 = vmatmul.msk.f32.gmra.mxu1 %vm214_vm1, %v1641_v35  ;;  %v2199_v35 = vld [vmem:[#allocation2 + $0x141] sm:$0xff] }
 0x20b   : > { %3260 = vmatmul.msk.f32.gmra.mxu2 %vm214_vm1, %v1920_v38  ;;  %v2705_v63 = vadd.f32 %v2619_v53, %v2427_v40  ;;  %v4780_v40 = vld [vmem:[#allocation44_spill] sm:$0xff] }
 0x20c   : > { %3294 = vmatmul.msk.f32.gmra.mxu3 %vm214_vm1, %v2198_v18  ;;  %3327 = vmatmul.msk.f32.gmra.mxu0 %vm214_vm1, %v4778_v44  ;;  %v1594_v18 = vadd.f32 %v4780_v40, %v4779_v6  ;;  %v1922_v44 = vld [vmem:[#allocation2 + $0x150] sm:$0xff] }
 0x20d   : > { %2737 = vst.msk [vmem:[%s4385_s11 + $0x28] sm:$0xff] %vm214_vm1, %v2705_v63  ;;  %v2773_v45 = vsel %vm214_vm1, %v2705_v63, 0.0  ;;  %v2838_v34 = vmul.f32 %v2705_v63, %v2705_v63 }
 0x20e   : > { %v2066_v55 = vpop.f32.mrf.mxu2  ;;  %v2774_v36 = vadd.f32 %v2773_v45, %v2772_v52 }
 0x20f   : > { %v2150_v13 = vadd.f32 %v2066_v55, %v1871_v51  ;;  %v1790_v29 = vpop.f32.mrf.mxu1  ;;  %v2344_v50 = vpop.f32.mrf.mxu3  ;;  %v2874_v23 = vsel %vm214_vm1, %v2838_v34, 0.0 }
 0x210   : > { %v2875_v38 = vadd.f32 %v2874_v23, %v2873_v32  ;;  %v1872_v41 = vadd.f32 %v1790_v29, %v1594_v18 }
 0x211   : > { %v2428_v43 = vadd.f32 %v2344_v50, %v2150_v13  ;;  %v2622_v7 = vpop.f32.mrf.mxu0 }
 0x212   : > { %3227 = vmatmul.msk.f32.gmra.mxu1 %vm214_vm1, %v1642_v39  ;;  %v2200_v39 = vld [vmem:[#allocation2 + $0x151] sm:$0xff] }
 0x213   : > { %3261 = vmatmul.msk.f32.gmra.mxu2 %vm214_vm1, %v1921_v49  ;;  %v2706_v53 = vadd.f32 %v2622_v7, %v2428_v43  ;;  %v4781_v49 = vld [vmem:[#allocation46_spill] sm:$0xff] }
 0x214   : > { %3295 = vmatmul.msk.f32.gmra.mxu3 %vm214_vm1, %v2199_v35  ;;  %3328 = vmatmul.msk.f32.gmra.mxu0 %vm214_vm1, %v2476_v28  ;;  %v1595_v23 = vadd.f32 %v4098_v12, %v4781_v49  ;;  %v2477_v35 = vld [vmem:[#allocation2 + $0x142] sm:$0xff] }
 0x215   : > { %2738 = vst.msk [vmem:[%s4385_s11 + $0x30] sm:$0xff] %vm214_vm1, %v2706_v53  ;;  %v2775_v51 = vsel %vm214_vm1, %v2706_v53, 0.0  ;;  %v2839_v63 = vmul.f32 %v2706_v53, %v2706_v53  ;;  %v1923_v53 = vld [vmem:[#allocation2 + $0x158] sm:$0xff] }
 0x216   : > { %v2069_v52 = vpop.f32.mrf.mxu2  ;;  %v2776_v34 = vadd.f32 %v2775_v51, %v2774_v36 }
 0x217   : > { %v2151_v32 = vadd.f32 %v2069_v52, %v1872_v41  ;;  %v1793_v55 = vpop.f32.mrf.mxu1  ;;  %v2347_v45 = vpop.f32.mrf.mxu3  ;;  %v2876_v13 = vsel %vm214_vm1, %v2839_v63, 0.0  ;;  %v2201_v63 = vld [vmem:[#allocation2 + $0x159] sm:$0xff] }
 0x218   : > { %v2877_v29 = vadd.f32 %v2876_v13, %v2875_v38  ;;  %v1873_v6 = vadd.f32 %v1793_v55, %v1595_v23  ;;  %v4782_v55 = vld [vmem:[#allocation47_spill] sm:$0xff] }
 0x219   : > { %v2429_v50 = vadd.f32 %v2347_v45, %v2151_v32  ;;  %v2625_v43 = vpop.f32.mrf.mxu0  ;;  %v1596_v45 = vadd.f32 %v4782_v55, %v4106_v60  ;;  %v2478_v13 = vld [vmem:[#allocation2 + $0x152] sm:$0xff] }
 0x21a   : > { %3228 = vmatmul.msk.f32.gmra.mxu1 %vm214_vm1, %v2476_v28 }
 0x21b   : > { %3262 = vmatmul.msk.f32.gmra.mxu2 %vm214_vm1, %v1922_v44  ;;  %v2707_v40 = vadd.f32 %v2625_v43, %v2429_v50 }
 0x21c   : > { %3296 = vmatmul.msk.f32.gmra.mxu3 %vm214_vm1, %v2200_v39  ;;  %3329 = vmatmul.msk.f32.gmra.mxu0 %vm214_vm1, %v2477_v35 }
 0x21d   : > { %2739 = vst.msk [vmem:[%s4385_s11 + $0x38] sm:$0xff] %vm214_vm1, %v2707_v40  ;;  %v2777_v18 = vsel %vm214_vm1, %v2707_v40, 0.0  ;;  %v2840_v7 = vmul.f32 %v2707_v40, %v2707_v40 }
 0x21e   : > { %v2072_v36 = vpop.f32.mrf.mxu2  ;;  %v2778_v12 = vadd.f32 %v2777_v18, %v2776_v34  ;;  %v2202_v18 = vld [vmem:[#allocation2 + $0x169] sm:$0xff] }
 0x21f   : > { %v2152_v38 = vadd.f32 %v2072_v36, %v1873_v6  ;;  %v1796_v28 = vpop.f32.mrf.mxu1  ;;  %v2350_v41 = vpop.f32.mrf.mxu3  ;;  %v2878_v52 = vsel %vm214_vm1, %v2840_v7, 0.0  ;;  %v1924_v6 = vld [vmem:[#allocation2 + $0x168] sm:$0xff] }
 0x220   : > { %v2879_v32 = vadd.f32 %v2878_v52, %v2877_v29  ;;  %v1874_v50 = vadd.f32 %v1796_v28, %v1596_v45 }
 0x221   : > { %v2430_v51 = vadd.f32 %v2350_v41, %v2152_v38  ;;  %v2628_v44 = vpop.f32.mrf.mxu0  ;;  %v1597_v38 = vadd.f32 %v4122_v16, %v4118_v59  ;;  %v2479_v41 = vld [vmem:[#allocation2 + $0x15a] sm:$0xff]  ;;  %v1925_v59 = vld [vmem:[#allocation2 + $0x170] sm:$0xff] }
 0x222   : > { %3229 = vmatmul.msk.f32.gmra.mxu1 %vm214_vm1, %v2477_v35 }
 0x223   : > { %3263 = vmatmul.msk.f32.gmra.mxu2 %vm214_vm1, %v1923_v53  ;;  %v2708_v39 = vadd.f32 %v2628_v44, %v2430_v51 }
 0x224   : > { %3297 = vmatmul.msk.f32.gmra.mxu3 %vm214_vm1, %v2201_v63  ;;  %3330 = vmatmul.msk.f32.gmra.mxu0 %vm214_vm1, %v2478_v13 }
 0x225   : > { %2740 = vst.msk [vmem:[%s4385_s11 + $0x40] sm:$0xff] %vm214_vm1, %v2708_v39  ;;  %v2779_v49 = vsel %vm214_vm1, %v2708_v39, 0.0  ;;  %v2841_v23 = vmul.f32 %v2708_v39, %v2708_v39 }
 0x226   : > { %v2075_v34 = vpop.f32.mrf.mxu2  ;;  %v2780_v60 = vadd.f32 %v2779_v49, %v2778_v12 }
 0x227   : > { %v2153_v29 = vadd.f32 %v2075_v34, %v1874_v50  ;;  %v1799_v43 = vpop.f32.mrf.mxu1  ;;  %v2353_v35 = vpop.f32.mrf.mxu3  ;;  %v2880_v40 = vsel %vm214_vm1, %v2841_v23, 0.0  ;;  %v2203_v50 = vld [vmem:[#allocation2 + $0x171] sm:$0xff]  ;;  %v1598_v34 = vadd.f32 %v4132_v0, %v4128_v33  ;;  %v1926_v0 = vld [vmem:[#allocation2 + $0x180] sm:$0xff] }
 0x228   : > { %v2881_v7 = vadd.f32 %v2880_v40, %v2879_v32  ;;  %v1875_v53 = vadd.f32 %v1799_v43, %v1597_v38  ;;  %v2480_v23 = vld [vmem:[#allocation2 + $0x16a] sm:$0xff] }
 0x229   : > { %v2431_v36 = vadd.f32 %v2353_v35, %v2153_v29  ;;  %v2631_v28 = vpop.f32.mrf.mxu0 }
 0x22a   : > { %3230 = vmatmul.msk.f32.gmra.mxu1 %vm214_vm1, %v2478_v13 }
 0x22b   : > { %3264 = vmatmul.msk.f32.gmra.mxu2 %vm214_vm1, %v1924_v6  ;;  %v2709_v52 = vadd.f32 %v2631_v28, %v2431_v36  ;;  %v2204_v28 = vld [vmem:[#allocation2 + $0x181] sm:$0xff] }
 0x22c   : > { %3298 = vmatmul.msk.f32.gmra.mxu3 %vm214_vm1, %v2202_v18  ;;  %3331 = vmatmul.msk.f32.gmra.mxu0 %vm214_vm1, %v2479_v41 }
 0x22d   : > { %2741 = vst.msk [vmem:[%s4385_s11 + $0x48] sm:$0xff] %vm214_vm1, %v2709_v52  ;;  %v2781_v51 = vsel %vm214_vm1, %v2709_v52, 0.0  ;;  %v2842_v63 = vmul.f32 %v2709_v52, %v2709_v52 }
 0x22e   : > { %v2078_v12 = vpop.f32.mrf.mxu2  ;;  %v2782_v16 = vadd.f32 %v2781_v51, %v2780_v60 }
 0x22f   : > { %v2154_v32 = vadd.f32 %v2078_v12, %v1875_v53  ;;  %v1802_v55 = vpop.f32.mrf.mxu1  ;;  %v2356_v45 = vpop.f32.mrf.mxu3  ;;  %v2882_v44 = vsel %vm214_vm1, %v2842_v63, 0.0  ;;  %v1599_v53 = vadd.f32 %v4142_v1, %v4138_v47  ;;  %v2481_v12 = vld [vmem:[#allocation2 + $0x172] sm:$0xff]  ;;  %v1927_v1 = vld [vmem:[#allocation2 + $0x188] sm:$0xff] }
 0x230   : > { %v2883_v39 = vadd.f32 %v2882_v44, %v2881_v7  ;;  %v1876_v29 = vadd.f32 %v1802_v55, %v1598_v34 }
 0x231   : > { %v2432_v13 = vadd.f32 %v2356_v45, %v2154_v32  ;;  %v2634_v49 = vpop.f32.mrf.mxu0 }
 0x232   : > { %3231 = vmatmul.msk.f32.gmra.mxu1 %vm214_vm1, %v2479_v41 }
 0x233   : > { %3265 = vmatmul.msk.f32.gmra.mxu2 %vm214_vm1, %v1925_v59  ;;  %v2710_v43 = vadd.f32 %v2634_v49, %v2432_v13  ;;  %v1600_v49 = vadd.f32 %v4152_v37, %v4148_v54  ;;  %v1928_v37 = vld [vmem:[#allocation2 + $0x198] sm:$0xff] }
 0x234   : > { %3299 = vmatmul.msk.f32.gmra.mxu3 %vm214_vm1, %v2203_v50  ;;  %3332 = vmatmul.msk.f32.gmra.mxu0 %vm214_vm1, %v2480_v23 }
 0x235   : > { %2742 = vst.msk [vmem:[%s4385_s11 + $0x50] sm:$0xff] %vm214_vm1, %v2710_v43  ;;  %v2783_v60 = vsel %vm214_vm1, %v2710_v43, 0.0  ;;  %v2843_v6 = vmul.f32 %v2710_v43, %v2710_v43 }
 0x236   : > { %v2081_v35 = vpop.f32.mrf.mxu2  ;;  %v2784_v33 = vadd.f32 %v2783_v60, %v2782_v16 }
 0x237   : > { %v2155_v40 = vadd.f32 %v2081_v35, %v1876_v29  ;;  %v1805_v36 = vpop.f32.mrf.mxu1  ;;  %v2359_v18 = vpop.f32.mrf.mxu3  ;;  %v2884_v7 = vsel %vm214_vm1, %v2843_v6, 0.0  ;;  %v2482_v29 = vld [vmem:[#allocation2 + $0x182] sm:$0xff] }
 0x238   : > { %v2885_v41 = vadd.f32 %v2884_v7, %v2883_v39  ;;  %v1877_v51 = vadd.f32 %v1805_v36, %v1599_v53  ;;  %v2205_v39 = vld [vmem:[#allocation2 + $0x189] sm:$0xff] }
 0x239   : > { %v2433_v38 = vadd.f32 %v2359_v18, %v2155_v40  ;;  %v2637_v52 = vpop.f32.mrf.mxu0 }
 0x23a   : > { %3232 = vmatmul.msk.f32.gmra.mxu1 %vm214_vm1, %v2480_v23 }
 0x23b   : > { %3266 = vmatmul.msk.f32.gmra.mxu2 %vm214_vm1, %v1926_v0  ;;  %v2711_v63 = vadd.f32 %v2637_v52, %v2433_v38  ;;  %v2206_v38 = vld [vmem:[#allocation2 + $0x199] sm:$0xff]  ;;  %v2483_v52 = vld [vmem:[#allocation2 + $0x18a] sm:$0xff] }
 0x23c   : > { %3300 = vmatmul.msk.f32.gmra.mxu3 %vm214_vm1, %v2204_v28  ;;  %3333 = vmatmul.msk.f32.gmra.mxu0 %vm214_vm1, %v2481_v12 }
 0x23d   : > { %2743 = vst.msk [vmem:[%s4385_s11 + $0x58] sm:$0xff] %vm214_vm1, %v2711_v63  ;;  %v2785_v55 = vsel %vm214_vm1, %v2711_v63, 0.0  ;;  %v2844_v45 = vmul.f32 %v2711_v63, %v2711_v63 }
 0x23e   : > { %v2084_v32 = vpop.f32.mrf.mxu2  ;;  %v2786_v47 = vadd.f32 %v2785_v55, %v2784_v33 }
 0x23f   : > { %v2156_v16 = vadd.f32 %v2084_v32, %v1877_v51  ;;  %v1808_v59 = vpop.f32.mrf.mxu1  ;;  %v2362_v44 = vpop.f32.mrf.mxu3  ;;  %v2886_v13 = vsel %vm214_vm1, %v2844_v45, 0.0 }
 0x240   : > { %v2887_v34 = vadd.f32 %v2886_v13, %v2885_v41  ;;  %v1878_v43 = vadd.f32 %v1808_v59, %v1600_v49  ;;  %v1601_v41 = vadd.f32 %v4162_v20, %v4158_v61  ;;  %v1929_v20 = vld [vmem:[#allocation2 + $0x1a0] sm:$0xff] }
 0x241   : > { %v2434_v50 = vadd.f32 %v2362_v44, %v2156_v16  ;;  %v2640_v23 = vpop.f32.mrf.mxu0 }
 0x242   : > { %3233 = vmatmul.msk.f32.gmra.mxu1 %vm214_vm1, %v2481_v12 }
 0x243   : > { %3267 = vmatmul.msk.f32.gmra.mxu2 %vm214_vm1, %v1927_v1  ;;  %v2712_v35 = vadd.f32 %v2640_v23, %v2434_v50  ;;  %v2207_v1 = vld [vmem:[#allocation2 + $0x1a1] sm:$0xff]  ;;  %v1602_v50 = vadd.f32 %v4173_v42, %v4167_v3 }
 0x244   : > { %3301 = vmatmul.msk.f32.gmra.mxu3 %vm214_vm1, %v2205_v39  ;;  %3334 = vmatmul.msk.f32.gmra.mxu0 %vm214_vm1, %v2482_v29 }
 0x245   : > { %2744 = vst.msk [vmem:[%s4385_s11 + $0x60] sm:$0xff] %vm214_vm1, %v2712_v35  ;;  %v2787_v6 = vsel %vm214_vm1, %v2712_v35, 0.0  ;;  %v2845_v40 = vmul.f32 %v2712_v35, %v2712_v35 }
 0x246   : > { %v2087_v60 = vpop.f32.mrf.mxu2  ;;  %v2788_v54 = vadd.f32 %v2787_v6, %v2786_v47 }
 0x247   : > { %v2157_v36 = vadd.f32 %v2087_v60, %v1878_v43  ;;  %v1811_v18 = vpop.f32.mrf.mxu1  ;;  %v2365_v33 = vpop.f32.mrf.mxu3  ;;  %v2888_v0 = vsel %vm214_vm1, %v2845_v40, 0.0 }
 0x248   : > { %v2889_v28 = vadd.f32 %v2888_v0, %v2887_v34  ;;  %v1879_v12 = vadd.f32 %v1811_v18, %v1601_v41  ;;  %v2484_v34 = vld [vmem:[#allocation2 + $0x19a] sm:$0xff] }
 0x249   : > { %v2435_v7 = vadd.f32 %v2365_v33, %v2157_v36  ;;  %v2643_v53 = vpop.f32.mrf.mxu0  ;;  %v1603_v33 = vadd.f32 %v4184_v4, %v4178_v30 }
 0x24a   : > { %3234 = vmatmul.msk.f32.gmra.mxu1 %vm214_vm1, %v2482_v29 }
 0x24b   : > { %3268 = vmatmul.msk.f32.gmra.mxu2 %vm214_vm1, %v1928_v37  ;;  %v2713_v51 = vadd.f32 %v2643_v53, %v2435_v7  ;;  %v2485_v37 = vld [vmem:[#allocation2 + $0x1a2] sm:$0xff] }
 0x24c   : > { %3302 = vmatmul.msk.f32.gmra.mxu3 %vm214_vm1, %v2206_v38  ;;  %3335 = vmatmul.msk.f32.gmra.mxu0 %vm214_vm1, %v2483_v52 }
 0x24d   : > { %2745 = vst.msk [vmem:[%s4385_s11 + $0x68] sm:$0xff] %vm214_vm1, %v2713_v51  ;;  %v2789_v32 = vsel %vm214_vm1, %v2713_v51, 0.0  ;;  %v2846_v55 = vmul.f32 %v2713_v51, %v2713_v51 }
 0x24e   : > { %v2090_v63 = vpop.f32.mrf.mxu2  ;;  %v2790_v61 = vadd.f32 %v2789_v32, %v2788_v54  ;;  %v1604_v32 = vadd.f32 %v4197_v17, %v4191_v14  ;;  %v1605_v14 = vadd.f32 %v4210_v21, %v4204_v9  ;;  %v1606_v9 = vadd.f32 %v4223_v24, %v4217_v56 }
 0x24f   : > { %v2158_v45 = vadd.f32 %v2090_v63, %v1879_v12  ;;  %v1814_v16 = vpop.f32.mrf.mxu1  ;;  %v2368_v59 = vpop.f32.mrf.mxu3  ;;  %v2890_v44 = vsel %vm214_vm1, %v2846_v55, 0.0  ;;  %v1607_v56 = vadd.f32 %v4235_v25, %v4229_v58  ;;  %v1608_v58 = vadd.f32 %v4247_v31, %v4241_v2 }
 0x250   : > { %v2891_v13 = vadd.f32 %v2890_v44, %v2889_v28  ;;  %v1880_v49 = vadd.f32 %v1814_v16, %v1602_v50  ;;  %v1609_v2 = vadd.f32 %v4259_v15, %v4253_v11  ;;  %v1610_v11 = vadd.f32 %v4271_v10, %v4265_v26 }
 0x251   : > { %v2436_v47 = vadd.f32 %v2368_v59, %v2158_v45  ;;  %v2646_v39 = vpop.f32.mrf.mxu0  ;;  %v1611_v26 = vadd.f32 %v4283_v27, %v4277_v57  ;;  %v4783_v57 = vld [vmem:[#allocation3_spill] sm:$0xff] }
 0x252   : > { %3235 = vmatmul.msk.f32.gmra.mxu1 %vm214_vm1, %v2483_v52  ;;  %v1612_v27 = vadd.f32 %v4783_v57, %v4289_v22  ;;  %v4785_v22 = vld [vmem:[#allocation23_spill] sm:$0xff] }
 0x253   : > { %3269 = vmatmul.msk.f32.gmra.mxu2 %vm214_vm1, %v1929_v20  ;;  %v2714_v23 = vadd.f32 %v2646_v39, %v2436_v47 }
 0x254   : > { %3303 = vmatmul.msk.f32.gmra.mxu3 %vm214_vm1, %v2207_v1  ;;  %3336 = vmatmul.msk.f32.gmra.mxu0 %vm214_vm1, %v2484_v34 }
 0x255   : > { %2746 = vst.msk [vmem:[%s4385_s11 + $0x70] sm:$0xff] %vm214_vm1, %v2714_v23  ;;  %v2791_v43 = vsel %vm214_vm1, %v2714_v23, 0.0  ;;  %v2847_v35 = vmul.f32 %v2714_v23, %v2714_v23 }
 0x256   : > { %v2093_v29 = vpop.f32.mrf.mxu2  ;;  %v2792_v42 = vadd.f32 %v2791_v43, %v2790_v61 }
 0x257   : > { %v2159_v60 = vadd.f32 %v2093_v29, %v1880_v49  ;;  %v1817_v6 = vpop.f32.mrf.mxu1  ;;  %v2371_v3 = vpop.f32.mrf.mxu3  ;;  %v2892_v40 = vsel %vm214_vm1, %v2847_v35, 0.0 }
 0x258   : > { %v2893_v18 = vadd.f32 %v2892_v40, %v2891_v13  ;;  %v1881_v0 = vadd.f32 %v1817_v6, %v1603_v33 }
 0x259   : > { %v2437_v36 = vadd.f32 %v2371_v3, %v2159_v60  ;;  %v2649_v54 = vpop.f32.mrf.mxu0 }
 0x25b   : > { %v2715_v7 = vadd.f32 %v2649_v54, %v2437_v36 }
 0x25c   : > { %3337 = vmatmul.msk.f32.gmra.mxu0 %vm214_vm1, %v2485_v37 }
 0x25d   : > { %2747 = vst.msk [vmem:[%s4385_s11 + $0x78] sm:$0xff] %vm214_vm1, %v2715_v7  ;;  %v2793_v28 = vsel %vm214_vm1, %v2715_v7, 0.0  ;;  %v2848_v41 = vmul.f32 %v2715_v7, %v2715_v7 }
 0x25e   : > { %v2096_v38 = vpop.f32.mrf.mxu2  ;;  %v2794_v51 = vadd.f32 %v2793_v28, %v2792_v42 }
 0x25f   : > { %v2160_v53 = vadd.f32 %v2096_v38, %v1881_v0  ;;  %v1820_v52 = vpop.f32.mrf.mxu1  ;;  %v2374_v12 = vpop.f32.mrf.mxu3  ;;  %v2894_v63 = vsel %vm214_vm1, %v2848_v41, 0.0 }
 0x260   : > { %v2895_v4 = vadd.f32 %v2894_v63, %v2893_v18  ;;  %v1882_v45 = vadd.f32 %v1820_v52, %v1604_v32 }
 0x261   : > { %v2438_v30 = vadd.f32 %v2374_v12, %v2160_v53  ;;  %v2652_v55 = vpop.f32.mrf.mxu0 }
 0x263   : > { %v2716_v16 = vadd.f32 %v2652_v55, %v2438_v30 }
 0x265   : > { %2748 = vst.msk [vmem:[%s4385_s11 + $0x80] sm:$0xff] %vm214_vm1, %v2716_v16  ;;  %v2795_v61 = vsel %vm214_vm1, %v2716_v16, 0.0  ;;  %v2849_v20 = vmul.f32 %v2716_v16, %v2716_v16 }
 0x266   : > { %v2099_v59 = vpop.f32.mrf.mxu2  ;;  %v2796_v13 = vadd.f32 %v2795_v61, %v2794_v51 }
 0x267   : > { %v2161_v44 = vadd.f32 %v2099_v59, %v1882_v45  ;;  %v1823_v47 = vpop.f32.mrf.mxu1  ;;  %v2377_v1 = vpop.f32.mrf.mxu3  ;;  %v2896_v50 = vsel %vm214_vm1, %v2849_v20, 0.0 }
 0x268   : > { %v2897_v34 = vadd.f32 %v2896_v50, %v2895_v4  ;;  %v1883_v49 = vadd.f32 %v1823_v47, %v1605_v14 }
 0x269   : > { %v2439_v39 = vadd.f32 %v2377_v1, %v2161_v44  ;;  %v2655_v17 = vpop.f32.mrf.mxu0 }
 0x26b   : > { %v2717_v23 = vadd.f32 %v2655_v17, %v2439_v39 }
 0x26d   : > { %2749 = vst.msk [vmem:[%s4385_s11 + $0x88] sm:$0xff] %vm214_vm1, %v2717_v23  ;;  %v2797_v43 = vsel %vm214_vm1, %v2717_v23, 0.0  ;;  %v2850_v35 = vmul.f32 %v2717_v23, %v2717_v23 }
 0x26e   : > { %v2102_v29 = vpop.f32.mrf.mxu2  ;;  %v2798_v42 = vadd.f32 %v2797_v43, %v2796_v13 }
 0x26f   : > { %v2162_v60 = vadd.f32 %v2102_v29, %v1883_v49  ;;  %v1826_v6 = vpop.f32.mrf.mxu1  ;;  %v2380_v3 = vpop.f32.mrf.mxu3  ;;  %v2898_v40 = vsel %vm214_vm1, %v2850_v35, 0.0 }
 0x270   : > { %v2899_v18 = vadd.f32 %v2898_v40, %v2897_v34  ;;  %v1884_v33 = vadd.f32 %v1826_v6, %v1606_v9 }
 0x271   : > { %v2440_v36 = vadd.f32 %v2380_v3, %v2162_v60  ;;  %v2658_v21 = vpop.f32.mrf.mxu0 }
 0x273   : > { %v2718_v54 = vadd.f32 %v2658_v21, %v2440_v36 }
 0x275   : > { %2750 = vst.msk [vmem:[%s4385_s11 + $0x90] sm:$0xff] %vm214_vm1, %v2718_v54  ;;  %v2799_v0 = vsel %vm214_vm1, %v2718_v54, 0.0  ;;  %v2851_v7 = vmul.f32 %v2718_v54, %v2718_v54 }
 0x276   : > { %v2105_v37 = vpop.f32.mrf.mxu2  ;;  %v2800_v53 = vadd.f32 %v2799_v0, %v2798_v42 }
 0x277   : > { %v2163_v38 = vadd.f32 %v2105_v37, %v1884_v33  ;;  %v1829_v28 = vpop.f32.mrf.mxu1  ;;  %v2383_v41 = vpop.f32.mrf.mxu3  ;;  %v2900_v52 = vsel %vm214_vm1, %v2851_v7, 0.0 }
 0x278   : > { %v2901_v51 = vadd.f32 %v2900_v52, %v2899_v18  ;;  %v1885_v63 = vadd.f32 %v1829_v28, %v1607_v56 }
 0x279   : > { %v2441_v12 = vadd.f32 %v2383_v41, %v2163_v38  ;;  %v2661_v24 = vpop.f32.mrf.mxu0 }
 0x27b   : > { %v2719_v30 = vadd.f32 %v2661_v24, %v2441_v12 }
 0x27d   : > { %2751 = vst.msk [vmem:[%s4385_s11 + $0x98] sm:$0xff] %vm214_vm1, %v2719_v30  ;;  %v2801_v32 = vsel %vm214_vm1, %v2719_v30, 0.0  ;;  %v2852_v55 = vmul.f32 %v2719_v30, %v2719_v30 }
 0x27e   : > { %v2108_v4 = vpop.f32.mrf.mxu2  ;;  %v2802_v61 = vadd.f32 %v2801_v32, %v2800_v53 }
 0x27f   : > { %v2164_v45 = vadd.f32 %v2108_v4, %v1885_v63  ;;  %v1832_v16 = vpop.f32.mrf.mxu1  ;;  %v2386_v59 = vpop.f32.mrf.mxu3  ;;  %v2902_v20 = vsel %vm214_vm1, %v2852_v55, 0.0 }
 0x280   : > { %v2903_v47 = vadd.f32 %v2902_v20, %v2901_v51  ;;  %v1886_v1 = vadd.f32 %v1832_v16, %v1608_v58 }
 0x281   : > { %v2442_v44 = vadd.f32 %v2386_v59, %v2164_v45  ;;  %v2664_v25 = vpop.f32.mrf.mxu0 }
 0x283   : > { %v2720_v13 = vadd.f32 %v2664_v25, %v2442_v44 }
 0x285   : > { %2752 = vst.msk [vmem:[%s4385_s11 + $0xa0] sm:$0xff] %vm214_vm1, %v2720_v13  ;;  %v2803_v39 = vsel %vm214_vm1, %v2720_v13, 0.0  ;;  %v2853_v34 = vmul.f32 %v2720_v13, %v2720_v13 }
 0x286   : > { %v2111_v50 = vpop.f32.mrf.mxu2  ;;  %v2804_v23 = vadd.f32 %v2803_v39, %v2802_v61 }
 0x287   : > { %v2165_v14 = vadd.f32 %v2111_v50, %v1886_v1  ;;  %v1835_v17 = vpop.f32.mrf.mxu1  ;;  %v2389_v49 = vpop.f32.mrf.mxu3  ;;  %v2904_v29 = vsel %vm214_vm1, %v2853_v34, 0.0 }
 0x288   : > { %v2905_v35 = vadd.f32 %v2904_v29, %v2903_v47  ;;  %v1887_v60 = vadd.f32 %v1835_v17, %v1609_v2  ;;  %v4784_v2 = vld [vmem:[#allocation4_spill] sm:$0xff] }
 0x289   : > { %v2443_v43 = vadd.f32 %v2389_v49, %v2165_v14  ;;  %v2667_v31 = vpop.f32.mrf.mxu0 }
 0x28b   : > { %v2721_v6 = vadd.f32 %v2667_v31, %v2443_v43  ;;  %v1613_v31 = vadd.f32 %v4785_v22, %v4784_v2 }
 0x28d   : > { %2753 = vst.msk [vmem:[%s4385_s11 + $0xa8] sm:$0xff] %vm214_vm1, %v2721_v6  ;;  %v2805_v42 = vsel %vm214_vm1, %v2721_v6, 0.0  ;;  %v2854_v40 = vmul.f32 %v2721_v6, %v2721_v6 }
 0x28e   : > { %v2114_v3 = vpop.f32.mrf.mxu2  ;;  %v2806_v21 = vadd.f32 %v2805_v42, %v2804_v23 }
 0x28f   : > { %v2166_v36 = vadd.f32 %v2114_v3, %v1887_v60  ;;  %v1838_v18 = vpop.f32.mrf.mxu1  ;;  %v2392_v9 = vpop.f32.mrf.mxu3  ;;  %v2906_v33 = vsel %vm214_vm1, %v2854_v40, 0.0 }
 0x290   : > { %v2907_v37 = vadd.f32 %v2906_v33, %v2905_v35  ;;  %v1888_v0 = vadd.f32 %v1838_v18, %v1610_v11 }
 0x291   : > { %v2444_v54 = vadd.f32 %v2392_v9, %v2166_v36  ;;  %v2670_v15 = vpop.f32.mrf.mxu0 }
 0x293   : > { %v2722_v7 = vadd.f32 %v2670_v15, %v2444_v54  ;;  %v4786_v15 = vld [vmem:[#allocation6_spill] sm:$0xff] }
 0x295   : > { %2754 = vst.msk [vmem:[%s4385_s11 + $0xb0] sm:$0xff] %vm214_vm1, %v2722_v7  ;;  %v2807_v28 = vsel %vm214_vm1, %v2722_v7, 0.0  ;;  %v2855_v41 = vmul.f32 %v2722_v7, %v2722_v7 }
 0x296   : > { %v2117_v38 = vpop.f32.mrf.mxu2  ;;  %v2808_v51 = vadd.f32 %v2807_v28, %v2806_v21 }
 0x297   : > { %v2167_v53 = vadd.f32 %v2117_v38, %v1888_v0  ;;  %v1841_v52 = vpop.f32.mrf.mxu1  ;;  %v2395_v12 = vpop.f32.mrf.mxu3  ;;  %v2908_v56 = vsel %vm214_vm1, %v2855_v41, 0.0  ;;  %v1614_v0 = vadd.f32 %v4319_v19, %v4786_v15 }
 0x298   : > { %v2909_v63 = vadd.f32 %v2908_v56, %v2907_v37  ;;  %v1889_v30 = vadd.f32 %v1841_v52, %v1611_v26 }
 0x299   : > { %v2445_v24 = vadd.f32 %v2395_v12, %v2167_v53  ;;  %v2673_v10 = vpop.f32.mrf.mxu0 }
 0x29b   : > { %v2723_v4 = vadd.f32 %v2673_v10, %v2445_v24 }
 0x29d   : > { %2755 = vst.msk [vmem:[%s4385_s11 + $0xb8] sm:$0xff] %vm214_vm1, %v2723_v4  ;;  %v2809_v55 = vsel %vm214_vm1, %v2723_v4, 0.0  ;;  %v2856_v45 = vmul.f32 %v2723_v4, %v2723_v4 }
 0x29e   : > { %v2120_v32 = vpop.f32.mrf.mxu2  ;;  %v2810_v20 = vadd.f32 %v2809_v55, %v2808_v51 }
 0x29f   : > { %v2168_v16 = vadd.f32 %v2120_v32, %v1889_v30  ;;  %v1844_v59 = vpop.f32.mrf.mxu1  ;;  %v2398_v61 = vpop.f32.mrf.mxu3  ;;  %v2910_v44 = vsel %vm214_vm1, %v2856_v45, 0.0  ;;  %v4787_v30 = vld [vmem:[#allocation7_spill] sm:$0xff] }
 0x2a0   : > { %v2911_v58 = vadd.f32 %v2910_v44, %v2909_v63  ;;  %v1890_v1 = vadd.f32 %v1844_v59, %v1612_v27  ;;  %v1615_v19 = vadd.f32 %v4331_v5, %v4787_v30  ;;  %v1616_v5 = vadd.f32 %v4343_v46, %v4337_v48  ;;  %v4788_v48 = vld [vmem:[#allocation26_spill] sm:$0xff] }
 0x2a1   : > { %v2446_v47 = vadd.f32 %v2398_v61, %v2168_v16  ;;  %v2676_v25 = vpop.f32.mrf.mxu0  ;;  %v1617_v46 = vadd.f32 %v4788_v48, %v4349_v62  ;;  %v4789_v62 = vld [vmem:[#allocation9_spill] sm:$0xff] }
 0x2a3   : > { %v2724_v13 = vadd.f32 %v2676_v25, %v2446_v47 }
 0x2a5   : > { %2756 = vst.msk [vmem:[%s4385_s11 + $0xc0] sm:$0xff] %vm214_vm1, %v2724_v13  ;;  %v2811_v39 = vsel %vm214_vm1, %v2724_v13, 0.0  ;;  %v2857_v34 = vmul.f32 %v2724_v13, %v2724_v13 }
 0x2a6   : > { %v2123_v50 = vpop.f32.mrf.mxu2  ;;  %v2812_v23 = vadd.f32 %v2811_v39, %v2810_v20 }
 0x2a7   : > { %v2169_v14 = vadd.f32 %v2123_v50, %v1890_v1  ;;  %v1847_v17 = vpop.f32.mrf.mxu1  ;;  %v2401_v49 = vpop.f32.mrf.mxu3  ;;  %v2912_v29 = vsel %vm214_vm1, %v2857_v34, 0.0 }
 0x2a8   : > { %v2913_v35 = vadd.f32 %v2912_v29, %v2911_v58  ;;  %v1891_v6 = vadd.f32 %v1847_v17, %v1613_v31 }
 0x2a9   : > { %v2447_v43 = vadd.f32 %v2401_v49, %v2169_v14  ;;  %v2679_v60 = vpop.f32.mrf.mxu0 }
 0x2ab   : > { %v2725_v3 = vadd.f32 %v2679_v60, %v2447_v43 }
 0x2ad   : > { %2757 = vst.msk [vmem:[%s4385_s11 + $0xc8] sm:$0xff] %vm214_vm1, %v2725_v3  ;;  %v2813_v40 = vsel %vm214_vm1, %v2725_v3, 0.0  ;;  %v2858_v36 = vmul.f32 %v2725_v3, %v2725_v3 }
 0x2ae   : > { %v2126_v42 = vpop.f32.mrf.mxu2  ;;  %v2814_v33 = vadd.f32 %v2813_v40, %v2812_v23 }
 0x2af   : > { %v2170_v18 = vadd.f32 %v2126_v42, %v1891_v6  ;;  %v1850_v9 = vpop.f32.mrf.mxu1  ;;  %v2404_v21 = vpop.f32.mrf.mxu3  ;;  %v2914_v54 = vsel %vm214_vm1, %v2858_v36, 0.0 }
 0x2b0   : > { %v2915_v11 = vadd.f32 %v2914_v54, %v2913_v35  ;;  %v1892_v38 = vadd.f32 %v1850_v9, %v1614_v0  ;;  %v1618_v54 = vadd.f32 %v4789_v62, %v4361_v8 }
 0x2b1   : > { %v2448_v37 = vadd.f32 %v2404_v21, %v2170_v18  ;;  %v2682_v7 = vpop.f32.mrf.mxu0 }
 0x2b3   : > { %v2726_v28 = vadd.f32 %v2682_v7, %v2448_v37 }
 0x2b5   : > { %2758 = vst.msk [vmem:[%s4385_s11 + $0xd0] sm:$0xff] %vm214_vm1, %v2726_v28  ;;  %v2815_v53 = vsel %vm214_vm1, %v2726_v28, 0.0  ;;  %v2859_v52 = vmul.f32 %v2726_v28, %v2726_v28 }
 0x2b6   : > { %v2129_v41 = vpop.f32.mrf.mxu2  ;;  %v2816_v24 = vadd.f32 %v2815_v53, %v2814_v33 }
 0x2b7   : > { %v2171_v12 = vadd.f32 %v2129_v41, %v1892_v38  ;;  %v1853_v51 = vpop.f32.mrf.mxu1  ;;  %v2407_v56 = vpop.f32.mrf.mxu3  ;;  %v2916_v63 = vsel %vm214_vm1, %v2859_v52, 0.0 }
 0x2b8   : > { %v2917_v10 = vadd.f32 %v2916_v63, %v2915_v11  ;;  %v1893_v32 = vadd.f32 %v1853_v51, %v1615_v19 }
 0x2b9   : > { %v2449_v26 = vadd.f32 %v2407_v56, %v2171_v12  ;;  %v2685_v4 = vpop.f32.mrf.mxu0 }
 0x2bb   : > { %v2727_v55 = vadd.f32 %v2685_v4, %v2449_v26 }
 0x2bd   : > { %2759 = vst.msk [vmem:[%s4385_s11 + $0xd8] sm:$0xff] %vm214_vm1, %v2727_v55  ;;  %v2817_v16 = vsel %vm214_vm1, %v2727_v55, 0.0  ;;  %v2860_v59 = vmul.f32 %v2727_v55, %v2727_v55 }
 0x2be   : > { %v2132_v45 = vpop.f32.mrf.mxu2  ;;  %v2818_v47 = vadd.f32 %v2817_v16, %v2816_v24 }
 0x2bf   : > { %v2172_v61 = vadd.f32 %v2132_v45, %v1893_v32  ;;  %v1856_v20 = vpop.f32.mrf.mxu1  ;;  %v2410_v44 = vpop.f32.mrf.mxu3  ;;  %v2918_v58 = vsel %vm214_vm1, %v2860_v59, 0.0 }
 0x2c0   : > { %v2919_v27 = vadd.f32 %v2918_v58, %v2917_v10  ;;  %v1894_v1 = vadd.f32 %v1856_v20, %v1616_v5 }
 0x2c1   : > { %v2450_v57 = vadd.f32 %v2410_v44, %v2172_v61  ;;  %v2688_v25 = vpop.f32.mrf.mxu0 }
 0x2c3   : > { %v2728_v13 = vadd.f32 %v2688_v25, %v2450_v57 }
 0x2c5   : > { %2760 = vst.msk [vmem:[%s4385_s11 + $0xe0] sm:$0xff] %vm214_vm1, %v2728_v13  ;;  %v2819_v39 = vsel %vm214_vm1, %v2728_v13, 0.0  ;;  %v2861_v34 = vmul.f32 %v2728_v13, %v2728_v13 }
 0x2c6   : > { %v2135_v50 = vpop.f32.mrf.mxu2  ;;  %v2820_v49 = vadd.f32 %v2819_v39, %v2818_v47 }
 0x2c7   : > { %v2173_v14 = vadd.f32 %v2135_v50, %v1894_v1  ;;  %v2413_v17 = vpop.f32.mrf.mxu3  ;;  %v1859_v23 = vpop.f32.mrf.mxu1  ;;  %v2920_v29 = vsel %vm214_vm1, %v2861_v34, 0.0 }
 0x2c8   : > { %v2921_v35 = vadd.f32 %v2920_v29, %v2919_v27  ;;  %v1895_v22 = vadd.f32 %v1859_v23, %v1617_v46 }
 0x2c9   : > { %v2451_v43 = vadd.f32 %v2413_v17, %v2173_v14  ;;  %v2691_v2 = vpop.f32.mrf.mxu0 }
 0x2cb   : > { %v2729_v31 = vadd.f32 %v2691_v2, %v2451_v43 }
 0x2cd   : > { %2761 = vst.msk [vmem:[%s4385_s11 + $0xe8] sm:$0xff] %vm214_vm1, %v2729_v31  ;;  %v2821_v6 = vsel %vm214_vm1, %v2729_v31, 0.0  ;;  %v2862_v3 = vmul.f32 %v2729_v31, %v2729_v31 }
 0x2ce   : > { %v2138_v60 = vpop.f32.mrf.mxu2  ;;  %v2822_v36 = vadd.f32 %v2821_v6, %v2820_v49 }
 0x2cf   : > { %v2174_v42 = vadd.f32 %v2138_v60, %v1895_v22  ;;  %v2416_v40 = vpop.f32.mrf.mxu3  ;;  %v2922_v18 = vsel %vm214_vm1, %v2862_v3, 0.0  ;;  %v1862_v33 = vpop.f32.mrf.mxu1 }
 0x2d0   : > { %v2923_v21 = vadd.f32 %v2922_v18, %v2921_v35  ;;  %v1896_v11 = vadd.f32 %v1862_v33, %v1618_v54 }
 0x2d1   : > { %v2452_v9 = vadd.f32 %v2416_v40, %v2174_v42  ;;  %v2694_v37 = vpop.f32.mrf.mxu0 }
 0x2d3   : > { %v2730_v15 = vadd.f32 %v2694_v37, %v2452_v9 }
 0x2d5   : > { %2762 = vst.msk [vmem:[%s4385_s11 + $0xf0] sm:$0xff] %vm214_vm1, %v2730_v15  ;;  %v2823_v7 = vsel %vm214_vm1, %v2730_v15, 0.0  ;;  %v2863_v38 = vmul.f32 %v2730_v15, %v2730_v15 }
 0x2d6   : > { %v2141_v0 = vpop.f32.mrf.mxu2  ;;  %v2824_v53 = vadd.f32 %v2823_v7, %v2822_v36 }
 0x2d7   : > { %v2175_v28 = vadd.f32 %v2141_v0, %v1896_v11  ;;  %v2419_v41 = vpop.f32.mrf.mxu3  ;;  %v2924_v52 = vsel %vm214_vm1, %v2863_v38, 0.0 }
 0x2d8   : > { %v2925_v51 = vadd.f32 %v2924_v52, %v2923_v21 }
 0x2d9   : > { %v2453_v12 = vadd.f32 %v2419_v41, %v2175_v28  ;;  %v2697_v56 = vpop.f32.mrf.mxu0 }
 0x2db   : > { %v2731_v24 = vadd.f32 %v2697_v56, %v2453_v12 }
 0x2dd   : > { %2763 = vst.msk [vmem:[%s4385_s11 + $0xf8] sm:$0xff] %vm214_vm1, %v2731_v24  ;;  %v2825_v8 = vsel %vm214_vm1, %v2731_v24, 0.0  ;;  %v2864_v63 = vmul.f32 %v2731_v24, %v2731_v24 }
 0x2de   : > { %v2826_v26 = vadd.f32 %v2825_v8, %v2824_v53 }
 0x2df   : > { %v2926_v10 = vsel %vm214_vm1, %v2864_v63, 0.0 }
 0x2e0   : > { %v2827_v30 = vrot.slane %v2826_v26, 4  ;;  %v2927_v19 = vadd.f32 %v2926_v10, %v2925_v51 }
 0x2e2   : > { %v2828_v4 = vadd.f32 %v2827_v30, %v2826_v26  ;;  %v2928_v32 = vrot.slane %v2927_v19, 4 }
 0x2e4   : > { %v2829_v55 = vrot.slane %v2828_v4, 2  ;;  %v2929_v45 = vadd.f32 %v2928_v32, %v2927_v19 }
 0x2e6   : > { %v2830_v16 = vadd.f32 %v2829_v55, %v2828_v4  ;;  %v2930_v59 = vrot.slane %v2929_v45, 2 }
 0x2e8   : > { %v2831_v61 = vrot.slane %v2830_v16, 1  ;;  %v2931_v20 = vadd.f32 %v2930_v59, %v2929_v45 }
 0x2ea   : > { %v2932_v44 = vrot.slane %v2931_v20, 1  ;;  %v2832_v47 = vadd.f32 %v2831_v61, %v2830_v16 }
 0x2ec   : > { %v2933_v58 = vadd.f32 %v2932_v44, %v2931_v20 }
 0x2ee   : > { %v2935_v57 = vsel %vm2934_vm4, %v2832_v47, %v2933_v58 }
 0x2ef   : > { %2936 = vst.msk [vmem:[%s181_s17] sm:$0x3] %vm217_vm2, %v2935_v57 }
 0x2f0 PF: > { %s14_s12 = sadd.s32 1, %s3360_s12  }
 0x2f1   : > { %p11_p4 = scmp.ge.s32.totalorder %s14_s12, 4  }
 0x2f3   :  { %13 = sbr.rel (!%p11_p4) target bundleno = 1 (0x1), region = 81 }

</bundles_post_ra>
